<compile_context>
chip_gen: v5e
topology: v5e:2x2
jax: 0.10.0
libtpu: 0.0.40
codegen_flags: <defaults>
</compile_context>

<pallas_src>
import jax
import jax.numpy as jnp
import numpy as np
from jax.experimental import pallas as pl
from jax.experimental.pallas import tpu as pltpu
from jax.scipy.linalg import block_diag

# ----- small, forward-consistent sizes -----
B = 2            # batch_size
EMB = 16         # embedding_size
HID = 32         # hidden_size
SEQ = 5          # sequence_length
VOCAB = 24       # vocab_size
OSIZE = 16       # o_layer_size
VLEN = 32        # v_length (paper default 512, shrunk for the small example)
BETA = 32        # beta_size
IMG = 16         # spatial size of input image (1 channel)
L = IMG * IMG    # number of attention locations (256)
IN_SIZE = EMB + OSIZE

LANES = 128
PACK = LANES // VLEN          # locations packed per sublane row (4)
LP = L // PACK                # packed rows per batch element (64)
assert PACK * VLEN == LANES and PACK * BETA == LANES and L % PACK == 0


# ---------------------------------------------------------------------------
# im2col glue (plain JAX): 3x3 conv, stride 1, pad 1, Cin=1  ->  (B*L, 9)
# ---------------------------------------------------------------------------
def _im2col(x_nchw):
    b, c, h, w = x_nchw.shape
    x = jnp.transpose(x_nchw, (0, 2, 3, 1))                     # NHWC
    xp = jnp.pad(x, ((0, 0), (1, 1), (1, 1), (0, 0)))
    pats = [xp[:, dy:dy + h, dx:dx + w, :] for dy in range(3) for dx in range(3)]
    patches = jnp.concatenate(pats, axis=-1)                    # (B, H, W, 9*C)
    return patches.reshape(b * h * w, 9 * c).astype(jnp.float32)


# ---------------------------------------------------------------------------
# Fused CNN + decoder kernel (single invocation, everything stays in VMEM)
# ---------------------------------------------------------------------------
def _fused_kernel(patches_ref, wconv_ref, bconv_ref, wv_ref, emb_ref,
                  wxe_ref, wxo_ref, wh_ref, b_ref, wha_ref, ws_ref, exp_ref,
                  woh_ref, woc_ref, wout_ref, out_ref):
    f32 = jnp.float32

    # ---- CNN stage, packed layout: PACK locations per sublane row ----------
    # vpk[row=b*LP+r, j*VLEN+v] = relu(patches[b, 4r+j] @ w_conv + b_conv)[v]
    vpk = jnp.dot(patches_ref[...], wconv_ref[...],
                  preferred_element_type=f32) + bconv_ref[...]
    vpk = jnp.maximum(vpk, 0.0)                                  # (B*LP, 128)
    projv = jnp.dot(vpk, wv_ref[...], preferred_element_type=f32)  # (B*LP, 128)
    projv3 = projv.reshape(B, LP, LANES)                         # (B, 64, 128)

    # ---- hoisted, loop-invariant loads -------------------------------------
    wxo = wxo_ref[...]                     # (OSIZE, 4*HID)
    wh = wh_ref[...]                       # (HID,   4*HID)
    wha_t = wha_ref[...]                   # (HID, 128)  = Wha tiled 4x along lanes
    ws_bd = ws_ref[...]                    # (128, 4)    block-diag ws columns
    expand = exp_ref[...]                  # (4, 128)    alpha -> per-block expansion
    woh = woh_ref[...]                     # (HID,  OSIZE)
    woc = woc_ref[...]                     # (VLEN, OSIZE)
    wout = wout_ref[...]                   # (OSIZE, VOCAB)

    # Hoisted input-side LSTM matmul for all steps (off the recurrence chain):
    # pre[i*B + b] = emb(step i, batch b) @ Wx_e + bias
    pre = jnp.dot(emb_ref[...], wxe_ref[...],
                  preferred_element_type=f32) + b_ref[...]       # (SEQ*B, 4*HID)

    # reset_LSTM_states() + O_0 = zeros (register-carried state)
    h = jnp.zeros((B, HID), f32)
    c = jnp.zeros((B, HID), f32)
    o_prev = jnp.zeros((B, OSIZE), f32)
    q_parts = []

    # Static unroll: SEQ is a compile-time constant -> full LLO visibility.
    for i in range(SEQ):
        # --- LSTM cell (batched M=B, split weights, 2 lane-dense EUP passes) ---
        gates = (pre[i * B:(i + 1) * B, :]
                 + jnp.dot(o_prev, wxo, preferred_element_type=f32)
                 + jnp.dot(h, wh, preferred_element_type=f32))   # (B, 4*HID)
        sg = jax.nn.sigmoid(gates)
        tg = jnp.tanh(gates)
        i_g = sg[:, 0 * HID:1 * HID]
        f_g = sg[:, 1 * HID:2 * HID]
        g_g = tg[:, 2 * HID:3 * HID]
        o_g = sg[:, 3 * HID:4 * HID]
        c = f_g * c + i_g * g_g
        h = o_g * jnp.tanh(c)                                    # H_t (B, HID)

        # --- additive attention over L locations, lane-packed -------------------
        hp = jnp.dot(h, wha_t, preferred_element_type=f32)       # (B, 128) (tiled 4x)
        act = jnp.tanh(projv3 + hp[:, None, :])                  # (B, 64, 128) dense
        e = jnp.dot(act.reshape(B * LP, LANES), ws_bd,
                    preferred_element_type=f32)                  # (B*LP, 4) on MXU
        e3 = e.reshape(B, LP, PACK)
        m = jnp.max(jnp.max(e3, axis=2, keepdims=True), axis=1, keepdims=True)
        pe = jnp.exp(e3 - m)
        denom = jnp.sum(jnp.sum(pe, axis=2, keepdims=True), axis=1, keepdims=True)
        alpha = pe * pl.reciprocal(denom, approx=True)           # (B, LP, 4)
        # C_t = sum_l alpha_l * V_l, done entirely in the packed layout:
        aexp = jnp.dot(alpha.reshape(B * LP, PACK), expand,
                       preferred_element_type=f32)               # (B*LP, 128)
        ctx = jnp.sum((aexp * vpk).reshape(B, LP, LANES), axis=1)  # (B, 128)
        C_t = (ctx[:, 0 * VLEN:1 * VLEN] + ctx[:, 1 * VLEN:2 * VLEN]
               + ctx[:, 2 * VLEN:3 * VLEN] + ctx[:, 3 * VLEN:4 * VLEN])  # (B, VLEN)

        # --- output heads (split O weights) -------------------------------------
        O_t = jnp.tanh(jnp.dot(h, woh, preferred_element_type=f32)
                       + jnp.dot(C_t, woc, preferred_element_type=f32))  # (B, OSIZE)
        Q_t = jnp.dot(O_t, wout, preferred_element_type=f32)     # (B, VOCAB)
        q_parts.append(Q_t)
        o_prev = O_t

    # Single store (lane-dense-ish (B, SEQ*VOCAB)); wrapper reshapes.
    out_ref[...] = jnp.concatenate(q_parts, axis=1)


# ---------------------------------------------------------------------------
# Wrapper: one-time weight repacking (block-diagonal / tiled) + one pallas_call
# ---------------------------------------------------------------------------
@jax.jit
def encoder_decoder_forward(x_img, emb_in, p):
    # im2col + pack 4 consecutive locations per row -> (B*L/4, 4*9)
    patches = _im2col(x_img)                                     # (B*L, 9)
    patches_p = patches.reshape(B * LP, PACK * 9)                # (128, 36)

    # One-time repacked weights (would be precomputed/cached in real use).
    w_conv_bd = block_diag(*([p["w_conv"]] * PACK))              # (36, 128)
    b_conv_t = jnp.tile(p["b_conv"], (1, PACK))                  # (1, 128)
    wv_bd = block_diag(*([p["wv"]] * PACK))                      # (128, 128)
    wha_t = jnp.tile(p["wha"], (1, PACK))                        # (HID, 128)
    ws_bd = block_diag(*([p["ws"].reshape(BETA, 1)] * PACK))     # (128, 4)
    expand = block_diag(*([jnp.ones((1, VLEN), jnp.float32)] * PACK))  # (4, 128)
    wxe, wxo = p["wx"][:EMB], p["wx"][EMB:]                      # split LSTM input W
    woh, woc = p["wo"][:HID], p["wo"][HID:]                      # split O weight

    # Teacher-forcing embeddings laid out so step i is a contiguous row block.
    emb_sb = jnp.transpose(emb_in, (1, 0, 2)).reshape(SEQ * B, EMB)

    vmem = pl.BlockSpec(memory_space=pltpu.MemorySpace.VMEM)
    out = pl.pallas_call(
        _fused_kernel,
        out_shape=jax.ShapeDtypeStruct((B, SEQ * VOCAB), jnp.float32),
        in_specs=[vmem] * 15,
        out_specs=vmem,
    )(patches_p, w_conv_bd, b_conv_t, wv_bd, emb_sb,
      wxe, wxo, p["wh"], p["b"], wha_t, ws_bd, expand, woh, woc, p["wout"])
    return out.reshape(B, SEQ, VOCAB)


# ---------------------------------------------------------------------------
# Pure-JAX reference (same math) for a correctness check
# ---------------------------------------------------------------------------
def reference_forward(x_img, emb_in, p):
    patches = _im2col(x_img)
    V = jnp.maximum(patches @ p["w_conv"] + p["b_conv"], 0.0).reshape(B, L, VLEN)
    projV = (V.reshape(B * L, VLEN) @ p["wv"]).reshape(B, L, BETA)
    h = jnp.zeros((B, HID)); c = jnp.zeros((B, HID)); o_prev = jnp.zeros((B, OSIZE))
    outs = []
    for i in range(SEQ):
        x_t = jnp.concatenate([emb_in[:, i, :], o_prev], axis=1)
        gates = x_t @ p["wx"] + h @ p["wh"] + p["b"]
        i_g = jax.nn.sigmoid(gates[:, :HID]); f_g = jax.nn.sigmoid(gates[:, HID:2 * HID])
        g_g = jnp.tanh(gates[:, 2 * HID:3 * HID]); o_g = jax.nn.sigmoid(gates[:, 3 * HID:])
        c = f_g * c + i_g * g_g
        h = o_g * jnp.tanh(c)
        act = jnp.tanh(projV + (h @ p["wha"])[:, None, :])
        e = jnp.sum(act * p["ws"][None, :, :], axis=-1)
        alpha = jax.nn.softmax(e, axis=-1)
        C_t = jnp.sum(alpha[:, :, None] * V, axis=1)
        O_t = jnp.tanh(jnp.concatenate([h, C_t], axis=1) @ p["wo"])
        Q_t = O_t @ p["wout"]
        outs.append(Q_t)
        o_prev = O_t
    return jnp.stack(outs, axis=1)


# ---------------------------------------------------------------------------
if __name__ == "__main__":
    key = jax.random.PRNGKey(0)
    ks = jax.random.split(key, 12)

    def init(k, shape, fan_in):
        return (jax.random.normal(k, shape) / np.sqrt(fan_in)).astype(jnp.float32)

    E_table = init(ks[0], (VOCAB, EMB), EMB)                     # nn.Embedding
    params = {
        "w_conv": init(ks[1], (9, VLEN), 9),                     # CNN 3x3 conv
        "b_conv": jnp.zeros((1, VLEN), jnp.float32),
        "wx":     init(ks[2], (IN_SIZE, 4 * HID), IN_SIZE),      # LSTM input weights
        "wh":     init(ks[3], (HID, 4 * HID), HID),              # LSTM hidden weights
        "b":      jnp.zeros((1, 4 * HID), jnp.float32),
        "wv":     init(ks[4], (VLEN, BETA), VLEN),               # attention W_v
        "wha":    init(ks[5], (HID, BETA), HID),                 # attention W_h
        "ws":     init(ks[6], (1, BETA), BETA),                  # attention score vec
        "wo":     init(ks[7], (HID + VLEN, OSIZE), HID + VLEN),  # self.O
        "wout":   init(ks[8], (OSIZE, VOCAB), OSIZE),            # self.W_out
    }

    # inputs
    x_img = jax.random.normal(ks[9], (B, 1, IMG, IMG), jnp.float32)   # X_batch (NCHW)
    labels = jax.random.randint(ks[10], (B, SEQ), 0, VOCAB)           # labels_batch

    # teacher-forcing embedding lookups (glue): step i consumes E(Y_{i-1}), Y_{-1}=vocab-3
    y0 = jnp.full((B, 1), VOCAB - 3, jnp.int32)
    prev_tokens = jnp.concatenate([y0, labels[:, :-1]], axis=1)       # (B, SEQ)
    emb_in = E_table[prev_tokens]                                     # (B, SEQ, EMB)

    # ---- run fused kernel ----
    output = encoder_decoder_forward(x_img, emb_in, params)           # (B, SEQ, VOCAB)
    output = jax.block_until_ready(output)

    ref = jax.block_until_ready(reference_forward(x_img, emb_in, params))
    np.testing.assert_allclose(np.asarray(output), np.asarray(ref),
                               rtol=2e-3, atol=2e-3)
    assert output.shape == (B, SEQ, VOCAB)
    print("KERNEL_OK")
</pallas_src>

<mosaic_0001>
module attributes {stable_mosaic.version = 11 : i64} {
  func.func @_fused_kernel(%arg0: memref<128x36xf32, #tpu.memory_space<vmem>>, %arg1: memref<36x128xf32, #tpu.memory_space<vmem>>, %arg2: memref<1x128xf32, #tpu.memory_space<vmem>>, %arg3: memref<128x128xf32, #tpu.memory_space<vmem>>, %arg4: memref<10x16xf32, #tpu.memory_space<vmem>>, %arg5: memref<16x128xf32, #tpu.memory_space<vmem>>, %arg6: memref<16x128xf32, #tpu.memory_space<vmem>>, %arg7: memref<32x128xf32, #tpu.memory_space<vmem>>, %arg8: memref<1x128xf32, #tpu.memory_space<vmem>>, %arg9: memref<32x128xf32, #tpu.memory_space<vmem>>, %arg10: memref<128x4xf32, #tpu.memory_space<vmem>>, %arg11: memref<4x128xf32, #tpu.memory_space<vmem>>, %arg12: memref<32x16xf32, #tpu.memory_space<vmem>>, %arg13: memref<32x16xf32, #tpu.memory_space<vmem>>, %arg14: memref<16x24xf32, #tpu.memory_space<vmem>>, %arg15: memref<2x120xf32, #tpu.memory_space<vmem>>) attributes {dimension_semantics = [], scalar_prefetch = 0 : i64, scratch_operands = 0 : i64, tpu.core_type = #tpu.core_type<tc>} {
    %c0 = arith.constant 0 : index
    %c0_0 = arith.constant 0 : index
    %0 = vector.load %arg0[%c0, %c0_0] : memref<128x36xf32, #tpu.memory_space<vmem>>, vector<128x36xf32>
    %c0_1 = arith.constant 0 : index
    %c0_2 = arith.constant 0 : index
    %1 = vector.load %arg1[%c0_1, %c0_2] : memref<36x128xf32, #tpu.memory_space<vmem>>, vector<36x128xf32>
    %cst = arith.constant dense<0.000000e+00> : vector<128x128xf32>
    %2 = tpu.matmul %0, %1, %cst {dimension_numbers = #tpu.dot_dimension_numbers<[1], [0], [0], [1], [0, 0, 1, 1], [], []>} : vector<128x36xf32>, vector<36x128xf32>, vector<128x128xf32> -> vector<128x128xf32>
    %c0_3 = arith.constant 0 : index
    %c0_4 = arith.constant 0 : index
    %3 = vector.load %arg2[%c0_3, %c0_4] : memref<1x128xf32, #tpu.memory_space<vmem>>, vector<1x128xf32>
    %4 = vector.broadcast %3 : vector<1x128xf32> to vector<128x128xf32>
    %5 = arith.addf %2, %4 : vector<128x128xf32>
    %cst_5 = arith.constant 0.000000e+00 : f32
    %6 = vector.broadcast %cst_5 : f32 to vector<128x128xf32>
    %7 = arith.maximumf %5, %6 : vector<128x128xf32>
    %c0_6 = arith.constant 0 : index
    %c0_7 = arith.constant 0 : index
    %8 = vector.load %arg3[%c0_6, %c0_7] : memref<128x128xf32, #tpu.memory_space<vmem>>, vector<128x128xf32>
    %cst_8 = arith.constant dense<0.000000e+00> : vector<128x128xf32>
    %9 = tpu.matmul %7, %8, %cst_8 {dimension_numbers = #tpu.dot_dimension_numbers<[1], [0], [0], [1], [0, 0, 1, 1], [], []>} : vector<128x128xf32>, vector<128x128xf32>, vector<128x128xf32> -> vector<128x128xf32>
    %10 = vector.shape_cast %9 : vector<128x128xf32> to vector<2x64x128xf32>
    %c0_9 = arith.constant 0 : index
    %c0_10 = arith.constant 0 : index
    %11 = vector.load %arg6[%c0_9, %c0_10] : memref<16x128xf32, #tpu.memory_space<vmem>>, vector<16x128xf32>
    %c0_11 = arith.constant 0 : index
    %c0_12 = arith.constant 0 : index
    %12 = vector.load %arg7[%c0_11, %c0_12] : memref<32x128xf32, #tpu.memory_space<vmem>>, vector<32x128xf32>
    %c0_13 = arith.constant 0 : index
    %c0_14 = arith.constant 0 : index
    %13 = vector.load %arg9[%c0_13, %c0_14] : memref<32x128xf32, #tpu.memory_space<vmem>>, vector<32x128xf32>
    %c0_15 = arith.constant 0 : index
    %c0_16 = arith.constant 0 : index
    %14 = vector.load %arg10[%c0_15, %c0_16] : memref<128x4xf32, #tpu.memory_space<vmem>>, vector<128x4xf32>
    %c0_17 = arith.constant 0 : index
    %c0_18 = arith.constant 0 : index
    %15 = vector.load %arg11[%c0_17, %c0_18] : memref<4x128xf32, #tpu.memory_space<vmem>>, vector<4x128xf32>
    %c0_19 = arith.constant 0 : index
    %c0_20 = arith.constant 0 : index
    %16 = vector.load %arg12[%c0_19, %c0_20] : memref<32x16xf32, #tpu.memory_space<vmem>>, vector<32x16xf32>
    %c0_21 = arith.constant 0 : index
    %c0_22 = arith.constant 0 : index
    %17 = vector.load %arg13[%c0_21, %c0_22] : memref<32x16xf32, #tpu.memory_space<vmem>>, vector<32x16xf32>
    %c0_23 = arith.constant 0 : index
    %c0_24 = arith.constant 0 : index
    %18 = vector.load %arg14[%c0_23, %c0_24] : memref<16x24xf32, #tpu.memory_space<vmem>>, vector<16x24xf32>
    %c0_25 = arith.constant 0 : index
    %c0_26 = arith.constant 0 : index
    %19 = vector.load %arg4[%c0_25, %c0_26] : memref<10x16xf32, #tpu.memory_space<vmem>>, vector<10x16xf32>
    %c0_27 = arith.constant 0 : index
    %c0_28 = arith.constant 0 : index
    %20 = vector.load %arg5[%c0_27, %c0_28] : memref<16x128xf32, #tpu.memory_space<vmem>>, vector<16x128xf32>
    %cst_29 = arith.constant dense<0.000000e+00> : vector<10x128xf32>
    %21 = tpu.matmul %19, %20, %cst_29 {dimension_numbers = #tpu.dot_dimension_numbers<[1], [0], [0], [1], [0, 0, 1, 1], [], []>} : vector<10x16xf32>, vector<16x128xf32>, vector<10x128xf32> -> vector<10x128xf32>
    %c0_30 = arith.constant 0 : index
    %c0_31 = arith.constant 0 : index
    %22 = vector.load %arg8[%c0_30, %c0_31] : memref<1x128xf32, #tpu.memory_space<vmem>>, vector<1x128xf32>
    %23 = vector.broadcast %22 : vector<1x128xf32> to vector<10x128xf32>
    %24 = arith.addf %21, %23 : vector<10x128xf32>
    %cst_32 = arith.constant 0.000000e+00 : f32
    %25 = vector.broadcast %cst_32 : f32 to vector<2x32xf32>
    %cst_33 = arith.constant 0.000000e+00 : f32
    %26 = vector.broadcast %cst_33 : f32 to vector<2x32xf32>
    %cst_34 = arith.constant 0.000000e+00 : f32
    %27 = vector.broadcast %cst_34 : f32 to vector<2x16xf32>
    %28 = vector.extract_strided_slice %24 {offsets = [0, 0], sizes = [2, 128], strides = [1, 1]} : vector<10x128xf32> to vector<2x128xf32>
    %cst_35 = arith.constant dense<0.000000e+00> : vector<2x128xf32>
    %29 = tpu.matmul %27, %11, %cst_35 {dimension_numbers = #tpu.dot_dimension_numbers<[1], [0], [0], [1], [0, 0, 1, 1], [], []>} : vector<2x16xf32>, vector<16x128xf32>, vector<2x128xf32> -> vector<2x128xf32>
    %30 = arith.addf %28, %29 : vector<2x128xf32>
    %cst_36 = arith.constant dense<0.000000e+00> : vector<2x128xf32>
    %31 = tpu.matmul %25, %12, %cst_36 {dimension_numbers = #tpu.dot_dimension_numbers<[1], [0], [0], [1], [0, 0, 1, 1], [], []>} : vector<2x32xf32>, vector<32x128xf32>, vector<2x128xf32> -> vector<2x128xf32>
    %32 = arith.addf %30, %31 : vector<2x128xf32>
    %33 = arith.negf %32 : vector<2x128xf32>
    %34 = math.exp %33 : vector<2x128xf32>
    %cst_37 = arith.constant 1.000000e+00 : f32
    %35 = vector.broadcast %cst_37 : f32 to vector<2x128xf32>
    %36 = arith.addf %35, %34 : vector<2x128xf32>
    %37 = arith.divf %35, %36 : vector<2x128xf32>
    %38 = math.tanh %32 : vector<2x128xf32>
    %39 = vector.extract_strided_slice %37 {offsets = [0, 0], sizes = [2, 32], strides = [1, 1]} : vector<2x128xf32> to vector<2x32xf32>
    %40 = vector.extract_strided_slice %37 {offsets = [0, 32], sizes = [2, 32], strides = [1, 1]} : vector<2x128xf32> to vector<2x32xf32>
    %41 = vector.extract_strided_slice %38 {offsets = [0, 64], sizes = [2, 32], strides = [1, 1]} : vector<2x128xf32> to vector<2x32xf32>
    %42 = vector.extract_strided_slice %37 {offsets = [0, 96], sizes = [2, 32], strides = [1, 1]} : vector<2x128xf32> to vector<2x32xf32>
    %43 = arith.mulf %40, %26 : vector<2x32xf32>
    %44 = arith.mulf %39, %41 : vector<2x32xf32>
    %45 = arith.addf %43, %44 : vector<2x32xf32>
    %46 = math.tanh %45 : vector<2x32xf32>
    %47 = arith.mulf %42, %46 : vector<2x32xf32>
    %cst_38 = arith.constant dense<0.000000e+00> : vector<2x128xf32>
    %48 = tpu.matmul %47, %13, %cst_38 {dimension_numbers = #tpu.dot_dimension_numbers<[1], [0], [0], [1], [0, 0, 1, 1], [], []>} : vector<2x32xf32>, vector<32x128xf32>, vector<2x128xf32> -> vector<2x128xf32>
    %49 = vector.shape_cast %48 : vector<2x128xf32> to vector<2x1x128xf32>
    %50 = vector.broadcast %49 : vector<2x1x128xf32> to vector<2x64x128xf32>
    %51 = arith.addf %10, %50 : vector<2x64x128xf32>
    %52 = math.tanh %51 : vector<2x64x128xf32>
    %53 = vector.shape_cast %52 : vector<2x64x128xf32> to vector<128x128xf32>
    %cst_39 = arith.constant dense<0.000000e+00> : vector<128x4xf32>
    %54 = tpu.matmul %53, %14, %cst_39 {dimension_numbers = #tpu.dot_dimension_numbers<[1], [0], [0], [1], [0, 0, 1, 1], [], []>} : vector<128x128xf32>, vector<128x4xf32>, vector<128x4xf32> -> vector<128x4xf32>
    %55 = vector.shape_cast %54 : vector<128x4xf32> to vector<2x64x4xf32>
    %cst_40 = arith.constant dense<0xFF800000> : vector<2x64xf32>
    %56 = vector.multi_reduction <maximumf>, %55, %cst_40 [2] : vector<2x64x4xf32> to vector<2x64xf32>
    %57 = vector.shape_cast %56 : vector<2x64xf32> to vector<2x64x1xf32>
    %cst_41 = arith.constant dense<0xFF800000> : vector<2x1xf32>
    %58 = vector.multi_reduction <maximumf>, %57, %cst_41 [1] : vector<2x64x1xf32> to vector<2x1xf32>
    %59 = vector.shape_cast %58 : vector<2x1xf32> to vector<2x1x1xf32>
    %60 = vector.broadcast %59 : vector<2x1x1xf32> to vector<2x64x4xf32>
    %61 = arith.subf %55, %60 : vector<2x64x4xf32>
    %62 = math.exp %61 : vector<2x64x4xf32>
    %cst_42 = arith.constant dense<0.000000e+00> : vector<2x64xf32>
    %63 = vector.multi_reduction <add>, %62, %cst_42 [2] : vector<2x64x4xf32> to vector<2x64xf32>
    %64 = vector.shape_cast %63 : vector<2x64xf32> to vector<2x64x1xf32>
    %cst_43 = arith.constant dense<0.000000e+00> : vector<2x1xf32>
    %65 = vector.multi_reduction <add>, %64, %cst_43 [1] : vector<2x64x1xf32> to vector<2x1xf32>
    %66 = vector.shape_cast %65 : vector<2x1xf32> to vector<2x1x1xf32>
    %67 = tpu.reciprocal %66 {approx = true} : vector<2x1x1xf32> -> vector<2x1x1xf32>
    %68 = vector.broadcast %67 : vector<2x1x1xf32> to vector<2x64x4xf32>
    %69 = arith.mulf %62, %68 : vector<2x64x4xf32>
    %70 = vector.shape_cast %69 : vector<2x64x4xf32> to vector<128x4xf32>
    %cst_44 = arith.constant dense<0.000000e+00> : vector<128x128xf32>
    %71 = tpu.matmul %70, %15, %cst_44 {dimension_numbers = #tpu.dot_dimension_numbers<[1], [0], [0], [1], [0, 0, 1, 1], [], []>} : vector<128x4xf32>, vector<4x128xf32>, vector<128x128xf32> -> vector<128x128xf32>
    %72 = arith.mulf %71, %7 : vector<128x128xf32>
    %73 = vector.shape_cast %72 : vector<128x128xf32> to vector<2x64x128xf32>
    %cst_45 = arith.constant dense<0.000000e+00> : vector<2x128xf32>
    %74 = vector.multi_reduction <add>, %73, %cst_45 [1] : vector<2x64x128xf32> to vector<2x128xf32>
    %75 = vector.extract_strided_slice %74 {offsets = [0, 0], sizes = [2, 32], strides = [1, 1]} : vector<2x128xf32> to vector<2x32xf32>
    %76 = vector.extract_strided_slice %74 {offsets = [0, 32], sizes = [2, 32], strides = [1, 1]} : vector<2x128xf32> to vector<2x32xf32>
    %77 = arith.addf %75, %76 : vector<2x32xf32>
    %78 = vector.extract_strided_slice %74 {offsets = [0, 64], sizes = [2, 32], strides = [1, 1]} : vector<2x128xf32> to vector<2x32xf32>
    %79 = arith.addf %77, %78 : vector<2x32xf32>
    %80 = vector.extract_strided_slice %74 {offsets = [0, 96], sizes = [2, 32], strides = [1, 1]} : vector<2x128xf32> to vector<2x32xf32>
    %81 = arith.addf %79, %80 : vector<2x32xf32>
    %cst_46 = arith.constant dense<0.000000e+00> : vector<2x16xf32>
    %82 = tpu.matmul %47, %16, %cst_46 {dimension_numbers = #tpu.dot_dimension_numbers<[1], [0], [0], [1], [0, 0, 1, 1], [], []>} : vector<2x32xf32>, vector<32x16xf32>, vector<2x16xf32> -> vector<2x16xf32>
    %cst_47 = arith.constant dense<0.000000e+00> : vector<2x16xf32>
    %83 = tpu.matmul %81, %17, %cst_47 {dimension_numbers = #tpu.dot_dimension_numbers<[1], [0], [0], [1], [0, 0, 1, 1], [], []>} : vector<2x32xf32>, vector<32x16xf32>, vector<2x16xf32> -> vector<2x16xf32>
    %84 = arith.addf %82, %83 : vector<2x16xf32>
    %85 = math.tanh %84 : vector<2x16xf32>
    %cst_48 = arith.constant dense<0.000000e+00> : vector<2x24xf32>
    %86 = tpu.matmul %85, %18, %cst_48 {dimension_numbers = #tpu.dot_dimension_numbers<[1], [0], [0], [1], [0, 0, 1, 1], [], []>} : vector<2x16xf32>, vector<16x24xf32>, vector<2x24xf32> -> vector<2x24xf32>
    %87 = vector.extract_strided_slice %24 {offsets = [2, 0], sizes = [2, 128], strides = [1, 1]} : vector<10x128xf32> to vector<2x128xf32>
    %cst_49 = arith.constant dense<0.000000e+00> : vector<2x128xf32>
    %88 = tpu.matmul %85, %11, %cst_49 {dimension_numbers = #tpu.dot_dimension_numbers<[1], [0], [0], [1], [0, 0, 1, 1], [], []>} : vector<2x16xf32>, vector<16x128xf32>, vector<2x128xf32> -> vector<2x128xf32>
    %89 = arith.addf %87, %88 : vector<2x128xf32>
    %cst_50 = arith.constant dense<0.000000e+00> : vector<2x128xf32>
    %90 = tpu.matmul %47, %12, %cst_50 {dimension_numbers = #tpu.dot_dimension_numbers<[1], [0], [0], [1], [0, 0, 1, 1], [], []>} : vector<2x32xf32>, vector<32x128xf32>, vector<2x128xf32> -> vector<2x128xf32>
    %91 = arith.addf %89, %90 : vector<2x128xf32>
    %92 = arith.negf %91 : vector<2x128xf32>
    %93 = math.exp %92 : vector<2x128xf32>
    %cst_51 = arith.constant 1.000000e+00 : f32
    %94 = vector.broadcast %cst_51 : f32 to vector<2x128xf32>
    %95 = arith.addf %94, %93 : vector<2x128xf32>
    %96 = arith.divf %94, %95 : vector<2x128xf32>
    %97 = math.tanh %91 : vector<2x128xf32>
    %98 = vector.extract_strided_slice %96 {offsets = [0, 0], sizes = [2, 32], strides = [1, 1]} : vector<2x128xf32> to vector<2x32xf32>
    %99 = vector.extract_strided_slice %96 {offsets = [0, 32], sizes = [2, 32], strides = [1, 1]} : vector<2x128xf32> to vector<2x32xf32>
    %100 = vector.extract_strided_slice %97 {offsets = [0, 64], sizes = [2, 32], strides = [1, 1]} : vector<2x128xf32> to vector<2x32xf32>
    %101 = vector.extract_strided_slice %96 {offsets = [0, 96], sizes = [2, 32], strides = [1, 1]} : vector<2x128xf32> to vector<2x32xf32>
    %102 = arith.mulf %99, %45 : vector<2x32xf32>
    %103 = arith.mulf %98, %100 : vector<2x32xf32>
    %104 = arith.addf %102, %103 : vector<2x32xf32>
    %105 = math.tanh %104 : vector<2x32xf32>
    %106 = arith.mulf %101, %105 : vector<2x32xf32>
    %cst_52 = arith.constant dense<0.000000e+00> : vector<2x128xf32>
    %107 = tpu.matmul %106, %13, %cst_52 {dimension_numbers = #tpu.dot_dimension_numbers<[1], [0], [0], [1], [0, 0, 1, 1], [], []>} : vector<2x32xf32>, vector<32x128xf32>, vector<2x128xf32> -> vector<2x128xf32>
    %108 = vector.shape_cast %107 : vector<2x128xf32> to vector<2x1x128xf32>
    %109 = vector.broadcast %108 : vector<2x1x128xf32> to vector<2x64x128xf32>
    %110 = arith.addf %10, %109 : vector<2x64x128xf32>
    %111 = math.tanh %110 : vector<2x64x128xf32>
    %112 = vector.shape_cast %111 : vector<2x64x128xf32> to vector<128x128xf32>
    %cst_53 = arith.constant dense<0.000000e+00> : vector<128x4xf32>
    %113 = tpu.matmul %112, %14, %cst_53 {dimension_numbers = #tpu.dot_dimension_numbers<[1], [0], [0], [1], [0, 0, 1, 1], [], []>} : vector<128x128xf32>, vector<128x4xf32>, vector<128x4xf32> -> vector<128x4xf32>
    %114 = vector.shape_cast %113 : vector<128x4xf32> to vector<2x64x4xf32>
    %cst_54 = arith.constant dense<0xFF800000> : vector<2x64xf32>
    %115 = vector.multi_reduction <maximumf>, %114, %cst_54 [2] : vector<2x64x4xf32> to vector<2x64xf32>
    %116 = vector.shape_cast %115 : vector<2x64xf32> to vector<2x64x1xf32>
    %cst_55 = arith.constant dense<0xFF800000> : vector<2x1xf32>
    %117 = vector.multi_reduction <maximumf>, %116, %cst_55 [1] : vector<2x64x1xf32> to vector<2x1xf32>
    %118 = vector.shape_cast %117 : vector<2x1xf32> to vector<2x1x1xf32>
    %119 = vector.broadcast %118 : vector<2x1x1xf32> to vector<2x64x4xf32>
    %120 = arith.subf %114, %119 : vector<2x64x4xf32>
    %121 = math.exp %120 : vector<2x64x4xf32>
    %cst_56 = arith.constant dense<0.000000e+00> : vector<2x64xf32>
    %122 = vector.multi_reduction <add>, %121, %cst_56 [2] : vector<2x64x4xf32> to vector<2x64xf32>
    %123 = vector.shape_cast %122 : vector<2x64xf32> to vector<2x64x1xf32>
    %cst_57 = arith.constant dense<0.000000e+00> : vector<2x1xf32>
    %124 = vector.multi_reduction <add>, %123, %cst_57 [1] : vector<2x64x1xf32> to vector<2x1xf32>
    %125 = vector.shape_cast %124 : vector<2x1xf32> to vector<2x1x1xf32>
    %126 = tpu.reciprocal %125 {approx = true} : vector<2x1x1xf32> -> vector<2x1x1xf32>
    %127 = vector.broadcast %126 : vector<2x1x1xf32> to vector<2x64x4xf32>
    %128 = arith.mulf %121, %127 : vector<2x64x4xf32>
    %129 = vector.shape_cast %128 : vector<2x64x4xf32> to vector<128x4xf32>
    %cst_58 = arith.constant dense<0.000000e+00> : vector<128x128xf32>
    %130 = tpu.matmul %129, %15, %cst_58 {dimension_numbers = #tpu.dot_dimension_numbers<[1], [0], [0], [1], [0, 0, 1, 1], [], []>} : vector<128x4xf32>, vector<4x128xf32>, vector<128x128xf32> -> vector<128x128xf32>
    %131 = arith.mulf %130, %7 : vector<128x128xf32>
    %132 = vector.shape_cast %131 : vector<128x128xf32> to vector<2x64x128xf32>
    %cst_59 = arith.constant dense<0.000000e+00> : vector<2x128xf32>
    %133 = vector.multi_reduction <add>, %132, %cst_59 [1] : vector<2x64x128xf32> to vector<2x128xf32>
    %134 = vector.extract_strided_slice %133 {offsets = [0, 0], sizes = [2, 32], strides = [1, 1]} : vector<2x128xf32> to vector<2x32xf32>
    %135 = vector.extract_strided_slice %133 {offsets = [0, 32], sizes = [2, 32], strides = [1, 1]} : vector<2x128xf32> to vector<2x32xf32>
    %136 = arith.addf %134, %135 : vector<2x32xf32>
    %137 = vector.extract_strided_slice %133 {offsets = [0, 64], sizes = [2, 32], strides = [1, 1]} : vector<2x128xf32> to vector<2x32xf32>
    %138 = arith.addf %136, %137 : vector<2x32xf32>
    %139 = vector.extract_strided_slice %133 {offsets = [0, 96], sizes = [2, 32], strides = [1, 1]} : vector<2x128xf32> to vector<2x32xf32>
    %140 = arith.addf %138, %139 : vector<2x32xf32>
    %cst_60 = arith.constant dense<0.000000e+00> : vector<2x16xf32>
    %141 = tpu.matmul %106, %16, %cst_60 {dimension_numbers = #tpu.dot_dimension_numbers<[1], [0], [0], [1], [0, 0, 1, 1], [], []>} : vector<2x32xf32>, vector<32x16xf32>, vector<2x16xf32> -> vector<2x16xf32>
    %cst_61 = arith.constant dense<0.000000e+00> : vector<2x16xf32>
    %142 = tpu.matmul %140, %17, %cst_61 {dimension_numbers = #tpu.dot_dimension_numbers<[1], [0], [0], [1], [0, 0, 1, 1], [], []>} : vector<2x32xf32>, vector<32x16xf32>, vector<2x16xf32> -> vector<2x16xf32>
    %143 = arith.addf %141, %142 : vector<2x16xf32>
    %144 = math.tanh %143 : vector<2x16xf32>
    %cst_62 = arith.constant dense<0.000000e+00> : vector<2x24xf32>
    %145 = tpu.matmul %144, %18, %cst_62 {dimension_numbers = #tpu.dot_dimension_numbers<[1], [0], [0], [1], [0, 0, 1, 1], [], []>} : vector<2x16xf32>, vector<16x24xf32>, vector<2x24xf32> -> vector<2x24xf32>
    %146 = vector.extract_strided_slice %24 {offsets = [4, 0], sizes = [2, 128], strides = [1, 1]} : vector<10x128xf32> to vector<2x128xf32>
    %cst_63 = arith.constant dense<0.000000e+00> : vector<2x128xf32>
    %147 = tpu.matmul %144, %11, %cst_63 {dimension_numbers = #tpu.dot_dimension_numbers<[1], [0], [0], [1], [0, 0, 1, 1], [], []>} : vector<2x16xf32>, vector<16x128xf32>, vector<2x128xf32> -> vector<2x128xf32>
    %148 = arith.addf %146, %147 : vector<2x128xf32>
    %cst_64 = arith.constant dense<0.000000e+00> : vector<2x128xf32>
    %149 = tpu.matmul %106, %12, %cst_64 {dimension_numbers = #tpu.dot_dimension_numbers<[1], [0], [0], [1], [0, 0, 1, 1], [], []>} : vector<2x32xf32>, vector<32x128xf32>, vector<2x128xf32> -> vector<2x128xf32>
    %150 = arith.addf %148, %149 : vector<2x128xf32>
    %151 = arith.negf %150 : vector<2x128xf32>
    %152 = math.exp %151 : vector<2x128xf32>
    %cst_65 = arith.constant 1.000000e+00 : f32
    %153 = vector.broadcast %cst_65 : f32 to vector<2x128xf32>
    %154 = arith.addf %153, %152 : vector<2x128xf32>
    %155 = arith.divf %153, %154 : vector<2x128xf32>
    %156 = math.tanh %150 : vector<2x128xf32>
    %157 = vector.extract_strided_slice %155 {offsets = [0, 0], sizes = [2, 32], strides = [1, 1]} : vector<2x128xf32> to vector<2x32xf32>
    %158 = vector.extract_strided_slice %155 {offsets = [0, 32], sizes = [2, 32], strides = [1, 1]} : vector<2x128xf32> to vector<2x32xf32>
    %159 = vector.extract_strided_slice %156 {offsets = [0, 64], sizes = [2, 32], strides = [1, 1]} : vector<2x128xf32> to vector<2x32xf32>
    %160 = vector.extract_strided_slice %155 {offsets = [0, 96], sizes = [2, 32], strides = [1, 1]} : vector<2x128xf32> to vector<2x32xf32>
    %161 = arith.mulf %158, %104 : vector<2x32xf32>
    %162 = arith.mulf %157, %159 : vector<2x32xf32>
    %163 = arith.addf %161, %162 : vector<2x32xf32>
    %164 = math.tanh %163 : vector<2x32xf32>
    %165 = arith.mulf %160, %164 : vector<2x32xf32>
    %cst_66 = arith.constant dense<0.000000e+00> : vector<2x128xf32>
    %166 = tpu.matmul %165, %13, %cst_66 {dimension_numbers = #tpu.dot_dimension_numbers<[1], [0], [0], [1], [0, 0, 1, 1], [], []>} : vector<2x32xf32>, vector<32x128xf32>, vector<2x128xf32> -> vector<2x128xf32>
    %167 = vector.shape_cast %166 : vector<2x128xf32> to vector<2x1x128xf32>
    %168 = vector.broadcast %167 : vector<2x1x128xf32> to vector<2x64x128xf32>
    %169 = arith.addf %10, %168 : vector<2x64x128xf32>
    %170 = math.tanh %169 : vector<2x64x128xf32>
    %171 = vector.shape_cast %170 : vector<2x64x128xf32> to vector<128x128xf32>
    %cst_67 = arith.constant dense<0.000000e+00> : vector<128x4xf32>
    %172 = tpu.matmul %171, %14, %cst_67 {dimension_numbers = #tpu.dot_dimension_numbers<[1], [0], [0], [1], [0, 0, 1, 1], [], []>} : vector<128x128xf32>, vector<128x4xf32>, vector<128x4xf32> -> vector<128x4xf32>
    %173 = vector.shape_cast %172 : vector<128x4xf32> to vector<2x64x4xf32>
    %cst_68 = arith.constant dense<0xFF800000> : vector<2x64xf32>
    %174 = vector.multi_reduction <maximumf>, %173, %cst_68 [2] : vector<2x64x4xf32> to vector<2x64xf32>
    %175 = vector.shape_cast %174 : vector<2x64xf32> to vector<2x64x1xf32>
    %cst_69 = arith.constant dense<0xFF800000> : vector<2x1xf32>
    %176 = vector.multi_reduction <maximumf>, %175, %cst_69 [1] : vector<2x64x1xf32> to vector<2x1xf32>
    %177 = vector.shape_cast %176 : vector<2x1xf32> to vector<2x1x1xf32>
    %178 = vector.broadcast %177 : vector<2x1x1xf32> to vector<2x64x4xf32>
    %179 = arith.subf %173, %178 : vector<2x64x4xf32>
    %180 = math.exp %179 : vector<2x64x4xf32>
    %cst_70 = arith.constant dense<0.000000e+00> : vector<2x64xf32>
    %181 = vector.multi_reduction <add>, %180, %cst_70 [2] : vector<2x64x4xf32> to vector<2x64xf32>
    %182 = vector.shape_cast %181 : vector<2x64xf32> to vector<2x64x1xf32>
    %cst_71 = arith.constant dense<0.000000e+00> : vector<2x1xf32>
    %183 = vector.multi_reduction <add>, %182, %cst_71 [1] : vector<2x64x1xf32> to vector<2x1xf32>
    %184 = vector.shape_cast %183 : vector<2x1xf32> to vector<2x1x1xf32>
    %185 = tpu.reciprocal %184 {approx = true} : vector<2x1x1xf32> -> vector<2x1x1xf32>
    %186 = vector.broadcast %185 : vector<2x1x1xf32> to vector<2x64x4xf32>
    %187 = arith.mulf %180, %186 : vector<2x64x4xf32>
    %188 = vector.shape_cast %187 : vector<2x64x4xf32> to vector<128x4xf32>
    %cst_72 = arith.constant dense<0.000000e+00> : vector<128x128xf32>
    %189 = tpu.matmul %188, %15, %cst_72 {dimension_numbers = #tpu.dot_dimension_numbers<[1], [0], [0], [1], [0, 0, 1, 1], [], []>} : vector<128x4xf32>, vector<4x128xf32>, vector<128x128xf32> -> vector<128x128xf32>
    %190 = arith.mulf %189, %7 : vector<128x128xf32>
    %191 = vector.shape_cast %190 : vector<128x128xf32> to vector<2x64x128xf32>
    %cst_73 = arith.constant dense<0.000000e+00> : vector<2x128xf32>
    %192 = vector.multi_reduction <add>, %191, %cst_73 [1] : vector<2x64x128xf32> to vector<2x128xf32>
    %193 = vector.extract_strided_slice %192 {offsets = [0, 0], sizes = [2, 32], strides = [1, 1]} : vector<2x128xf32> to vector<2x32xf32>
    %194 = vector.extract_strided_slice %192 {offsets = [0, 32], sizes = [2, 32], strides = [1, 1]} : vector<2x128xf32> to vector<2x32xf32>
    %195 = arith.addf %193, %194 : vector<2x32xf32>
    %196 = vector.extract_strided_slice %192 {offsets = [0, 64], sizes = [2, 32], strides = [1, 1]} : vector<2x128xf32> to vector<2x32xf32>
    %197 = arith.addf %195, %196 : vector<2x32xf32>
    %198 = vector.extract_strided_slice %192 {offsets = [0, 96], sizes = [2, 32], strides = [1, 1]} : vector<2x128xf32> to vector<2x32xf32>
    %199 = arith.addf %197, %198 : vector<2x32xf32>
    %cst_74 = arith.constant dense<0.000000e+00> : vector<2x16xf32>
    %200 = tpu.matmul %165, %16, %cst_74 {dimension_numbers = #tpu.dot_dimension_numbers<[1], [0], [0], [1], [0, 0, 1, 1], [], []>} : vector<2x32xf32>, vector<32x16xf32>, vector<2x16xf32> -> vector<2x16xf32>
    %cst_75 = arith.constant dense<0.000000e+00> : vector<2x16xf32>
    %201 = tpu.matmul %199, %17, %cst_75 {dimension_numbers = #tpu.dot_dimension_numbers<[1], [0], [0], [1], [0, 0, 1, 1], [], []>} : vector<2x32xf32>, vector<32x16xf32>, vector<2x16xf32> -> vector<2x16xf32>
    %202 = arith.addf %200, %201 : vector<2x16xf32>
    %203 = math.tanh %202 : vector<2x16xf32>
    %cst_76 = arith.constant dense<0.000000e+00> : vector<2x24xf32>
    %204 = tpu.matmul %203, %18, %cst_76 {dimension_numbers = #tpu.dot_dimension_numbers<[1], [0], [0], [1], [0, 0, 1, 1], [], []>} : vector<2x16xf32>, vector<16x24xf32>, vector<2x24xf32> -> vector<2x24xf32>
    %205 = vector.extract_strided_slice %24 {offsets = [6, 0], sizes = [2, 128], strides = [1, 1]} : vector<10x128xf32> to vector<2x128xf32>
    %cst_77 = arith.constant dense<0.000000e+00> : vector<2x128xf32>
    %206 = tpu.matmul %203, %11, %cst_77 {dimension_numbers = #tpu.dot_dimension_numbers<[1], [0], [0], [1], [0, 0, 1, 1], [], []>} : vector<2x16xf32>, vector<16x128xf32>, vector<2x128xf32> -> vector<2x128xf32>
    %207 = arith.addf %205, %206 : vector<2x128xf32>
    %cst_78 = arith.constant dense<0.000000e+00> : vector<2x128xf32>
    %208 = tpu.matmul %165, %12, %cst_78 {dimension_numbers = #tpu.dot_dimension_numbers<[1], [0], [0], [1], [0, 0, 1, 1], [], []>} : vector<2x32xf32>, vector<32x128xf32>, vector<2x128xf32> -> vector<2x128xf32>
    %209 = arith.addf %207, %208 : vector<2x128xf32>
    %210 = arith.negf %209 : vector<2x128xf32>
    %211 = math.exp %210 : vector<2x128xf32>
    %cst_79 = arith.constant 1.000000e+00 : f32
    %212 = vector.broadcast %cst_79 : f32 to vector<2x128xf32>
    %213 = arith.addf %212, %211 : vector<2x128xf32>
    %214 = arith.divf %212, %213 : vector<2x128xf32>
    %215 = math.tanh %209 : vector<2x128xf32>
    %216 = vector.extract_strided_slice %214 {offsets = [0, 0], sizes = [2, 32], strides = [1, 1]} : vector<2x128xf32> to vector<2x32xf32>
    %217 = vector.extract_strided_slice %214 {offsets = [0, 32], sizes = [2, 32], strides = [1, 1]} : vector<2x128xf32> to vector<2x32xf32>
    %218 = vector.extract_strided_slice %215 {offsets = [0, 64], sizes = [2, 32], strides = [1, 1]} : vector<2x128xf32> to vector<2x32xf32>
    %219 = vector.extract_strided_slice %214 {offsets = [0, 96], sizes = [2, 32], strides = [1, 1]} : vector<2x128xf32> to vector<2x32xf32>
    %220 = arith.mulf %217, %163 : vector<2x32xf32>
    %221 = arith.mulf %216, %218 : vector<2x32xf32>
    %222 = arith.addf %220, %221 : vector<2x32xf32>
    %223 = math.tanh %222 : vector<2x32xf32>
    %224 = arith.mulf %219, %223 : vector<2x32xf32>
    %cst_80 = arith.constant dense<0.000000e+00> : vector<2x128xf32>
    %225 = tpu.matmul %224, %13, %cst_80 {dimension_numbers = #tpu.dot_dimension_numbers<[1], [0], [0], [1], [0, 0, 1, 1], [], []>} : vector<2x32xf32>, vector<32x128xf32>, vector<2x128xf32> -> vector<2x128xf32>
    %226 = vector.shape_cast %225 : vector<2x128xf32> to vector<2x1x128xf32>
    %227 = vector.broadcast %226 : vector<2x1x128xf32> to vector<2x64x128xf32>
    %228 = arith.addf %10, %227 : vector<2x64x128xf32>
    %229 = math.tanh %228 : vector<2x64x128xf32>
    %230 = vector.shape_cast %229 : vector<2x64x128xf32> to vector<128x128xf32>
    %cst_81 = arith.constant dense<0.000000e+00> : vector<128x4xf32>
    %231 = tpu.matmul %230, %14, %cst_81 {dimension_numbers = #tpu.dot_dimension_numbers<[1], [0], [0], [1], [0, 0, 1, 1], [], []>} : vector<128x128xf32>, vector<128x4xf32>, vector<128x4xf32> -> vector<128x4xf32>
    %232 = vector.shape_cast %231 : vector<128x4xf32> to vector<2x64x4xf32>
    %cst_82 = arith.constant dense<0xFF800000> : vector<2x64xf32>
    %233 = vector.multi_reduction <maximumf>, %232, %cst_82 [2] : vector<2x64x4xf32> to vector<2x64xf32>
    %234 = vector.shape_cast %233 : vector<2x64xf32> to vector<2x64x1xf32>
    %cst_83 = arith.constant dense<0xFF800000> : vector<2x1xf32>
    %235 = vector.multi_reduction <maximumf>, %234, %cst_83 [1] : vector<2x64x1xf32> to vector<2x1xf32>
    %236 = vector.shape_cast %235 : vector<2x1xf32> to vector<2x1x1xf32>
    %237 = vector.broadcast %236 : vector<2x1x1xf32> to vector<2x64x4xf32>
    %238 = arith.subf %232, %237 : vector<2x64x4xf32>
    %239 = math.exp %238 : vector<2x64x4xf32>
    %cst_84 = arith.constant dense<0.000000e+00> : vector<2x64xf32>
    %240 = vector.multi_reduction <add>, %239, %cst_84 [2] : vector<2x64x4xf32> to vector<2x64xf32>
    %241 = vector.shape_cast %240 : vector<2x64xf32> to vector<2x64x1xf32>
    %cst_85 = arith.constant dense<0.000000e+00> : vector<2x1xf32>
    %242 = vector.multi_reduction <add>, %241, %cst_85 [1] : vector<2x64x1xf32> to vector<2x1xf32>
    %243 = vector.shape_cast %242 : vector<2x1xf32> to vector<2x1x1xf32>
    %244 = tpu.reciprocal %243 {approx = true} : vector<2x1x1xf32> -> vector<2x1x1xf32>
    %245 = vector.broadcast %244 : vector<2x1x1xf32> to vector<2x64x4xf32>
    %246 = arith.mulf %239, %245 : vector<2x64x4xf32>
    %247 = vector.shape_cast %246 : vector<2x64x4xf32> to vector<128x4xf32>
    %cst_86 = arith.constant dense<0.000000e+00> : vector<128x128xf32>
    %248 = tpu.matmul %247, %15, %cst_86 {dimension_numbers = #tpu.dot_dimension_numbers<[1], [0], [0], [1], [0, 0, 1, 1], [], []>} : vector<128x4xf32>, vector<4x128xf32>, vector<128x128xf32> -> vector<128x128xf32>
    %249 = arith.mulf %248, %7 : vector<128x128xf32>
    %250 = vector.shape_cast %249 : vector<128x128xf32> to vector<2x64x128xf32>
    %cst_87 = arith.constant dense<0.000000e+00> : vector<2x128xf32>
    %251 = vector.multi_reduction <add>, %250, %cst_87 [1] : vector<2x64x128xf32> to vector<2x128xf32>
    %252 = vector.extract_strided_slice %251 {offsets = [0, 0], sizes = [2, 32], strides = [1, 1]} : vector<2x128xf32> to vector<2x32xf32>
    %253 = vector.extract_strided_slice %251 {offsets = [0, 32], sizes = [2, 32], strides = [1, 1]} : vector<2x128xf32> to vector<2x32xf32>
    %254 = arith.addf %252, %253 : vector<2x32xf32>
    %255 = vector.extract_strided_slice %251 {offsets = [0, 64], sizes = [2, 32], strides = [1, 1]} : vector<2x128xf32> to vector<2x32xf32>
    %256 = arith.addf %254, %255 : vector<2x32xf32>
    %257 = vector.extract_strided_slice %251 {offsets = [0, 96], sizes = [2, 32], strides = [1, 1]} : vector<2x128xf32> to vector<2x32xf32>
    %258 = arith.addf %256, %257 : vector<2x32xf32>
    %cst_88 = arith.constant dense<0.000000e+00> : vector<2x16xf32>
    %259 = tpu.matmul %224, %16, %cst_88 {dimension_numbers = #tpu.dot_dimension_numbers<[1], [0], [0], [1], [0, 0, 1, 1], [], []>} : vector<2x32xf32>, vector<32x16xf32>, vector<2x16xf32> -> vector<2x16xf32>
    %cst_89 = arith.constant dense<0.000000e+00> : vector<2x16xf32>
    %260 = tpu.matmul %258, %17, %cst_89 {dimension_numbers = #tpu.dot_dimension_numbers<[1], [0], [0], [1], [0, 0, 1, 1], [], []>} : vector<2x32xf32>, vector<32x16xf32>, vector<2x16xf32> -> vector<2x16xf32>
    %261 = arith.addf %259, %260 : vector<2x16xf32>
    %262 = math.tanh %261 : vector<2x16xf32>
    %cst_90 = arith.constant dense<0.000000e+00> : vector<2x24xf32>
    %263 = tpu.matmul %262, %18, %cst_90 {dimension_numbers = #tpu.dot_dimension_numbers<[1], [0], [0], [1], [0, 0, 1, 1], [], []>} : vector<2x16xf32>, vector<16x24xf32>, vector<2x24xf32> -> vector<2x24xf32>
    %264 = vector.extract_strided_slice %24 {offsets = [8, 0], sizes = [2, 128], strides = [1, 1]} : vector<10x128xf32> to vector<2x128xf32>
    %cst_91 = arith.constant dense<0.000000e+00> : vector<2x128xf32>
    %265 = tpu.matmul %262, %11, %cst_91 {dimension_numbers = #tpu.dot_dimension_numbers<[1], [0], [0], [1], [0, 0, 1, 1], [], []>} : vector<2x16xf32>, vector<16x128xf32>, vector<2x128xf32> -> vector<2x128xf32>
    %266 = arith.addf %264, %265 : vector<2x128xf32>
    %cst_92 = arith.constant dense<0.000000e+00> : vector<2x128xf32>
    %267 = tpu.matmul %224, %12, %cst_92 {dimension_numbers = #tpu.dot_dimension_numbers<[1], [0], [0], [1], [0, 0, 1, 1], [], []>} : vector<2x32xf32>, vector<32x128xf32>, vector<2x128xf32> -> vector<2x128xf32>
    %268 = arith.addf %266, %267 : vector<2x128xf32>
    %269 = arith.negf %268 : vector<2x128xf32>
    %270 = math.exp %269 : vector<2x128xf32>
    %cst_93 = arith.constant 1.000000e+00 : f32
    %271 = vector.broadcast %cst_93 : f32 to vector<2x128xf32>
    %272 = arith.addf %271, %270 : vector<2x128xf32>
    %273 = arith.divf %271, %272 : vector<2x128xf32>
    %274 = math.tanh %268 : vector<2x128xf32>
    %275 = vector.extract_strided_slice %273 {offsets = [0, 0], sizes = [2, 32], strides = [1, 1]} : vector<2x128xf32> to vector<2x32xf32>
    %276 = vector.extract_strided_slice %273 {offsets = [0, 32], sizes = [2, 32], strides = [1, 1]} : vector<2x128xf32> to vector<2x32xf32>
    %277 = vector.extract_strided_slice %274 {offsets = [0, 64], sizes = [2, 32], strides = [1, 1]} : vector<2x128xf32> to vector<2x32xf32>
    %278 = vector.extract_strided_slice %273 {offsets = [0, 96], sizes = [2, 32], strides = [1, 1]} : vector<2x128xf32> to vector<2x32xf32>
    %279 = arith.mulf %276, %222 : vector<2x32xf32>
    %280 = arith.mulf %275, %277 : vector<2x32xf32>
    %281 = arith.addf %279, %280 : vector<2x32xf32>
    %282 = math.tanh %281 : vector<2x32xf32>
    %283 = arith.mulf %278, %282 : vector<2x32xf32>
    %cst_94 = arith.constant dense<0.000000e+00> : vector<2x128xf32>
    %284 = tpu.matmul %283, %13, %cst_94 {dimension_numbers = #tpu.dot_dimension_numbers<[1], [0], [0], [1], [0, 0, 1, 1], [], []>} : vector<2x32xf32>, vector<32x128xf32>, vector<2x128xf32> -> vector<2x128xf32>
    %285 = vector.shape_cast %284 : vector<2x128xf32> to vector<2x1x128xf32>
    %286 = vector.broadcast %285 : vector<2x1x128xf32> to vector<2x64x128xf32>
    %287 = arith.addf %10, %286 : vector<2x64x128xf32>
    %288 = math.tanh %287 : vector<2x64x128xf32>
    %289 = vector.shape_cast %288 : vector<2x64x128xf32> to vector<128x128xf32>
    %cst_95 = arith.constant dense<0.000000e+00> : vector<128x4xf32>
    %290 = tpu.matmul %289, %14, %cst_95 {dimension_numbers = #tpu.dot_dimension_numbers<[1], [0], [0], [1], [0, 0, 1, 1], [], []>} : vector<128x128xf32>, vector<128x4xf32>, vector<128x4xf32> -> vector<128x4xf32>
    %291 = vector.shape_cast %290 : vector<128x4xf32> to vector<2x64x4xf32>
    %cst_96 = arith.constant dense<0xFF800000> : vector<2x64xf32>
    %292 = vector.multi_reduction <maximumf>, %291, %cst_96 [2] : vector<2x64x4xf32> to vector<2x64xf32>
    %293 = vector.shape_cast %292 : vector<2x64xf32> to vector<2x64x1xf32>
    %cst_97 = arith.constant dense<0xFF800000> : vector<2x1xf32>
    %294 = vector.multi_reduction <maximumf>, %293, %cst_97 [1] : vector<2x64x1xf32> to vector<2x1xf32>
    %295 = vector.shape_cast %294 : vector<2x1xf32> to vector<2x1x1xf32>
    %296 = vector.broadcast %295 : vector<2x1x1xf32> to vector<2x64x4xf32>
    %297 = arith.subf %291, %296 : vector<2x64x4xf32>
    %298 = math.exp %297 : vector<2x64x4xf32>
    %cst_98 = arith.constant dense<0.000000e+00> : vector<2x64xf32>
    %299 = vector.multi_reduction <add>, %298, %cst_98 [2] : vector<2x64x4xf32> to vector<2x64xf32>
    %300 = vector.shape_cast %299 : vector<2x64xf32> to vector<2x64x1xf32>
    %cst_99 = arith.constant dense<0.000000e+00> : vector<2x1xf32>
    %301 = vector.multi_reduction <add>, %300, %cst_99 [1] : vector<2x64x1xf32> to vector<2x1xf32>
    %302 = vector.shape_cast %301 : vector<2x1xf32> to vector<2x1x1xf32>
    %303 = tpu.reciprocal %302 {approx = true} : vector<2x1x1xf32> -> vector<2x1x1xf32>
    %304 = vector.broadcast %303 : vector<2x1x1xf32> to vector<2x64x4xf32>
    %305 = arith.mulf %298, %304 : vector<2x64x4xf32>
    %306 = vector.shape_cast %305 : vector<2x64x4xf32> to vector<128x4xf32>
    %cst_100 = arith.constant dense<0.000000e+00> : vector<128x128xf32>
    %307 = tpu.matmul %306, %15, %cst_100 {dimension_numbers = #tpu.dot_dimension_numbers<[1], [0], [0], [1], [0, 0, 1, 1], [], []>} : vector<128x4xf32>, vector<4x128xf32>, vector<128x128xf32> -> vector<128x128xf32>
    %308 = arith.mulf %307, %7 : vector<128x128xf32>
    %309 = vector.shape_cast %308 : vector<128x128xf32> to vector<2x64x128xf32>
    %cst_101 = arith.constant dense<0.000000e+00> : vector<2x128xf32>
    %310 = vector.multi_reduction <add>, %309, %cst_101 [1] : vector<2x64x128xf32> to vector<2x128xf32>
    %311 = vector.extract_strided_slice %310 {offsets = [0, 0], sizes = [2, 32], strides = [1, 1]} : vector<2x128xf32> to vector<2x32xf32>
    %312 = vector.extract_strided_slice %310 {offsets = [0, 32], sizes = [2, 32], strides = [1, 1]} : vector<2x128xf32> to vector<2x32xf32>
    %313 = arith.addf %311, %312 : vector<2x32xf32>
    %314 = vector.extract_strided_slice %310 {offsets = [0, 64], sizes = [2, 32], strides = [1, 1]} : vector<2x128xf32> to vector<2x32xf32>
    %315 = arith.addf %313, %314 : vector<2x32xf32>
    %316 = vector.extract_strided_slice %310 {offsets = [0, 96], sizes = [2, 32], strides = [1, 1]} : vector<2x128xf32> to vector<2x32xf32>
    %317 = arith.addf %315, %316 : vector<2x32xf32>
    %cst_102 = arith.constant dense<0.000000e+00> : vector<2x16xf32>
    %318 = tpu.matmul %283, %16, %cst_102 {dimension_numbers = #tpu.dot_dimension_numbers<[1], [0], [0], [1], [0, 0, 1, 1], [], []>} : vector<2x32xf32>, vector<32x16xf32>, vector<2x16xf32> -> vector<2x16xf32>
    %cst_103 = arith.constant dense<0.000000e+00> : vector<2x16xf32>
    %319 = tpu.matmul %317, %17, %cst_103 {dimension_numbers = #tpu.dot_dimension_numbers<[1], [0], [0], [1], [0, 0, 1, 1], [], []>} : vector<2x32xf32>, vector<32x16xf32>, vector<2x16xf32> -> vector<2x16xf32>
    %320 = arith.addf %318, %319 : vector<2x16xf32>
    %321 = math.tanh %320 : vector<2x16xf32>
    %cst_104 = arith.constant dense<0.000000e+00> : vector<2x24xf32>
    %322 = tpu.matmul %321, %18, %cst_104 {dimension_numbers = #tpu.dot_dimension_numbers<[1], [0], [0], [1], [0, 0, 1, 1], [], []>} : vector<2x16xf32>, vector<16x24xf32>, vector<2x24xf32> -> vector<2x24xf32>
    %323 = tpu.concatenate %86, %145, %204, %263, %322 in 1 : vector<2x24xf32>, vector<2x24xf32>, vector<2x24xf32>, vector<2x24xf32>, vector<2x24xf32> -> vector<2x120xf32>
    %c0_105 = arith.constant 0 : index
    %c0_106 = arith.constant 0 : index
    %324 = vector.load %arg15[%c0_105, %c0_106] : memref<2x120xf32, #tpu.memory_space<vmem>>, vector<2x120xf32>
    tpu.vector_store %arg15[%c0_105, %c0_106], %323 {strides = array<i32>} : memref<2x120xf32, #tpu.memory_space<vmem>>, vector<2x120xf32>,
    return
  }
}

</mosaic_0001>

<bundles_post_ra>
// kernel: tile.19
= control target key start
LH: loop header
LB: loop body
LE: loop exit
PB: predicated region body
PF: predicated region fallthrough
CT: control target
= control target key end

     0   :  { %vm132_vm0 = vcmask 1047556   ;;  %s338_s15 = smov 96   ;;  %s339_s30 = smov 64   ;;  %vm134_vm1 = vcmask 261120   ;;  %vm171_vm2 = vcmask 1048320   ;;  %vm214_vm3 = vcmask 785920   ;;  %s535_s0 = inlined_call_operand.vmem [shape: f32[32,4,32], index: 0, kind: input, shape index: {}]   ;;  %s536_s1 = inlined_call_operand.vmem [shape: f32[32,128], index: 1, kind: output, shape index: {}]  }
   0x1   :  { %v316_v0 = vld [vmem:[%s535_s0 + $0x1c] sm:$0xf]  ;;  %v317_v1 = vld [vmem:[%s535_s0 + $0x18] sm:$0xf]  ;;  %v318_v2 = vld [vmem:[%s535_s0 + $0x14] sm:$0xf] }
   0x2   :  { %103 = vst [vmem:[#allocation0 + $0x38] sm:$0xf] %v316_v0  ;;  %v319_v3 = vld [vmem:[%s535_s0 + $0x10] sm:$0xf]  ;;  %v320_v4 = vld [vmem:[%s535_s0 + $0xc] sm:$0xf] }
   0x3   :  { %107 = vst [vmem:[#allocation0 + $0x30] sm:$0xf] %v317_v1  ;;  %v321_v5 = vld [vmem:[%s535_s0 + $0x8] sm:$0xf]  ;;  %v322_v6 = vld [vmem:[%s535_s0 + $0x4] sm:$0xf] }
   0x4   :  { %111 = vst [vmem:[#allocation0 + $0x28] sm:$0xf] %v318_v2  ;;  %v128_v7 = vld [vmem:[%s535_s0] sm:$0xf]  ;;  %v300_v8 = vld [vmem:[%s535_s0 + $0x5c] sm:$0xf] }
   0x5   :  { %115 = vst [vmem:[#allocation0 + $0x20] sm:$0xf] %v319_v3  ;;  %v301_v9 = vld [vmem:[%s535_s0 + $0x58] sm:$0xf]  ;;  %v302_v10 = vld [vmem:[%s535_s0 + $0x54] sm:$0xf] }
   0x6   :  { %119 = vst [vmem:[#allocation0 + $0x18] sm:$0xf] %v320_v4  ;;  %v303_v11 = vld [vmem:[%s535_s0 + $0x50] sm:$0xf]  ;;  %v304_v12 = vld [vmem:[%s535_s0 + $0x4c] sm:$0xf] }
   0x7   :  { %123 = vst [vmem:[#allocation0 + $0x10] sm:$0xf] %v321_v5  ;;  %v305_v13 = vld [vmem:[%s535_s0 + $0x48] sm:$0xf]  ;;  %v306_v14 = vld [vmem:[%s535_s0 + $0x44] sm:$0xf] }
   0x8   :  { %127 = vst [vmem:[#allocation0 + $0x8] sm:$0xf] %v322_v6  ;;  %v307_v15 = vld [vmem:[%s535_s0 + $0x40] sm:$0xf]  ;;  %v308_v17 = vld [vmem:[%s535_s0 + $0x3c] sm:$0xf] }
   0x9   :  { %129 = vst [vmem:[#allocation0] sm:$0xf] %v128_v7  ;;  %v309_v18 = vld [vmem:[%s535_s0 + $0x38] sm:$0xf]  ;;  %v310_v21 = vld [vmem:[%s535_s0 + $0x34] sm:$0xf] }
   0xa   :  { %39 = vst [vmem:[#allocation0 + $0xb8] sm:$0xf] %v300_v8  ;;  %v311_v22 = vld [vmem:[%s535_s0 + $0x30] sm:$0xf]  ;;  %v312_v23 = vld [vmem:[%s535_s0 + $0x2c] sm:$0xf] }
   0xb   :  { %43 = vst [vmem:[#allocation0 + $0xb0] sm:$0xf] %v301_v9  ;;  %v313_v24 = vld [vmem:[%s535_s0 + $0x28] sm:$0xf]  ;;  %v314_v25 = vld [vmem:[%s535_s0 + $0x24] sm:$0xf] }
   0xc   :  { %47 = vst [vmem:[#allocation0 + $0xa8] sm:$0xf] %v302_v10  ;;  %v166_v16 = vld [vmem:[#allocation0 + $0x3] ss:$8 sm:$0xf0]   ;;  %vm257_vm4 = vcmask 523520  }
   0xd   :  { %51 = vst [vmem:[#allocation0 + $0xa0] sm:$0xf] %v303_v11  ;;  %v315_v26 = vld [vmem:[%s535_s0 + $0x20] sm:$0xf]  ;;  %v292_v30 = vld [vmem:[%s535_s0 + $0x7c] sm:$0xf] }
   0xe   :  { %55 = vst [vmem:[#allocation0 + $0x98] sm:$0xf] %v304_v12  ;;  %v209_v29 = vld [vmem:[#allocation0 + $0x2] ss:$8 sm:$0xf0]  }
   0xf   :  { %59 = vst [vmem:[#allocation0 + $0x90] sm:$0xf] %v305_v13  ;;  %v293_v31 = vld [vmem:[%s535_s0 + $0x78] sm:$0xf]  ;;  %v294_v35 = vld [vmem:[%s535_s0 + $0x74] sm:$0xf] }
  0x10   :  { %v164_v19 = vld [vmem:[#allocation0 + $0x3] ss:$8 sm:$0xf]   ;;  %63 = vst [vmem:[#allocation0 + $0x88] sm:$0xf] %v306_v14 }
  0x11   :  { %v168_v20 = vsel %vm132_vm0, %v166_v16, %v164_v19  ;;  %67 = vst [vmem:[#allocation0 + $0x80] sm:$0xf] %v307_v15  ;;  %v207_v27 = vld [vmem:[#allocation0 + $0x2] ss:$8 sm:$0xf]  }
  0x12   :  { %169 = vrot.lane.b32.xlu0 %v168_v20, %s338_s15  ;;  %71 = vst [vmem:[#allocation0 + $0x78] sm:$0xf] %v308_v17  ;;  %v211_v32 = vsel %vm132_vm0, %v209_v29, %v207_v27  ;;  %v295_v36 = vld [vmem:[%s535_s0 + $0x70] sm:$0xf]  ;;  %v296_v37 = vld [vmem:[%s535_s0 + $0x6c] sm:$0xf] }
  0x13   :  { %75 = vst [vmem:[#allocation0 + $0x70] sm:$0xf] %v309_v18  ;;  %212 = vrot.lane.b32.xlu2 %v211_v32, %s339_s30  ;;  %v297_v38 = vld [vmem:[%s535_s0 + $0x68] sm:$0xf]  ;;  %v298_v39 = vld [vmem:[%s535_s0 + $0x64] sm:$0xf] }
  0x14   :  { %79 = vst [vmem:[#allocation0 + $0x68] sm:$0xf] %v310_v21  ;;  %v187_v28 = vld [vmem:[#allocation0 + $0x83] ss:$8 sm:$0xf0]  }
  0x15   :  { %83 = vst [vmem:[#allocation0 + $0x60] sm:$0xf] %v311_v22  ;;  %v299_v40 = vld [vmem:[%s535_s0 + $0x60] sm:$0xf]  ;;  %s340_s0 = smov 32  }
  0x16   :  { %87 = vst [vmem:[#allocation0 + $0x58] sm:$0xf] %v312_v23  ;;  %v230_v48 = vld [vmem:[#allocation0 + $0x82] ss:$8 sm:$0xf0]  }
  0x17   :  { %91 = vst [vmem:[#allocation0 + $0x50] sm:$0xf] %v313_v24  ;;  %v250_v49 = vld [vmem:[#allocation0 + $0x1] ss:$8 sm:$0xf]  }
  0x18   :  { %v185_v33 = vld [vmem:[#allocation0 + $0x83] ss:$8 sm:$0xf]   ;;  %95 = vst [vmem:[#allocation0 + $0x48] sm:$0xf] %v314_v25 }
  0x19   :  { %v189_v34 = vsel %vm132_vm0, %v187_v28, %v185_v33  ;;  %99 = vst [vmem:[#allocation0 + $0x40] sm:$0xf] %v315_v26  ;;  %v228_v47 = vld [vmem:[#allocation0 + $0x82] ss:$8 sm:$0xf]  }
  0x1a   :  { %190 = vrot.lane.b32.xlu1 %v189_v34, %s338_s15  ;;  %7 = vst [vmem:[#allocation0 + $0xf8] sm:$0xf] %v292_v30  ;;  %v252_v51 = vld [vmem:[#allocation0 + $0x1] ss:$8 sm:$0xf0]   ;;  %v232_v52 = vsel %vm132_vm0, %v230_v48, %v228_v47 }
  0x1b   :  { %11 = vst [vmem:[#allocation0 + $0xf0] sm:$0xf] %v293_v31  ;;  %v254_v55 = vsel %vm132_vm0, %v252_v51, %v250_v49  ;;  %v271_v1 = vld [vmem:[#allocation0 + $0x81] ss:$8 sm:$0xf]  }
  0x1c   :  { %15 = vst [vmem:[#allocation0 + $0xe8] sm:$0xf] %v294_v35  ;;  %v176_v41 = vld [vmem:[#allocation0 + $0x43] ss:$8 sm:$0xf0]  }
  0x1d   :  { %19 = vst [vmem:[#allocation0 + $0xe0] sm:$0xf] %v295_v36  ;;  %v219_v42 = vld [vmem:[#allocation0 + $0x42] ss:$8 sm:$0xf0]  }
  0x1e   :  { %23 = vst [vmem:[#allocation0 + $0xd8] sm:$0xf] %v296_v37  ;;  %v262_v57 = vld [vmem:[#allocation0 + $0x41] ss:$8 sm:$0xf0]  }
  0x1f   :  { %27 = vst [vmem:[#allocation0 + $0xd0] sm:$0xf] %v297_v38  ;;  %v273_v2 = vld [vmem:[#allocation0 + $0x81] ss:$8 sm:$0xf0]  }
  0x20   :  { %v174_v43 = vld [vmem:[#allocation0 + $0x43] ss:$8 sm:$0xf]   ;;  %31 = vst [vmem:[#allocation0 + $0xc8] sm:$0xf] %v298_v39  ;;  %v275_v3 = vsel %vm132_vm0, %v273_v2, %v271_v1 }
  0x21   :  { %v178_v44 = vsel %vm132_vm0, %v176_v41, %v174_v43  ;;  %35 = vst [vmem:[#allocation0 + $0xc0] sm:$0xf] %v299_v40  ;;  %v217_v45 = vld [vmem:[#allocation0 + $0x42] ss:$8 sm:$0xf]  }
  0x22   :  { %179 = vrot.lane.b32.xlu0 %v178_v44, %s338_s15  ;;  %v221_v46 = vsel %vm132_vm0, %v219_v42, %v217_v45  ;;  %v260_v56 = vld [vmem:[#allocation0 + $0x41] ss:$8 sm:$0xf]   ;;  %v130_v4 = vld [vmem:[#allocation0] ss:$8 sm:$0xf]  }
  0x23   :  { %222 = vrot.lane.b32.xlu2 %v221_v46, %s339_s30  ;;  %v264_v63 = vsel %vm132_vm0, %v262_v57, %v260_v56  ;;  %v131_v5 = vld [vmem:[#allocation0] ss:$8 sm:$0xf0]  }
  0x24   :  { %v198_v50 = vld [vmem:[#allocation0 + $0xc3] ss:$8 sm:$0xf0]   ;;  %v241_v59 = vld [vmem:[#allocation0 + $0xc2] ss:$8 sm:$0xf0]   ;;  %v133_v6 = vsel %vm132_vm0, %v131_v5, %v130_v4 }
  0x25   :  { %v284_v61 = vld [vmem:[#allocation0 + $0xc1] ss:$8 sm:$0xf0]   ;;  %135 = vst.msk [vmem:[%s536_s1] sm:$0xff] %vm134_vm1, %v133_v6  }
  0x26   :  { %v146_v7 = vld [vmem:[#allocation0 + $0x80] ss:$8 sm:$0xf]  }
  0x27   :  { %v148_v8 = vld [vmem:[#allocation0 + $0x80] ss:$8 sm:$0xf0]  }
  0x28   :  { %v196_v53 = vld [vmem:[#allocation0 + $0xc3] ss:$8 sm:$0xf]   ;;  %v239_v58 = vld [vmem:[#allocation0 + $0xc2] ss:$8 sm:$0xf]   ;;  %v150_v9 = vsel %vm132_vm0, %v148_v8, %v146_v7 }
  0x29   :  { %v200_v54 = vsel %vm132_vm0, %v198_v50, %v196_v53  ;;  %v282_v60 = vld [vmem:[#allocation0 + $0xc1] ss:$8 sm:$0xf]   ;;  %v243_v62 = vsel %vm132_vm0, %v241_v59, %v239_v58  ;;  %324 = vst.msk [vmem:[%s536_s1 + $0x10] sm:$0xff] %vm134_vm1, %v150_v9  }
  0x2a   :  { %201 = vrot.lane.b32.xlu1 %v200_v54, %s338_s15  ;;  %233 = vrot.lane.b32.xlu0 %v232_v52, %s339_s30  ;;  %v286_v0 = vsel %vm132_vm0, %v284_v61, %v282_v60  ;;  %v137_v11 = vld [vmem:[#allocation0 + $0x40] ss:$8 sm:$0xf]  }
  0x2b   :  { %255 = vrot.lane.b32.xlu2 %v254_v55, %s340_s0  ;;  %v139_v12 = vld [vmem:[#allocation0 + $0x40] ss:$8 sm:$0xf0]  }
  0x2c   :  { %v141_v13 = vsel %vm132_vm0, %v139_v12, %v137_v11  ;;  %v155_v14 = vld [vmem:[#allocation0 + $0xc0] ss:$8 sm:$0xf]  }
  0x2d   :  { %323 = vst.msk [vmem:[%s536_s1 + $0x8] sm:$0xff] %vm134_vm1, %v141_v13   ;;  %v157_v15 = vld [vmem:[#allocation0 + $0xc0] ss:$8 sm:$0xf0]  }
  0x2e   :  { %v159_v16 = vsel %vm132_vm0, %v157_v15, %v155_v14 }
  0x2f   :  { %325 = vst.msk [vmem:[%s536_s1 + $0x18] sm:$0xff] %vm134_vm1, %v159_v16  }
  0x32   :  { %244 = vrot.lane.b32.xlu1 %v243_v62, %s339_s30  ;;  %265 = vrot.lane.b32.xlu0 %v264_v63, %s340_s0 }
  0x33   :  { %287 = vrot.lane.b32.xlu2 %v286_v0, %s340_s0 }
  0x3a   :  { %276 = vrot.lane.b32.xlu1 %v275_v3, %s340_s0 }
  0x6d   :  { %v213_v10 = vpop.permute.xlu2 %212  }
  0x7d   :  { %v223_v17 = vpop.permute.xlu2 %222  }
  0x84   :  { %v170_v18 = vpop.permute.xlu0 %169  }
  0x85   :  { %172 = vst.msk [vmem:[%s536_s1] sm:$0xff] %vm171_vm2, %v170_v18   ;;  %v256_v19 = vpop.permute.xlu2 %255  }
  0x86   :  { %215 = vst.msk [vmem:[%s536_s1] sm:$0xff] %vm214_vm3, %v213_v10  }
  0x87   :  { %258 = vst.msk [vmem:[%s536_s1] sm:$0xff] %vm257_vm4, %v256_v19  }
  0x8c   :  { %v191_v20 = vpop.permute.xlu1 %190  }
  0x8d   :  { %327 = vst.msk [vmem:[%s536_s1 + $0x10] sm:$0xff] %vm171_vm2, %v191_v20   ;;  %v288_v21 = vpop.permute.xlu2 %287  }
  0x94   :  { %v180_v22 = vpop.permute.xlu0 %179  }
  0x95   :  { %326 = vst.msk [vmem:[%s536_s1 + $0x8] sm:$0xff] %vm171_vm2, %v180_v22  }
  0x96   :  { %329 = vst.msk [vmem:[%s536_s1 + $0x8] sm:$0xff] %vm214_vm3, %v223_v17  }
  0x9c   :  { %v202_v23 = vpop.permute.xlu1 %201   ;;  %v234_v24 = vpop.permute.xlu0 %233  }
  0x9d   :  { %328 = vst.msk [vmem:[%s536_s1 + $0x18] sm:$0xff] %vm171_vm2, %v202_v23  }
  0x9e   :  { %330 = vst.msk [vmem:[%s536_s1 + $0x10] sm:$0xff] %vm214_vm3, %v234_v24  }
  0xa4   :  { %v245_v25 = vpop.permute.xlu1 %244   ;;  %v266_v26 = vpop.permute.xlu0 %265  }
  0xa5   :  { %331 = vst.msk [vmem:[%s536_s1 + $0x18] sm:$0xff] %vm214_vm3, %v245_v25  }
  0xa6   :  { %332 = vst.msk [vmem:[%s536_s1 + $0x8] sm:$0xff] %vm257_vm4, %v266_v26  }
  0xa7   :  { %334 = vst.msk [vmem:[%s536_s1 + $0x18] sm:$0xff] %vm257_vm4, %v288_v21  }
  0xac   :  { %v277_v27 = vpop.permute.xlu1 %276  }
  0xad   :  { %333 = vst.msk [vmem:[%s536_s1 + $0x10] sm:$0xff] %vm257_vm4, %v277_v27  }

// kernel: encoder_decoder_forward.1
= control target key start
LH: loop header
LB: loop body
LE: loop exit
PB: predicated region body
PF: predicated region fallthrough
CT: control target
= control target key end

     0   :  { %vm335_vm0 = vcmask 130048   ;;  %v4403_v9 = vmov 0.0   ;;  %s4404_s23 = smov 64   ;;  %vm124_vm1 = vcmask 1043456   ;;  %vm75_vm2 = vcmask 293888   ;;  %s4406_s25 = smov 96   ;;  %s6465_s5 = inlined_call_operand.vmem [shape: f32[16,128], index: 5, kind: input, shape index: {}]   ;;  %s6466_s4 = inlined_call_operand.vmem [shape: f32[10,16], index: 4, kind: input, shape index: {}]   ;;  %s6467_s6 = inlined_call_operand.vmem [shape: f32[16,128], index: 6, kind: input, shape index: {}]   ;;  %s6468_s7 = inlined_call_operand.vmem [shape: f32[32,128], index: 7, kind: input, shape index: {}]   ;;  %s6469_s8 = inlined_call_operand.vmem [shape: f32[1,128], index: 8, kind: input, shape index: {}]   ;;  %s6470_s1 = inlined_call_operand.vmem [shape: f32[36,128], index: 1, kind: input, shape index: {}]   ;;  %s6471_s0 = inlined_call_operand.vmem [shape: f32[128,36], index: 0, kind: input, shape index: {}]   ;;  %s6472_s2 = inlined_call_operand.vmem [shape: f32[1,128], index: 2, kind: input, shape index: {}]   ;;  %s6473_s3 = inlined_call_operand.vmem [shape: f32[128,128], index: 3, kind: input, shape index: {}]   ;;  %s6474_s9 = inlined_call_operand.vmem [shape: f32[32,128], index: 9, kind: input, shape index: {}]   ;;  %s6475_s10 = inlined_call_operand.vmem [shape: f32[128,4], index: 10, kind: input, shape index: {}]   ;;  %s6476_s11 = inlined_call_operand.vmem [shape: f32[4,128], index: 11, kind: input, shape index: {}]   ;;  %s6477_s13 = inlined_call_operand.vmem [shape: f32[32,16], index: 13, kind: input, shape index: {}]   ;;  %s6478_s12 = inlined_call_operand.vmem [shape: f32[32,16], index: 12, kind: input, shape index: {}]   ;;  %s6479_s14 = inlined_call_operand.vmem [shape: f32[16,24], index: 14, kind: input, shape index: {}]   ;;  %s6480_s15 = inlined_call_operand.vmem [shape: f32[2,120], index: 15, kind: output, shape index: {}]  }
   0x1   :  { %v330_v0 = vld [vmem:[%s6465_s5 + $0x8] sm:$0xff]  ;;  %v329_v1 = vld [vmem:[%s6465_s5] sm:$0xff]  ;;  %v4513_v6 = vld [vmem:[%s6468_s7 + $0x18] sm:$0xff]  ;;  %vm389_vm7 = vcmask 261120   ;;  %vm578_vm8 = vcmask 31744   ;;  %vm980_vm9 = vcmask 1041409  }
   0x2   :  { %3936 = vmatpush.msra.mxu3 %v330_v0  ;;  %v328_v2 = vld [vmem:[%s6466_s4 + $0x8] sm:$0x3]  ;;  %356 = vmatpush.msra.mxu2 %v330_v0  ;;  %v327_v3 = vld [vmem:[%s6466_s4] sm:$0xff]  ;;  %v4518_v7 = vld [vmem:[%s6468_s7 + $0x10] sm:$0xff] }
   0x3   :  { %v291_v4 = vld [vmem:[%s6467_s6 + $0x8] sm:$0xff]  ;;  %v290_v5 = vld [vmem:[%s6467_s6] sm:$0xff]  ;;  %v69_v24 = vld [vmem:[%s6470_s1 + $0x18] sm:$0xff] }
   0x4   :  { %3937 = vmatpush.msra.mxu3 %v329_v1  ;;  %357 = vmatpush.msra.mxu2 %v329_v1  ;;  %v4525_v8 = vld [vmem:[%s6468_s7 + $0x8] sm:$0xff]  ;;  %v4530_v10 = vld [vmem:[%s6468_s7] sm:$0xff]  ;;  %v68_v25 = vld [vmem:[%s6470_s1 + $0x10] sm:$0xff] }
   0x5   :  { %3817 = vmatmul.msk.f32.vlgmr.msra.gmra.mxu3 %vm335_vm0, %v328_v2  ;;  %3816 = vmatmul.msk.f32.vlgmr.msra.gmra.mxu2 %vm335_vm0, %v327_v3  ;;  %v3946_v14 = vld [vmem:[%s6469_s8] ss:$0 sm:$0xff]  ;;  %v67_v26 = vld [vmem:[%s6470_s1 + $0x8] sm:$0xff]  ;;  %v52_v42 = vld [vmem:[%s6471_s0 + $0x10] sm:$0xff] }
   0x6   :  { %382 = vmatpush.msrb.mxu3 %v291_v4  ;;  %v70_v23 = vld [vmem:[%s6470_s1 + $0x20] sm:$0xf]  ;;  %v51_v32 = vld [vmem:[%s6471_s0 + $0x8] sm:$0xff]  ;;  %v53_v43 = vld [vmem:[%s6471_s0 + $0x18] sm:$0xff] }
   0x7   :  { %3799 = vmatpush.msk.msra.mxu0 %vm124_vm1, %v70_v23  ;;  %v66_v27 = vld [vmem:[%s6470_s1] sm:$0xff]  ;;  %s4405_s1 = smov 32   ;;  %v55_v45 = vld [vmem:[%s6471_s0 + $0x28] sm:$0xff]  ;;  %v56_v46 = vld [vmem:[%s6471_s0 + $0x30] sm:$0xff] }
   0x8   :  { %383 = vmatpush.msrb.mxu3 %v290_v5  ;;  %v50_v29 = vld [vmem:[%s6471_s0] sm:$0xff]  ;;  %v57_v50 = vld [vmem:[%s6471_s0 + $0x38] sm:$0xff]  ;;  %v223_v54 = vld [vmem:[%s6473_s3 + $0x70] sm:$0xff] }
   0x9   :  { %140 = vmatpush.msra.mxu0 %v69_v24  ;;  %v54_v44 = vld [vmem:[%s6471_s0 + $0x20] sm:$0xff]  ;;  %v224_v53 = vld [vmem:[%s6473_s3 + $0x78] sm:$0xff]  ;;  %v222_v55 = vld [vmem:[%s6473_s3 + $0x68] sm:$0xff] }
   0xa   :  { %404 = vmatpush.msra.mxu3 %v4513_v6  ;;  %v58_v52 = vld [vmem:[%s6471_s0 + $0x40] sm:$0xff]  ;;  %225 = vmatpush.msra.mxu1 %v224_v53  ;;  %v59_v56 = vld [vmem:[%s6471_s0 + $0x48] sm:$0xff]  ;;  %v220_v58 = vld [vmem:[%s6473_s3 + $0x58] sm:$0xff] }
   0xb   :  { %141 = vmatpush.msra.mxu0 %v68_v25  ;;  %v221_v57 = vld [vmem:[%s6473_s3 + $0x60] sm:$0xff]  ;;  %v219_v59 = vld [vmem:[%s6473_s3 + $0x50] sm:$0xff]  ;;  %v218_v60 = vld [vmem:[%s6473_s3 + $0x48] sm:$0xff] }
   0xc   :  { %405 = vmatpush.msra.mxu3 %v4518_v7  ;;  %226 = vmatpush.msra.mxu1 %v223_v54  ;;  %v60_v61 = vld [vmem:[%s6471_s0 + $0x50] sm:$0xff]  ;;  %v217_v62 = vld [vmem:[%s6473_s3 + $0x40] sm:$0xff]  ;;  %v216_v63 = vld [vmem:[%s6473_s3 + $0x38] sm:$0xff] }
   0xd   :  { %384 = vmatmul.f32.vlgmr.msrb.gmra.mxu3 %v4403_v9  ;;  %142 = vmatpush.msra.mxu0 %v67_v26  ;;  %v215_v0 = vld [vmem:[%s6473_s3 + $0x30] sm:$0xff]  ;;  %v214_v1 = vld [vmem:[%s6473_s3 + $0x28] sm:$0xff]  ;;  %v61_v2 = vld [vmem:[%s6471_s0 + $0x58] sm:$0xff] }
   0xe   :  { %406 = vmatpush.msra.mxu3 %v4525_v8  ;;  %227 = vmatpush.msra.mxu1 %v222_v55  ;;  %v213_v3 = vld [vmem:[%s6473_s3 + $0x20] sm:$0xff]  ;;  %v212_v4 = vld [vmem:[%s6473_s3 + $0x18] sm:$0xff]  ;;  %v298_v55 = vld [vmem:[%s6474_s9 + $0x10] sm:$0xff] }
   0xf   :  { %143 = vmatpush.msra.mxu0 %v66_v27  ;;  %v4658_v5 = vld [vmem:[%s6472_s2] ss:$0 sm:$0xff]  ;;  %v299_v54 = vld [vmem:[%s6474_s9 + $0x18] sm:$0xff]  ;;  %s4409_s2 = smov 48  }
  0x10   :  { %407 = vmatpush.msra.mxu3 %v4530_v10  ;;  %3800 = vmatmul.msk.f32.vlgmr.msra.gmra.mxu0 %vm75_vm2, %v50_v29 }
  0x11   :  { %228 = vmatpush.msra.mxu1 %v221_v57  ;;  %467 = vmatpush.msrb.mxu2 %v299_v54 }
  0x13   :  { %229 = vmatpush.msra.mxu1 %v220_v58  ;;  %468 = vmatpush.msrb.mxu2 %v298_v55 }
  0x15   :  { %408 = vmatmul.f32.vlgmr.msra.gmra.mxu3 %v4403_v9  ;;  %230 = vmatpush.msra.mxu1 %v219_v59  ;;  %v296_v59 = vld [vmem:[%s6474_s9] sm:$0xff] }
  0x17   :  { %231 = vmatpush.msra.mxu1 %v218_v60 }
  0x18   :  { %3801 = vmatmul.msk.f32.gmra.mxu0 %vm75_vm2, %v51_v32 }
  0x19   :  { %232 = vmatpush.msra.mxu1 %v217_v62 }
  0x1b   :  { %233 = vmatpush.msra.mxu1 %v216_v63 }
  0x1d   :  { %234 = vmatpush.msra.mxu1 %v215_v0 }
  0x1f   :  { %235 = vmatpush.msra.mxu1 %v214_v1 }
  0x20   :  { %3802 = vmatmul.msk.f32.gmra.mxu0 %vm75_vm2, %v52_v42 }
  0x21   :  { %236 = vmatpush.msra.mxu1 %v213_v3 }
  0x23   :  { %237 = vmatpush.msra.mxu1 %v212_v4 }
  0x28   :  { %3803 = vmatmul.msk.f32.gmra.mxu0 %vm75_vm2, %v53_v43 }
  0x30   :  { %3804 = vmatmul.msk.f32.gmra.mxu0 %vm75_vm2, %v54_v44 }
  0x38   :  { %3805 = vmatmul.msk.f32.gmra.mxu0 %vm75_vm2, %v55_v45 }
  0x40   :  { %3806 = vmatmul.msk.f32.gmra.mxu0 %vm75_vm2, %v56_v46 }
  0x48   :  { %3807 = vmatmul.msk.f32.gmra.mxu0 %vm75_vm2, %v57_v50 }
  0x50   :  { %3808 = vmatmul.msk.f32.gmra.mxu0 %vm75_vm2, %v58_v52 }
  0x58   :  { %3809 = vmatmul.msk.f32.gmra.mxu0 %vm75_vm2, %v59_v56  ;;  %v297_v56 = vld [vmem:[%s6474_s9 + $0x8] sm:$0xff] }
  0x59   :  { %469 = vmatpush.msrb.mxu2 %v297_v56 }
  0x5b   :  { %470 = vmatpush.msrb.mxu2 %v296_v59 }
  0x60   :  { %3810 = vmatmul.msk.f32.gmra.mxu0 %vm75_vm2, %v60_v61 }
  0x68   :  { %3811 = vmatmul.msk.f32.gmra.mxu0 %vm75_vm2, %v61_v2 }
  0x88   :  { %v4534_v11 = vpop.f32.mrf.mxu3  ;;  %v359_v12 = vpop.f32.mrf.mxu2 }
  0x89   :  { %6516 = vst [vmem:[#allocation2_spill] sm:$0xff] %v4534_v11  ;;  %v4539_v15 = vadd.f32 %v3946_v14, %v359_v12  ;;  %v210_v14 = vld [vmem:[%s6473_s3 + $0x8] sm:$0xff] }
  0x8b   :  { %6517 = vst [vmem:[#allocation3_spill] sm:$0xff] %v4539_v15 }
  0x8d   :  { %v145_v9 = vpop.f32.mrf.mxu0 }
  0x8e   :  { %v146_v12 = vadd.f32 %v4658_v5, %v145_v9 }
  0x90   :  { %v385_v13 = vpop.f32.mrf.mxu3 }
  0x91   :  { %v388_v16 = vadd.f32 %v385_v13, %v4539_v15  ;;  %v211_v13 = vld [vmem:[%s6473_s3 + $0x10] sm:$0xff] }
  0x92   :  { %238 = vmatpush.msra.mxu1 %v211_v13  ;;  %v315_v13 = vld [vmem:[%s6475_s10 + $0x78] sm:$0xff] }
  0x93   :  { %513 = vmatpush.msrb.mxu3 %v315_v13 }
  0x94   :  { %239 = vmatpush.msra.mxu1 %v210_v14  ;;  %v313_v14 = vld [vmem:[%s6475_s10 + $0x68] sm:$0xff] }
  0x98   :  { %v409_v17 = vpop.f32.mrf.mxu3 }
  0x99   :  { %v412_v18 = vadd.f32 %v409_v17, %v388_v16  ;;  %v62_v16 = vld [vmem:[%s6471_s0 + $0x60] sm:$0xff]  ;;  %v4670_v17 = vmax.f32 %v146_v12, 0.0 }
  0x9a   :  { %3812 = vmatmul.msk.f32.gmra.mxu0 %vm75_vm2, %v62_v16  ;;  %v312_v16 = vld [vmem:[%s6475_s10 + $0x60] sm:$0xff] }
  0x9b   :  { %3948 = vtanh.f32 %v412_v18  ;;  %v3818_v20 = vmul.f32 -1.442695, %v412_v18  ;;  %v209_v18 = vld [vmem:[%s6473_s3] sm:$0xff] }
  0x9c   :  { %240 = vmatpush.msra.mxu1 %v209_v18  ;;  %v311_v18 = vld [vmem:[%s6475_s10 + $0x58] sm:$0xff] }
  0x9d   :  { %3950 = vpow2.f32 %v3818_v20  ;;  %241 = vmatmul.f32.vlgmr.msra.gmra.mxu1 %v4670_v17 }
  0x9e   :  { %1084 = vmatpush.msrb.mxu1 %v4513_v6  ;;  %v64_v6 = vld [vmem:[%s6471_s0 + $0x70] sm:$0xff] }
  0xa0   :  { %1085 = vmatpush.msrb.mxu1 %v4518_v7  ;;  %v65_v7 = vld [vmem:[%s6471_s0 + $0x78] sm:$0xff] }
  0xa1   :  { %v3949_v19 = vpop.eup %3948 }
  0xa2   :  { %435 = vrot.lane.b32.xlu0 %v3949_v19, %s4404_s23  ;;  %v148_v19 = vpop.f32.mrf.mxu0  ;;  %1086 = vmatpush.msrb.mxu1 %v4525_v8 }
  0xa3   :  { %v3951_v21 = vpop.eup %3950  ;;  %v149_v20 = vadd.f32 %v4658_v5, %v148_v19  ;;  %v310_v19 = vld [vmem:[%s6475_s10 + $0x50] sm:$0xff] }
  0xa4   :  { %v416_v22 = vadd.f32 1.0, %v3951_v21  ;;  %v63_v21 = vld [vmem:[%s6471_s0 + $0x68] sm:$0xff]  ;;  %1087 = vmatpush.msrb.mxu1 %v4530_v10 }
  0xa5   :  { %3813 = vmatmul.msk.f32.gmra.mxu0 %vm75_vm2, %v63_v21  ;;  %v308_v21 = vld [vmem:[%s6475_s10 + $0x40] sm:$0xff] }
  0xa6   :  { %3952 = vrcp.f32 %v416_v22  ;;  %v428_v35 = vand.u32 2147483648, %v416_v22  ;;  %vm422_vm4 = vweird.f32 %v416_v22  ;;  %v426_v36 = vand.u32 2147483647, %v416_v22 }
  0xa8   :  { %v429_v38 = vor.u32 1.1754944e-38, %v428_v35  ;;  %vm427_vm6 = vcmp.eq.f32.partialorder %v426_v36, 8.507059e+37 }
  0xaa   :  { %v151_v23 = vpop.f32.mrf.mxu0 }
  0xab   :  { %v152_v8 = vadd.f32 %v4658_v5, %v151_v23  ;;  %v305_v23 = vld [vmem:[%s6475_s10 + $0x28] sm:$0xff] }
  0xac   :  { %v3953_v28 = vpop.eup %3952 }
  0xad   :  { %v418_v30 = vmul.f32 %v3953_v28, %v416_v22  ;;  %vm423_vm3 = vweird.f32 %v3953_v28  ;;  %v4683_v22 = vmax.f32 %v149_v20, 0.0  ;;  %3814 = vmatmul.msk.f32.gmra.mxu0 %vm75_vm2, %v64_v6  ;;  %v4698_v24 = vmax.f32 %v152_v8, 0.0  ;;  %v309_v20 = vld [vmem:[%s6475_s10 + $0x48] sm:$0xff]  ;;  %v307_v6 = vld [vmem:[%s6475_s10 + $0x38] sm:$0xff] }
  0xae   :  { %vm424_vm5 = vmor %vm422_vm4, %vm423_vm3 }
  0xaf   :  { %v419_v31 = vsub.f32 1.0, %v418_v30  ;;  %244 = vmatmul.f32.gmra.mxu1 %v4683_v22 }
  0xb1   :  { %v420_v33 = vmul.f32 %v3953_v28, %v419_v31 }
  0xb2   :  { %v154_v10 = vpop.f32.mrf.mxu0 }
  0xb3   :  { %v421_v34 = vadd.f32 %v3953_v28, %v420_v33  ;;  %v155_v25 = vadd.f32 %v4658_v5, %v154_v10  ;;  %v304_v10 = vld [vmem:[%s6475_s10 + $0x20] sm:$0xff] }
  0xb5   :  { %v425_v37 = vsel %vm424_vm5, %v3953_v28, %v421_v34  ;;  %3815 = vmatmul.msk.f32.gmra.mxu0 %vm75_vm2, %v65_v7  ;;  %v4702_v26 = vmax.f32 %v155_v25, 0.0  ;;  %v306_v7 = vld [vmem:[%s6475_s10 + $0x30] sm:$0xff]  ;;  %v303_v25 = vld [vmem:[%s6475_s10 + $0x18] sm:$0xff] }
  0xb6   :  { %v4567_v40 = vsel %vm427_vm6, %v429_v38, %v425_v37 }
  0xb7   :  { %v433_v47 = vmul.f32 0.0, %v4567_v40  ;;  %247 = vmatmul.f32.gmra.mxu1 %v4698_v24 }
  0xba   :  { %v157_v27 = vpop.f32.mrf.mxu0 }
  0xbb   :  { %v158_v28 = vadd.f32 %v4658_v5, %v157_v27  ;;  %v302_v27 = vld [vmem:[%s6475_s10 + $0x10] sm:$0xff] }
  0xbd   :  { %v4706_v29 = vmax.f32 %v158_v28, 0.0  ;;  %v301_v28 = vld [vmem:[%s6475_s10 + $0x8] sm:$0xff] }
  0xbf   :  { %250 = vmatmul.f32.gmra.mxu1 %v4702_v26 }
  0xc2   :  { %v160_v30 = vpop.f32.mrf.mxu0 }
  0xc3   :  { %v161_v31 = vadd.f32 %v4658_v5, %v160_v30  ;;  %v300_v30 = vld [vmem:[%s6475_s10] sm:$0xff] }
  0xc5   :  { %v4710_v32 = vmax.f32 %v161_v31, 0.0 }
  0xc7   :  { %253 = vmatmul.f32.gmra.mxu1 %v4706_v29 }
  0xca   :  { %v163_v35 = vpop.f32.mrf.mxu0 }
  0xcb   :  { %v164_v36 = vadd.f32 %v4658_v5, %v163_v35 }
  0xcd   :  { %v4716_v37 = vmax.f32 %v164_v36, 0.0 }
  0xcf   :  { %256 = vmatmul.f32.gmra.mxu1 %v4710_v32 }
  0xd2   :  { %v166_v38 = vpop.f32.mrf.mxu0 }
  0xd7   :  { %259 = vmatmul.f32.gmra.mxu1 %v4716_v37 }
  0xda   :  { %v169_v42 = vpop.f32.mrf.mxu0 }
  0xdb   :  { %v170_v43 = vadd.f32 %v4658_v5, %v169_v42 }
  0xe2   :  { %v172_v44 = vpop.f32.mrf.mxu0 }
  0xe3   :  { %v173_v45 = vadd.f32 %v4658_v5, %v172_v44 }
  0xe5   :  { %v4728_v46 = vmax.f32 %v173_v45, 0.0 }
 0x114   :  { %v436_v39 = vpop.permute.xlu0 %435 }
 0x115   :  { %v438_v41 = vmul.f32 %v436_v39, %v4567_v40  ;;  %v167_v39 = vadd.f32 %v4658_v5, %v166_v38 }
 0x117   :  { %440 = vrot.lane.b32.xlu0 %v438_v41, %s4405_s1  ;;  %v4720_v41 = vmax.f32 %v167_v39, 0.0 }
 0x119   :  { %262 = vmatmul.f32.gmra.mxu1 %v4720_v41 }
 0x11a   :  { %v4806_v8 = vpop.f32.mrf.mxu1 }
 0x11b   :  { %6518 = vst [vmem:[#allocation4_spill] sm:$0xff] %v4806_v8 }
 0x12c   :  { %v4823_v31 = vpop.f32.mrf.mxu1 }
 0x12d   :  { %6519 = vst [vmem:[#allocation5_spill] sm:$0xff] %v4823_v31 }
 0x189   :  { %v441_v48 = vpop.permute.xlu0 %440 }
 0x18a   :  { %v4592_v49 = vadd.f32 %v441_v48, %v433_v47  ;;  %v175_v47 = vpop.f32.mrf.mxu0 }
 0x18b   :  { %v176_v48 = vadd.f32 %v4658_v5, %v175_v47 }
 0x18c   :  { %3954 = vtanh.f32 %v4592_v49 }
 0x18d   :  { %v4732_v50 = vmax.f32 %v176_v48, 0.0 }
 0x192   :  { %v3955_v51 = vpop.eup %3954 }
 0x193   :  { %446 = vrot.lane.b32.xlu1 %v3955_v51, %s4404_s23  ;;  %v178_v51 = vpop.f32.mrf.mxu0 }
 0x194   :  { %v179_v52 = vadd.f32 %v4658_v5, %v178_v51 }
 0x196   :  { %v4736_v53 = vmax.f32 %v179_v52, 0.0 }
 0x19b   :  { %v181_v57 = vpop.f32.mrf.mxu0 }
 0x19c   :  { %v182_v58 = vadd.f32 %v4658_v5, %v181_v57 }
 0x19e   :  { %v4752_v60 = vmax.f32 %v182_v58, 0.0 }
 0x1a3   :  { %v184_v61 = vpop.f32.mrf.mxu0 }
 0x1a4   :  { %v185_v62 = vadd.f32 %v4658_v5, %v184_v61 }
 0x1a6   :  { %v4756_v63 = vmax.f32 %v185_v62, 0.0 }
 0x1ab   :  { %v187_v0 = vpop.f32.mrf.mxu0 }
 0x1ac   :  { %v188_v1 = vadd.f32 %v4658_v5, %v187_v0 }
 0x1ae   :  { %v4760_v2 = vmax.f32 %v188_v1, 0.0 }
 0x1b3   :  { %v190_v3 = vpop.f32.mrf.mxu0 }
 0x1b4   :  { %v191_v4 = vadd.f32 %v4658_v5, %v190_v3  ;;  %v314_v5 = vld [vmem:[%s6475_s10 + $0x70] sm:$0xff] }
 0x1b5   :  { %514 = vmatpush.msrb.mxu3 %v314_v5 }
 0x1b6   :  { %v4764_v9 = vmax.f32 %v191_v4, 0.0 }
 0x1b7   :  { %515 = vmatpush.msrb.mxu3 %v313_v14 }
 0x1b9   :  { %516 = vmatpush.msrb.mxu3 %v312_v16 }
 0x1bb   :  { %517 = vmatpush.msrb.mxu3 %v311_v18 }
 0x1bd   :  { %518 = vmatpush.msrb.mxu3 %v310_v19 }
 0x1bf   :  { %519 = vmatpush.msrb.mxu3 %v309_v20 }
 0x1c1   :  { %520 = vmatpush.msrb.mxu3 %v308_v21 }
 0x1c3   :  { %521 = vmatpush.msrb.mxu3 %v307_v6 }
 0x1c5   :  { %522 = vmatpush.msrb.mxu3 %v306_v7 }
 0x1c7   :  { %523 = vmatpush.msrb.mxu3 %v305_v23 }
 0x1c9   :  { %524 = vmatpush.msrb.mxu3 %v304_v10 }
 0x1cb   :  { %525 = vmatpush.msrb.mxu3 %v303_v25 }
 0x1cd   :  { %526 = vmatpush.msrb.mxu3 %v302_v27 }
 0x1cf   :  { %527 = vmatpush.msrb.mxu3 %v301_v28 }
 0x1d1   :  { %528 = vmatpush.msrb.mxu3 %v300_v30 }
 0x1d3   :  { %1200 = vmatpush.msra.mxu3 %v315_v13 }
 0x1d5   :  { %1201 = vmatpush.msra.mxu3 %v314_v5 }
 0x1d7   :  { %1202 = vmatpush.msra.mxu3 %v313_v14 }
 0x1d9   :  { %1203 = vmatpush.msra.mxu3 %v312_v16 }
 0x1db   :  { %1204 = vmatpush.msra.mxu3 %v311_v18 }
 0x1dd   :  { %1205 = vmatpush.msra.mxu3 %v310_v19 }
 0x1df   :  { %1206 = vmatpush.msra.mxu3 %v309_v20 }
 0x1e1   :  { %1207 = vmatpush.msra.mxu3 %v308_v21 }
 0x1e3   :  { %1208 = vmatpush.msra.mxu3 %v307_v6 }
 0x1e5   :  { %1209 = vmatpush.msra.mxu3 %v306_v7 }
 0x1e7   :  { %1210 = vmatpush.msra.mxu3 %v305_v23 }
 0x1e9   :  { %1211 = vmatpush.msra.mxu3 %v304_v10 }
 0x1eb   :  { %1212 = vmatpush.msra.mxu3 %v303_v25 }
 0x1ed   :  { %1213 = vmatpush.msra.mxu3 %v302_v27 }
 0x1ef   :  { %1214 = vmatpush.msra.mxu3 %v301_v28 }
 0x1f1   :  { %1215 = vmatpush.msra.mxu3 %v300_v30 }
 0x205   :  { %v447_v33 = vpop.permute.xlu1 %446 }
 0x206   :  { %v449_v34 = vmul.f32 %v447_v33, %v4567_v40  ;;  %v4724_v40 = vmax.f32 %v170_v43, 0.0  ;;  %v4825_v33 = vpop.f32.mrf.mxu1 }
 0x207   :  { %6520 = vst [vmem:[#allocation6_spill] sm:$0xff] %v4825_v33 }
 0x208   :  { %451 = vrot.lane.b32.xlu1 %v449_v34, %s4405_s1  ;;  %265 = vmatmul.f32.gmra.mxu1 %v4724_v40 }
 0x20e   :  { %v4827_v34 = vpop.f32.mrf.mxu1 }
 0x20f   :  { %6521 = vst [vmem:[#allocation7_spill] sm:$0xff] %v4827_v34 }
 0x210   :  { %268 = vmatmul.f32.gmra.mxu1 %v4728_v46 }
 0x216   :  { %v4831_v42 = vpop.f32.mrf.mxu1 }
 0x217   :  { %6522 = vst [vmem:[#allocation8_spill] sm:$0xff] %v4831_v42 }
 0x218   :  { %271 = vmatmul.f32.gmra.mxu1 %v4732_v50 }
 0x21e   :  { %v4834_v47 = vpop.f32.mrf.mxu1 }
 0x21f   :  { %6523 = vst [vmem:[#allocation9_spill] sm:$0xff] %v4834_v47 }
 0x220   :  { %274 = vmatmul.f32.gmra.mxu1 %v4736_v53 }
 0x226   :  { %v4837_v52 = vpop.f32.mrf.mxu1 }
 0x227   :  { %6524 = vst [vmem:[#allocation10_spill] sm:$0xff] %v4837_v52 }
 0x228   :  { %277 = vmatmul.f32.gmra.mxu1 %v4752_v60 }
 0x22e   :  { %v4840_v56 = vpop.f32.mrf.mxu1 }
 0x22f   :  { %6525 = vst [vmem:[#allocation11_spill] sm:$0xff] %v4840_v56 }
 0x230   :  { %280 = vmatmul.f32.gmra.mxu1 %v4756_v63 }
 0x238   :  { %283 = vmatmul.f32.gmra.mxu1 %v4760_v2 }
 0x240   :  { %286 = vmatmul.f32.gmra.mxu1 %v4764_v9 }
 0x27a   :  { %v4767_v12 = vpop.permute.xlu1 %451 }
 0x27b   :  { %3819 = vmatmul.msk.f32.vlgmr.msrb.gmra.mxu2 %vm389_vm7, %v4767_v12  ;;  %3841 = vmatmul.msk.f32.vlgmr.msrb.gmra.mxu1 %vm389_vm7, %v4767_v12 }
 0x285   :  { %v4844_v61 = vpop.f32.mrf.mxu1 }
 0x286   :  { %6526 = vst [vmem:[#allocation12_spill] sm:$0xff] %v4844_v61 }
 0x28d   :  { %v4847_v4 = vpop.f32.mrf.mxu1 }
 0x28e   :  { %6527 = vst [vmem:[#allocation13_spill] sm:$0xff] %v4847_v4 }
 0x295   :  { %v4850_v16 = vpop.f32.mrf.mxu1 }
 0x296   :  { %6528 = vst [vmem:[#allocation14_spill] sm:$0xff] %v4850_v16 }
 0x29d   :  { %v4853_v20 = vpop.f32.mrf.mxu1 }
 0x29e   :  { %6529 = vst [vmem:[#allocation15_spill] sm:$0xff] %v4853_v20 }
 0x2a5   :  { %v4857_v23 = vpop.f32.mrf.mxu1 }
 0x2a6   :  { %6530 = vst [vmem:[#allocation16_spill] sm:$0xff] %v4857_v23 }
 0x2ad   :  { %v4860_v28 = vpop.f32.mrf.mxu1 }
 0x2ae   :  { %6531 = vst [vmem:[#allocation17_spill] sm:$0xff] %v4860_v28 }
 0x2fe   :  { %v472_v35 = vpop.f32.mrf.mxu2 }
 0x2ff   :  { %v477_v36 = vperm.slane %v472_v35, 0  ;;  %v476_v0 = vrot.slane %v472_v35, 1 }
 0x301   :  { %v481_v38 = vadd.f32 %v477_v36, %v4806_v8  ;;  %v482_v39 = vadd.f32 %v477_v36, %v4823_v31  ;;  %v483_v44 = vadd.f32 %v477_v36, %v4825_v33  ;;  %v484_v48 = vadd.f32 %v477_v36, %v4827_v34 }
 0x302   :  { %v485_v54 = vadd.f32 %v477_v36, %v4831_v42  ;;  %v486_v57 = vadd.f32 %v477_v36, %v4834_v47  ;;  %v487_v59 = vadd.f32 %v477_v36, %v4837_v52  ;;  %v488_v1 = vadd.f32 %v477_v36, %v4840_v56  ;;  %v4863_v36 = vpop.f32.mrf.mxu1 }
 0x303   :  { %3956 = vtanh.f32 %v481_v38  ;;  %v478_v13 = vperm.slane %v476_v0, 0  ;;  %6532 = vst [vmem:[#allocation18_spill] sm:$0xff] %v4863_v36 }
 0x304   :  { %3958 = vtanh.f32 %v482_v39 }
 0x305   :  { %3960 = vtanh.f32 %v483_v44  ;;  %v489_v5 = vadd.f32 %v478_v13, %v4844_v61  ;;  %v490_v18 = vadd.f32 %v478_v13, %v4847_v4  ;;  %v491_v21 = vadd.f32 %v478_v13, %v4850_v16 }
 0x306   :  { %3962 = vtanh.f32 %v484_v48  ;;  %v492_v7 = vadd.f32 %v478_v13, %v4853_v20  ;;  %v493_v25 = vadd.f32 %v478_v13, %v4857_v23  ;;  %v494_v30 = vadd.f32 %v478_v13, %v4860_v28 }
 0x307   :  { %3964 = vtanh.f32 %v485_v54  ;;  %v495_v38 = vadd.f32 %v478_v13, %v4863_v36 }
 0x308   :  { %3966 = vtanh.f32 %v486_v57 }
 0x309   :  { %v3957_v43 = vpop.eup %3956  ;;  %3968 = vtanh.f32 %v487_v59 }
 0x30a   :  { %529 = vmatmul.f32.vlgmr.msrb.gmra.mxu3 %v3957_v43  ;;  %v3959_v45 = vpop.eup %3958  ;;  %3970 = vtanh.f32 %v488_v1  ;;  %v4866_v43 = vpop.f32.mrf.mxu1 }
 0x30b   :  { %v3961_v51 = vpop.eup %3960  ;;  %3972 = vtanh.f32 %v489_v5  ;;  %6533 = vst [vmem:[#allocation19_spill] sm:$0xff] %v4866_v43  ;;  %v496_v44 = vadd.f32 %v478_v13, %v4866_v43 }
 0x30c   :  { %v3963_v55 = vpop.eup %3962  ;;  %3974 = vtanh.f32 %v490_v18 }
 0x30d   :  { %v3965_v58 = vpop.eup %3964  ;;  %3976 = vtanh.f32 %v491_v21 }
 0x30e   :  { %v3967_v62 = vpop.eup %3966  ;;  %3978 = vtanh.f32 %v492_v7 }
 0x30f   :  { %v3969_v3 = vpop.eup %3968  ;;  %3980 = vtanh.f32 %v493_v25 }
 0x310   :  { %v3971_v14 = vpop.eup %3970  ;;  %3982 = vtanh.f32 %v494_v30 }
 0x311   :  { %v3973_v19 = vpop.eup %3972  ;;  %3984 = vtanh.f32 %v495_v38 }
 0x312   :  { %532 = vmatmul.f32.gmra.mxu3 %v3959_v45  ;;  %v3975_v6 = vpop.eup %3974  ;;  %3986 = vtanh.f32 %v496_v44 }
 0x313   :  { %v3977_v10 = vpop.eup %3976 }
 0x314   :  { %v3979_v27 = vpop.eup %3978 }
 0x315   :  { %v3981_v35 = vpop.eup %3980 }
 0x316   :  { %v3983_v39 = vpop.eup %3982 }
 0x317   :  { %v3985_v45 = vpop.eup %3984 }
 0x318   :  { %v3987_v48 = vpop.eup %3986 }
 0x31a   :  { %535 = vmatmul.f32.gmra.mxu3 %v3961_v51 }
 0x322   :  { %538 = vmatmul.f32.gmra.mxu3 %v3963_v55 }
 0x32a   :  { %541 = vmatmul.f32.gmra.mxu3 %v3965_v58 }
 0x332   :  { %544 = vmatmul.f32.gmra.mxu3 %v3967_v62 }
 0x33a   :  { %547 = vmatmul.f32.gmra.mxu3 %v3969_v3 }
 0x342   :  { %550 = vmatmul.f32.gmra.mxu3 %v3971_v14 }
 0x34a   :  { %553 = vmatmul.f32.gmra.mxu3 %v3973_v19 }
 0x352   :  { %556 = vmatmul.f32.gmra.mxu3 %v3975_v6 }
 0x35a   :  { %559 = vmatmul.f32.gmra.mxu3 %v3977_v10 }
 0x362   :  { %562 = vmatmul.f32.gmra.mxu3 %v3979_v27 }
 0x36a   :  { %565 = vmatmul.f32.gmra.mxu3 %v3981_v35 }
 0x372   :  { %568 = vmatmul.f32.gmra.mxu3 %v3983_v39 }
 0x37a   :  { %571 = vmatmul.f32.gmra.mxu3 %v3985_v45 }
 0x382   :  { %574 = vmatmul.f32.gmra.mxu3 %v3987_v48 }
 0x38d   :  { %v4869_v51 = vpop.f32.mrf.mxu3 }
 0x38e   :  { %v579_v54 = vsel %vm578_vm8, %v4869_v51, -inf }
 0x38f   :  { %580 = vmax.xlane.f32.xlu2 %v579_v54 }
 0x395   :  { %v4873_v55 = vpop.f32.mrf.mxu3 }
 0x396   :  { %v582_v57 = vsel %vm578_vm8, %v4873_v55, -inf }
 0x397   :  { %583 = vmax.xlane.f32.xlu2 %v582_v57 }
 0x39d   :  { %v4877_v58 = vpop.f32.mrf.mxu3 }
 0x39e   :  { %v585_v59 = vsel %vm578_vm8, %v4877_v58, -inf }
 0x39f   :  { %586 = vmax.xlane.f32.xlu0 %v585_v59 }
 0x3a5   :  { %v4881_v62 = vpop.f32.mrf.mxu3 }
 0x3a6   :  { %v588_v0 = vsel %vm578_vm8, %v4881_v62, -inf }
 0x3a7   :  { %589 = vmax.xlane.f32.xlu1 %v588_v0 }
 0x3ad   :  { %v4885_v1 = vpop.f32.mrf.mxu3 }
 0x3ae   :  { %v591_v3 = vsel %vm578_vm8, %v4885_v1, -inf }
 0x3af   :  { %592 = vmax.xlane.f32.xlu2 %v591_v3 }
 0x3b5   :  { %v4889_v13 = vpop.f32.mrf.mxu3 }
 0x3b6   :  { %v594_v5 = vsel %vm578_vm8, %v4889_v13, -inf }
 0x3b7   :  { %595 = vmax.xlane.f32.xlu2 %v594_v5 }
 0x3bd   :  { %v4893_v14 = vpop.f32.mrf.mxu3 }
 0x3be   :  { %v597_v18 = vsel %vm578_vm8, %v4893_v14, -inf }
 0x3bf   :  { %598 = vmax.xlane.f32.xlu2 %v597_v18 }
 0x3c5   :  { %v4897_v19 = vpop.f32.mrf.mxu3 }
 0x3c6   :  { %v600_v21 = vsel %vm578_vm8, %v4897_v19, -inf }
 0x3c7   :  { %601 = vmax.xlane.f32.xlu2 %v600_v21 }
 0x3cd   :  { %v4901_v6 = vpop.f32.mrf.mxu3 }
 0x3ce   :  { %v603_v7 = vsel %vm578_vm8, %v4901_v6, -inf }
 0x3cf   :  { %604 = vmax.xlane.f32.xlu2 %v603_v7 }
 0x3d5   :  { %v4905_v10 = vpop.f32.mrf.mxu3 }
 0x3d6   :  { %v606_v25 = vsel %vm578_vm8, %v4905_v10, -inf }
 0x3d7   :  { %607 = vmax.xlane.f32.xlu2 %v606_v25 }
 0x3dd   :  { %v4909_v27 = vpop.f32.mrf.mxu3 }
 0x3de   :  { %v609_v30 = vsel %vm578_vm8, %v4909_v27, -inf }
 0x3df   :  { %610 = vmax.xlane.f32.xlu0 %v609_v30 }
 0x3e5   :  { %v4913_v35 = vpop.f32.mrf.mxu3 }
 0x3e6   :  { %v612_v38 = vsel %vm578_vm8, %v4913_v35, -inf }
 0x3e7   :  { %613 = vmax.xlane.f32.xlu1 %v612_v38 }
 0x3ed   :  { %v4917_v39 = vpop.f32.mrf.mxu3 }
 0x3ee   :  { %v615_v44 = vsel %vm578_vm8, %v4917_v39, -inf }
 0x3ef   :  { %616 = vmax.xlane.f32.xlu2 %v615_v44 }
 0x3f5   :  { %v4921_v45 = vpop.f32.mrf.mxu3 }
 0x3f6   :  { %v618_v48 = vsel %vm578_vm8, %v4921_v45, -inf }
 0x3f7   :  { %619 = vmax.xlane.f32.xlu0 %v618_v48 }
 0x3fd   :  { %v4925_v54 = vpop.f32.mrf.mxu3 }
 0x3fe   :  { %v621_v57 = vsel %vm578_vm8, %v4925_v54, -inf }
 0x3ff   :  { %622 = vmax.xlane.f32.xlu1 %v621_v57 }
 0x402   :  { %v581_v3 = vpop.xlane.xlu2 %580 }
 0x405   :  { %v4929_v59 = vpop.f32.mrf.mxu3 }
 0x406   :  { %v624_v0 = vsel %vm578_vm8, %v4929_v59, -inf }
 0x407   :  { %625 = vmax.xlane.f32.xlu2 %v624_v0 }
 0x40a   :  { %v584_v5 = vpop.xlane.xlu2 %583 }
 0x412   :  { %v587_v25 = vpop.xlane.xlu0 %586 }
 0x413   :  { %v627_v38 = vmax.f32 %v581_v3, %v587_v25 }
 0x41a   :  { %v590_v30 = vpop.xlane.xlu1 %589 }
 0x41b   :  { %v628_v44 = vmax.f32 %v584_v5, %v590_v30 }
 0x422   :  { %v593_v18 = vpop.xlane.xlu2 %592 }
 0x423   :  { %v629_v48 = vmax.f32 %v627_v38, %v593_v18 }
 0x42a   :  { %v596_v21 = vpop.xlane.xlu2 %595 }
 0x42b   :  { %v630_v11 = vmax.f32 %v628_v44, %v596_v21 }
 0x432   :  { %v599_v7 = vpop.xlane.xlu2 %598 }
 0x433   :  { %v631_v36 = vmax.f32 %v629_v48, %v599_v7 }
 0x43a   :  { %v602_v43 = vpop.xlane.xlu2 %601 }
 0x43b   :  { %v632_v57 = vmax.f32 %v630_v11, %v602_v43 }
 0x43d   :  { %v633_v28 = vmax.f32 %v631_v36, %v632_v57 }
 0x43f   :  { %v634_v23 = vrot.slane %v633_v28, 4 }
 0x441   :  { %v635_v20 = vmax.f32 %v633_v28, %v634_v23 }
 0x442   :  { %v605_v7 = vpop.xlane.xlu2 %604 }
 0x443   :  { %v636_v16 = vrot.slane %v635_v20, 2 }
 0x445   :  { %v637_v4 = vmax.f32 %v635_v20, %v636_v16 }
 0x447   :  { %v638_v0 = vrot.slane %v637_v4, 1 }
 0x449   :  { %v639_v61 = vmax.f32 %v637_v4, %v638_v0 }
 0x44a   :  { %v608_v57 = vpop.xlane.xlu2 %607 }
 0x44b   :  { %v653_v56 = vsub.f32 %v4869_v51, %v639_v61  ;;  %v654_v52 = vsub.f32 %v4873_v55, %v639_v61  ;;  %v655_v47 = vsub.f32 %v4877_v58, %v639_v61  ;;  %v656_v21 = vsub.f32 %v4881_v62, %v639_v61 }
 0x44c   :  { %v657_v11 = vsub.f32 %v4885_v1, %v639_v61  ;;  %v658_v23 = vsub.f32 %v4889_v13, %v639_v61  ;;  %v659_v36 = vsub.f32 %v4893_v14, %v639_v61 }
 0x44d   :  { %v669_v3 = vmul.f32 1.442695, %v653_v56  ;;  %v671_v5 = vmul.f32 1.442695, %v654_v52  ;;  %v673_v18 = vmul.f32 1.442695, %v655_v47  ;;  %v660_v52 = vsub.f32 %v4897_v19, %v639_v61 }
 0x44e   :  { %v675_v16 = vmul.f32 1.442695, %v656_v21  ;;  %v677_v4 = vmul.f32 1.442695, %v657_v11  ;;  %v679_v20 = vmul.f32 1.442695, %v658_v23 }
 0x44f   :  { %3988 = vpow2.f32 %v669_v3  ;;  %v681_v58 = vmul.f32 1.442695, %v659_v36  ;;  %v683_v62 = vmul.f32 1.442695, %v660_v52 }
 0x450   :  { %3990 = vpow2.f32 %v671_v5 }
 0x451   :  { %3992 = vpow2.f32 %v673_v18 }
 0x452   :  { %3994 = vpow2.f32 %v675_v16  ;;  %v611_v0 = vpop.xlane.xlu0 %610 }
 0x453   :  { %3996 = vpow2.f32 %v677_v4  ;;  %v640_v21 = vmax.f32 %v605_v7, %v611_v0 }
 0x454   :  { %3998 = vpow2.f32 %v679_v20 }
 0x455   :  { %v4939_v28 = vpop.eup %3988  ;;  %4000 = vpow2.f32 %v681_v58 }
 0x456   :  { %v4942_v56 = vpop.eup %3990  ;;  %v701_v47 = vsel %vm578_vm8, %v4939_v28, 0.0  ;;  %4002 = vpow2.f32 %v683_v62 }
 0x457   :  { %v4947_v43 = vpop.eup %3992  ;;  %702 = vadd.xlane.f32.xlu0 %v701_v47  ;;  %v704_v51 = vsel %vm578_vm8, %v4942_v56, 0.0 }
 0x458   :  { %705 = vadd.xlane.f32.xlu1 %v704_v51  ;;  %v707_v55 = vsel %vm578_vm8, %v4947_v43, 0.0  ;;  %v4953_v1 = vpop.eup %3994 }
 0x459   :  { %708 = vadd.xlane.f32.xlu2 %v707_v55  ;;  %v4955_v13 = vpop.eup %3996  ;;  %v710_v61 = vsel %vm578_vm8, %v4953_v1, 0.0 }
 0x45a   :  { %v4957_v14 = vpop.eup %3998  ;;  %v713_v19 = vsel %vm578_vm8, %v4955_v13, 0.0  ;;  %v614_v3 = vpop.xlane.xlu1 %613 }
 0x45b   :  { %v716_v25 = vsel %vm578_vm8, %v4957_v14, 0.0  ;;  %v4965_v30 = vpop.eup %4000  ;;  %v641_v11 = vmax.f32 %v608_v57, %v614_v3 }
 0x45c   :  { %v4967_v38 = vpop.eup %4002  ;;  %v719_v44 = vsel %vm578_vm8, %v4965_v30, 0.0 }
 0x45d   :  { %v722_v48 = vsel %vm578_vm8, %v4967_v38, 0.0 }
 0x45f   :  { %711 = vadd.xlane.f32.xlu0 %v710_v61 }
 0x460   :  { %714 = vadd.xlane.f32.xlu1 %v713_v19 }
 0x461   :  { %717 = vadd.xlane.f32.xlu2 %v716_v25 }
 0x462   :  { %v617_v5 = vpop.xlane.xlu2 %616 }
 0x463   :  { %v642_v16 = vmax.f32 %v640_v21, %v617_v5 }
 0x467   :  { %720 = vadd.xlane.f32.xlu0 %v719_v44 }
 0x468   :  { %723 = vadd.xlane.f32.xlu1 %v722_v48 }
 0x46a   :  { %v620_v18 = vpop.xlane.xlu0 %619 }
 0x46b   :  { %v643_v4 = vmax.f32 %v641_v11, %v620_v18 }
 0x472   :  { %v623_v23 = vpop.xlane.xlu1 %622 }
 0x473   :  { %v644_v36 = vmax.f32 %v642_v16, %v623_v23 }
 0x47a   :  { %v626_v20 = vpop.xlane.xlu2 %625 }
 0x47b   :  { %v645_v47 = vmax.f32 %v643_v4, %v626_v20 }
 0x47d   :  { %v646_v52 = vmax.f32 %v644_v36, %v645_v47 }
 0x47f   :  { %v647_v51 = vrot.slane %v646_v52, 4 }
 0x481   :  { %v648_v55 = vmax.f32 %v646_v52, %v647_v51 }
 0x483   :  { %v649_v58 = vrot.slane %v648_v55, 2 }
 0x485   :  { %v650_v62 = vmax.f32 %v648_v55, %v649_v58 }
 0x487   :  { %v651_v61 = vrot.slane %v650_v62, 1 }
 0x489   :  { %v652_v19 = vmax.f32 %v650_v62, %v651_v61 }
 0x48b   :  { %v663_v25 = vsub.f32 %v4909_v27, %v652_v19  ;;  %v662_v44 = vsub.f32 %v4905_v10, %v652_v19  ;;  %v661_v7 = vsub.f32 %v4901_v6, %v652_v19  ;;  %v666_v3 = vsub.f32 %v4921_v45, %v652_v19 }
 0x48c   :  { %v665_v5 = vsub.f32 %v4917_v39, %v652_v19  ;;  %v664_v18 = vsub.f32 %v4913_v35, %v652_v19  ;;  %v668_v45 = vsub.f32 %v4929_v59, %v652_v19  ;;  %v667_v16 = vsub.f32 %v4925_v54, %v652_v19 }
 0x48d   :  { %v689_v48 = vmul.f32 1.442695, %v663_v25  ;;  %v687_v57 = vmul.f32 1.442695, %v662_v44  ;;  %v685_v0 = vmul.f32 1.442695, %v661_v7 }
 0x48e   :  { %v695_v21 = vmul.f32 1.442695, %v666_v3  ;;  %v693_v11 = vmul.f32 1.442695, %v665_v5  ;;  %v691_v23 = vmul.f32 1.442695, %v664_v18 }
 0x48f   :  { %4004 = vpow2.f32 %v689_v48  ;;  %v699_v20 = vmul.f32 1.442695, %v668_v45  ;;  %v697_v47 = vmul.f32 1.442695, %v667_v16  ;;  %v316_v7 = vld [vmem:[%s6476_s11] sm:$0xf] }
 0x490   :  { %4006 = vpow2.f32 %v687_v57  ;;  %3820 = vmatpush.msk.msrb.mxu0 %vm124_vm1, %v316_v7  ;;  %3938 = vmatpush.msk.msra.mxu2 %vm124_vm1, %v316_v7  ;;  %v5021_v57 = vld [vmem:[%s6467_s6 + $0x8] sm:$0xff]  ;;  %v5027_v3 = vld [vmem:[%s6467_s6] sm:$0xff] }
 0x491   :  { %4008 = vpow2.f32 %v685_v0 }
 0x492   :  { %4010 = vpow2.f32 %v695_v21  ;;  %1062 = vmatpush.msrb.mxu2 %v5021_v57 }
 0x493   :  { %4012 = vpow2.f32 %v693_v11 }
 0x494   :  { %4014 = vpow2.f32 %v691_v23  ;;  %1063 = vmatpush.msrb.mxu2 %v5027_v3 }
 0x495   :  { %v4979_v27 = vpop.eup %4004  ;;  %4016 = vpow2.f32 %v699_v20 }
 0x496   :  { %v4981_v10 = vpop.eup %4006  ;;  %v731_v6 = vsel %vm578_vm8, %v4979_v27, 0.0  ;;  %4018 = vpow2.f32 %v697_v47 }
 0x497   :  { %v4986_v39 = vpop.eup %4008  ;;  %732 = vadd.xlane.f32.xlu1 %v731_v6  ;;  %v728_v35 = vsel %vm578_vm8, %v4981_v10, 0.0 }
 0x498   :  { %729 = vadd.xlane.f32.xlu0 %v728_v35  ;;  %v725_v4 = vsel %vm578_vm8, %v4986_v39, 0.0  ;;  %v4993_v36 = vpop.eup %4010 }
 0x499   :  { %726 = vadd.xlane.f32.xlu2 %v725_v4  ;;  %v4995_v52 = vpop.eup %4012  ;;  %v740_v51 = vsel %vm578_vm8, %v4993_v36, 0.0 }
 0x49a   :  { %v4997_v59 = vpop.eup %4014  ;;  %v737_v54 = vsel %vm578_vm8, %v4995_v52, 0.0 }
 0x49b   :  { %v734_v55 = vsel %vm578_vm8, %v4997_v59, 0.0  ;;  %v5005_v58 = vpop.eup %4016 }
 0x49c   :  { %v5007_v62 = vpop.eup %4018  ;;  %v746_v61 = vsel %vm578_vm8, %v5005_v58, 0.0 }
 0x49d   :  { %v743_v19 = vsel %vm578_vm8, %v5007_v62, 0.0 }
 0x49f   :  { %741 = vadd.xlane.f32.xlu1 %v740_v51 }
 0x4a0   :  { %738 = vadd.xlane.f32.xlu0 %v737_v54 }
 0x4a1   :  { %735 = vadd.xlane.f32.xlu2 %v734_v55 }
 0x4a8   :  { %747 = vadd.xlane.f32.xlu0 %v746_v61 }
 0x4a9   :  { %744 = vadd.xlane.f32.xlu2 %v743_v19 }
 0x4ca   :  { %v703_v25 = vpop.xlane.xlu0 %702 }
 0x4cb   :  { %v706_v44 = vpop.xlane.xlu1 %705 }
 0x4cc   :  { %v749_v48 = vadd.f32 %v706_v44, %v703_v25  ;;  %v709_v0 = vpop.xlane.xlu2 %708 }
 0x4ce   :  { %v750_v5 = vadd.f32 %v749_v48, %v709_v0 }
 0x4d2   :  { %v712_v18 = vpop.xlane.xlu0 %711 }
 0x4d3   :  { %v751_v21 = vadd.f32 %v750_v5, %v712_v18  ;;  %v715_v11 = vpop.xlane.xlu1 %714 }
 0x4d4   :  { %v718_v6 = vpop.xlane.xlu2 %717 }
 0x4d5   :  { %v752_v23 = vadd.f32 %v751_v21, %v715_v11 }
 0x4d7   :  { %v753_v45 = vadd.f32 %v752_v23, %v718_v6 }
 0x4da   :  { %v721_v35 = vpop.xlane.xlu0 %720 }
 0x4db   :  { %v754_v16 = vadd.f32 %v753_v45, %v721_v35  ;;  %v724_v4 = vpop.xlane.xlu1 %723 }
 0x4dd   :  { %v755_v20 = vadd.f32 %v754_v16, %v724_v4 }
 0x4df   :  { %v756_v47 = vrot.slane %v755_v20, 4 }
 0x4e1   :  { %v757_v51 = vadd.f32 %v756_v47, %v755_v20 }
 0x4e3   :  { %v758_v54 = vrot.slane %v757_v51, 2 }
 0x4e5   :  { %v759_v55 = vadd.f32 %v758_v54, %v757_v51 }
 0x4e7   :  { %v760_v61 = vrot.slane %v759_v55, 1 }
 0x4e9   :  { %v761_v19 = vadd.f32 %v760_v61, %v759_v55 }
 0x4eb   :  { %4020 = vrcp.f32 %v761_v19 }
 0x4f1   :  { %v4021_v25 = vpop.eup %4020 }
 0x4f2   :  { %v777_v44 = vmul.f32 %v4021_v25, %v4939_v28  ;;  %v780_v48 = vmul.f32 %v4021_v25, %v4953_v1  ;;  %v778_v0 = vmul.f32 %v4021_v25, %v4942_v56  ;;  %v781_v5 = vmul.f32 %v4021_v25, %v4955_v13 }
 0x4f3   :  { %v779_v18 = vmul.f32 %v4021_v25, %v4947_v43  ;;  %v782_v28 = vmul.f32 %v4021_v25, %v4957_v14  ;;  %v783_v1 = vmul.f32 %v4021_v25, %v4965_v30  ;;  %v784_v11 = vmul.f32 %v4021_v25, %v4967_v38 }
 0x4f4   :  { %3821 = vmatmul.msk.f32.vlgmr.msrb.gmra.mxu0 %vm578_vm8, %v777_v44  ;;  %3824 = vmatmul.msk.f32.vlgmr.msra.gmra.mxu2 %vm578_vm8, %v780_v48 }
 0x4f5   :  { %3844 = vmatpush.msk.msra.mxu2 %vm124_vm1, %v316_v7 }
 0x4fc   :  { %3822 = vmatmul.msk.f32.gmra.mxu0 %vm578_vm8, %v778_v0  ;;  %3825 = vmatmul.msk.f32.gmra.mxu2 %vm578_vm8, %v781_v5 }
 0x504   :  { %3823 = vmatmul.msk.f32.gmra.mxu0 %vm578_vm8, %v779_v18  ;;  %3826 = vmatmul.msk.f32.gmra.mxu2 %vm578_vm8, %v782_v28 }
 0x50a   :  { %v733_v13 = vpop.xlane.xlu1 %732 }
 0x50b   :  { %v730_v21 = vpop.xlane.xlu0 %729 }
 0x50c   :  { %v727_v7 = vpop.xlane.xlu2 %726  ;;  %3827 = vmatmul.msk.f32.gmra.mxu2 %vm578_vm8, %v783_v1 }
 0x50d   :  { %v762_v56 = vadd.f32 %v730_v21, %v727_v7 }
 0x50f   :  { %v763_v23 = vadd.f32 %v762_v56, %v733_v13 }
 0x512   :  { %v742_v35 = vpop.xlane.xlu1 %741 }
 0x513   :  { %v739_v6 = vpop.xlane.xlu0 %738 }
 0x514   :  { %v736_v45 = vpop.xlane.xlu2 %735  ;;  %3828 = vmatmul.msk.f32.gmra.mxu2 %vm578_vm8, %v784_v11 }
 0x515   :  { %v764_v43 = vadd.f32 %v763_v23, %v736_v45 }
 0x517   :  { %v765_v14 = vadd.f32 %v764_v43, %v739_v6 }
 0x519   :  { %v766_v16 = vadd.f32 %v765_v14, %v742_v35 }
 0x51b   :  { %v748_v30 = vpop.xlane.xlu0 %747 }
 0x51c   :  { %v745_v4 = vpop.xlane.xlu2 %744 }
 0x51d   :  { %v767_v20 = vadd.f32 %v766_v16, %v745_v4 }
 0x51f   :  { %v768_v47 = vadd.f32 %v767_v20, %v748_v30 }
 0x521   :  { %v769_v51 = vrot.slane %v768_v47, 4 }
 0x523   :  { %v770_v54 = vadd.f32 %v769_v51, %v768_v47 }
 0x525   :  { %v771_v55 = vrot.slane %v770_v54, 2 }
 0x527   :  { %v772_v61 = vadd.f32 %v771_v55, %v770_v54 }
 0x529   :  { %v773_v19 = vrot.slane %v772_v61, 1 }
 0x52b   :  { %v774_v44 = vadd.f32 %v773_v19, %v772_v61 }
 0x52d   :  { %4022 = vrcp.f32 %v774_v44 }
 0x533   :  { %v4023_v38 = vpop.eup %4022 }
 0x534   :  { %v785_v25 = vmul.f32 %v4023_v38, %v4986_v39  ;;  %v786_v48 = vmul.f32 %v4023_v38, %v4981_v10  ;;  %v787_v0 = vmul.f32 %v4023_v38, %v4979_v27  ;;  %v788_v5 = vmul.f32 %v4023_v38, %v4997_v59 }
 0x535   :  { %v789_v18 = vmul.f32 %v4023_v38, %v4995_v52  ;;  %v790_v39 = vmul.f32 %v4023_v38, %v4993_v36  ;;  %v791_v10 = vmul.f32 %v4023_v38, %v5007_v62  ;;  %v792_v27 = vmul.f32 %v4023_v38, %v5005_v58 }
 0x536   :  { %3829 = vmatmul.msk.f32.gmra.mxu2 %vm578_vm8, %v785_v25 }
 0x53e   :  { %3830 = vmatmul.msk.f32.gmra.mxu2 %vm578_vm8, %v786_v48 }
 0x546   :  { %3831 = vmatmul.msk.f32.gmra.mxu2 %vm578_vm8, %v787_v0 }
 0x54e   :  { %3832 = vmatmul.msk.f32.gmra.mxu2 %vm578_vm8, %v788_v5 }
 0x556   :  { %3833 = vmatmul.msk.f32.gmra.mxu2 %vm578_vm8, %v789_v18 }
 0x55e   :  { %3834 = vmatmul.msk.f32.gmra.mxu2 %vm578_vm8, %v790_v39 }
 0x566   :  { %3835 = vmatmul.msk.f32.gmra.mxu2 %vm578_vm8, %v791_v10 }
 0x56e   :  { %3836 = vmatmul.msk.f32.gmra.mxu2 %vm578_vm8, %v792_v27 }
 0x571   :  { %v861_v28 = vpop.f32.mrf.mxu0 }
 0x572   :  { %v909_v56 = vmul.f32 %v861_v28, %v4670_v17 }
 0x577   :  { %v870_v59 = vpop.f32.mrf.mxu2 }
 0x578   :  { %v912_v23 = vmul.f32 %v870_v59, %v4702_v26 }
 0x579   :  { %v864_v1 = vpop.f32.mrf.mxu0 }
 0x57a   :  { %v910_v52 = vmul.f32 %v864_v1, %v4683_v22 }
 0x57c   :  { %v925_v11 = vadd.f32 %v910_v52, %v909_v56  ;;  %v5085_v52 = vld [vmem:[%s6477_s13 + $0x18] sm:$0xff]  ;;  %v5090_v56 = vld [vmem:[%s6477_s13 + $0x10] sm:$0xff] }
 0x57d   :  { %996 = vmatpush.msra.mxu0 %v5085_v52  ;;  %1678 = vmatpush.msrb.mxu3 %v5085_v52 }
 0x57f   :  { %v873_v21 = vpop.f32.mrf.mxu2  ;;  %997 = vmatpush.msra.mxu0 %v5090_v56  ;;  %1679 = vmatpush.msrb.mxu3 %v5090_v56 }
 0x580   :  { %v913_v45 = vmul.f32 %v873_v21, %v4706_v29 }
 0x581   :  { %v867_v7 = vpop.f32.mrf.mxu0 }
 0x582   :  { %v911_v36 = vmul.f32 %v867_v7, %v4698_v24 }
 0x584   :  { %v926_v62 = vadd.f32 %v925_v11, %v911_v36 }
 0x586   :  { %v927_v6 = vadd.f32 %v926_v62, %v912_v23 }
 0x587   :  { %v876_v13 = vpop.f32.mrf.mxu2 }
 0x588   :  { %v914_v43 = vmul.f32 %v876_v13, %v4710_v32  ;;  %v928_v14 = vadd.f32 %v927_v6, %v913_v45 }
 0x58a   :  { %v929_v16 = vadd.f32 %v928_v14, %v914_v43 }
 0x58f   :  { %v879_v58 = vpop.f32.mrf.mxu2 }
 0x590   :  { %v915_v35 = vmul.f32 %v879_v58, %v4716_v37 }
 0x592   :  { %v930_v20 = vadd.f32 %v929_v16, %v915_v35 }
 0x597   :  { %v882_v4 = vpop.f32.mrf.mxu2 }
 0x598   :  { %v916_v30 = vmul.f32 %v882_v4, %v4720_v41 }
 0x59a   :  { %v931_v47 = vadd.f32 %v930_v20, %v916_v30 }
 0x59c   :  { %v932_v51 = vrot.slane %v931_v47, 4 }
 0x59e   :  { %v933_v54 = vadd.f32 %v932_v51, %v931_v47  ;;  %v5107_v47 = vld [vmem:[%s6477_s13 + $0x8] sm:$0xff]  ;;  %v5112_v51 = vld [vmem:[%s6477_s13] sm:$0xff] }
 0x59f   :  { %998 = vmatpush.msra.mxu0 %v5107_v47  ;;  %1680 = vmatpush.msrb.mxu3 %v5107_v47 }
 0x5a0   :  { %v934_v55 = vrot.slane %v933_v54, 2 }
 0x5a1   :  { %999 = vmatpush.msra.mxu0 %v5112_v51  ;;  %1681 = vmatpush.msrb.mxu3 %v5112_v51 }
 0x5a2   :  { %v935_v61 = vadd.f32 %v934_v55, %v933_v54  ;;  %v5121_v54 = vld [vmem:[%s6478_s12 + $0x18] sm:$0xff]  ;;  %v5126_v55 = vld [vmem:[%s6478_s12 + $0x10] sm:$0xff] }
 0x5a3   :  { %1016 = vmatpush.msrb.mxu0 %v5121_v54 }
 0x5a4   :  { %v936_v19 = vrot.slane %v935_v61, 1 }
 0x5a5   :  { %1017 = vmatpush.msrb.mxu0 %v5126_v55 }
 0x5a6   :  { %v5071_v44 = vadd.f32 %v936_v19, %v935_v61  ;;  %v5132_v61 = vld [vmem:[%s6478_s12 + $0x8] sm:$0xff]  ;;  %v5138_v19 = vld [vmem:[%s6478_s12] sm:$0xff] }
 0x5a7   :  { %1018 = vmatpush.msrb.mxu0 %v5132_v61 }
 0x5a8   :  { %953 = vrot.lane.b32.xlu2 %v5071_v44, %s4406_s25 }
 0x5a9   :  { %1019 = vmatpush.msrb.mxu0 %v5138_v19 }
 0x5b0   :  { %969 = vrot.lane.b32.xlu2 %v5071_v44, %s4405_s1 }
 0x5b9   :  { %v885_v38 = vpop.f32.mrf.mxu2 }
 0x5ba   :  { %v917_v10 = vmul.f32 %v885_v38, %v4724_v40 }
 0x5c1   :  { %v888_v25 = vpop.f32.mrf.mxu2 }
 0x5c2   :  { %v918_v39 = vmul.f32 %v888_v25, %v4728_v46 }
 0x5c4   :  { %v938_v28 = vadd.f32 %v918_v39, %v917_v10 }
 0x5c9   :  { %v891_v48 = vpop.f32.mrf.mxu2 }
 0x5ca   :  { %v919_v27 = vmul.f32 %v891_v48, %v4732_v50 }
 0x5cc   :  { %v939_v21 = vadd.f32 %v938_v28, %v919_v27 }
 0x5d1   :  { %v894_v0 = vpop.f32.mrf.mxu2 }
 0x5d2   :  { %v920_v59 = vmul.f32 %v894_v0, %v4736_v53 }
 0x5d4   :  { %v940_v36 = vadd.f32 %v939_v21, %v920_v59 }
 0x5d9   :  { %v897_v5 = vpop.f32.mrf.mxu2 }
 0x5da   :  { %v921_v7 = vmul.f32 %v897_v5, %v4752_v60 }
 0x5dc   :  { %v941_v11 = vadd.f32 %v940_v36, %v921_v7  ;;  %v5155_v36 = vld [vmem:[%s6479_s14] sm:$0xff] }
 0x5e1   :  { %v900_v18 = vpop.f32.mrf.mxu2 }
 0x5e2   :  { %v922_v13 = vmul.f32 %v900_v18, %v4756_v63 }
 0x5e4   :  { %v942_v23 = vadd.f32 %v941_v11, %v922_v13  ;;  %v5170_v13 = vld [vmem:[%s6468_s7 + $0x18] sm:$0xff]  ;;  %v5176_v11 = vld [vmem:[%s6474_s9 + $0x10] sm:$0xff] }
 0x5e9   :  { %v903_v1 = vpop.f32.mrf.mxu2 }
 0x5ea   :  { %v923_v62 = vmul.f32 %v903_v1, %v4760_v2 }
 0x5ec   :  { %v943_v58 = vadd.f32 %v942_v23, %v923_v62  ;;  %v5182_v62 = vld [vmem:[%s6468_s7 + $0x10] sm:$0xff]  ;;  %v5188_v23 = vld [vmem:[%s6474_s9 + $0x8] sm:$0xff] }
 0x5f1   :  { %v906_v6 = vpop.f32.mrf.mxu2 }
 0x5f2   :  { %v924_v45 = vmul.f32 %v906_v6, %v4764_v9  ;;  %v5194_v6 = vld [vmem:[%s6468_s7 + $0x8] sm:$0xff] }
 0x5f4   :  { %v944_v43 = vadd.f32 %v943_v58, %v924_v45  ;;  %v5200_v58 = vld [vmem:[%s6474_s9] sm:$0xff] }
 0x5f5   :  { %v5206_v45 = vld [vmem:[%s6468_s7] sm:$0xff] }
 0x5f6   :  { %v945_v14 = vrot.slane %v944_v43, 4 }
 0x5f8   :  { %v946_v35 = vadd.f32 %v945_v14, %v944_v43 }
 0x5fa   :  { %v947_v16 = vrot.slane %v946_v35, 2 }
 0x5fc   :  { %v948_v4 = vadd.f32 %v947_v16, %v946_v35 }
 0x5fe   :  { %v949_v20 = vrot.slane %v948_v4, 1 }
 0x600   :  { %v950_v30 = vadd.f32 %v949_v20, %v948_v4  ;;  %v1089_v4 = vpop.f32.mrf.mxu1 }
 0x602   :  { %963 = vrot.lane.b32.xlu0 %v950_v30, %s4404_s23  ;;  %955 = vrot.lane.b32.xlu1 %v950_v30, %s4406_s25  ;;  %v954_v38 = vpop.permute.xlu2 %953 }
 0x603   :  { %v959_v5 = vadd.f32 %v954_v38, %v5071_v44  ;;  %v1093_v38 = vrot.slane %v1089_v4, 6 }
 0x60a   :  { %971 = vrot.lane.b32.xlu0 %v950_v30, %s4405_s1  ;;  %961 = vrot.lane.b32.xlu1 %v5071_v44, %s4404_s23  ;;  %v970_v59 = vpop.permute.xlu2 %969  ;;  %v5150_v44 = vld [vmem:[%s6479_s14 + $0x8] sm:$0xff] }
 0x60b   :  { %1724 = vmatpush.msra.mxu1 %v5150_v44 }
 0x60d   :  { %1725 = vmatpush.msra.mxu1 %v5155_v36 }
 0x60f   :  { %1766 = vmatpush.msrb.mxu1 %v5170_v13 }
 0x611   :  { %1767 = vmatpush.msrb.mxu1 %v5182_v62 }
 0x613   :  { %1768 = vmatpush.msrb.mxu1 %v5194_v6 }
 0x615   :  { %1769 = vmatpush.msrb.mxu1 %v5206_v45 }
 0x674   :  { %v964_v25 = vpop.permute.xlu0 %963  ;;  %v956_v48 = vpop.permute.xlu1 %955 }
 0x675   :  { %v960_v0 = vadd.f32 %v956_v48, %v950_v30 }
 0x677   :  { %v968_v18 = vadd.f32 %v964_v25, %v960_v0 }
 0x67c   :  { %v972_v39 = vpop.permute.xlu0 %971  ;;  %v962_v10 = vpop.permute.xlu1 %961 }
 0x67d   :  { %v976_v27 = vadd.f32 %v972_v39, %v968_v18  ;;  %v967_v28 = vadd.f32 %v962_v10, %v959_v5 }
 0x67f   :  { %v979_v1 = vrot.slane %v976_v27, 7  ;;  %v975_v21 = vadd.f32 %v970_v59, %v967_v28 }
 0x681   :  { %v981_v7 = vsel %vm980_vm9, %v979_v1, %v975_v21 }
 0x682   :  { %3837 = vmatmul.msk.f32.vlgmr.msra.gmra.mxu0 %vm389_vm7, %v981_v7 }
 0x683   :  { %1042 = vmatpush.msra.mxu0 %v5150_v44 }
 0x685   :  { %1043 = vmatpush.msra.mxu0 %v5155_v36 }
 0x68a   :  { %3838 = vmatmul.msk.f32.vlgmr.msrb.gmra.mxu0 %vm389_vm7, %v4767_v12  ;;  %v5164_v12 = vld [vmem:[%s6474_s9 + $0x18] sm:$0xff] }
 0x68b   :  { %1154 = vmatpush.msrb.mxu0 %v5164_v12 }
 0x68d   :  { %1155 = vmatpush.msrb.mxu0 %v5176_v11 }
 0x68f   :  { %1156 = vmatpush.msrb.mxu0 %v5188_v23 }
 0x691   :  { %1157 = vmatpush.msrb.mxu0 %v5200_v58 }
 0x6ff   :  { %v1001_v43 = vpop.f32.mrf.mxu0 }
 0x707   :  { %v1021_v14 = vpop.f32.mrf.mxu0 }
 0x708   :  { %v1022_v35 = vadd.f32 %v1021_v14, %v1001_v43  ;;  %v1117_v14 = vrot.slane %v4592_v49, 6 }
 0x70a   :  { %4024 = vtanh.f32 %v1022_v35 }
 0x710   :  { %v4025_v16 = vpop.eup %4024 }
 0x711   :  { %3839 = vmatmul.msk.f32.vlgmr.msra.gmra.mxu0 %vm335_vm0, %v4025_v16  ;;  %3840 = vmatmul.msk.f32.vlgmr.msrb.gmra.mxu2 %vm335_vm0, %v4025_v16 }
 0x712   :  { %1698 = vmatpush.msra.mxu0 %v5121_v54  ;;  %2360 = vmatpush.msrb.mxu2 %v5085_v52 }
 0x714   :  { %1699 = vmatpush.msra.mxu0 %v5126_v55  ;;  %2361 = vmatpush.msrb.mxu2 %v5090_v56 }
 0x716   :  { %1700 = vmatpush.msra.mxu0 %v5132_v61  ;;  %2362 = vmatpush.msrb.mxu2 %v5107_v47 }
 0x718   :  { %1701 = vmatpush.msra.mxu0 %v5138_v19  ;;  %2363 = vmatpush.msrb.mxu2 %v5112_v51 }
 0x78e   :  { %v5240_v49 = vpop.f32.mrf.mxu0 }
 0x78f   :  { %6535 = vst [vmem:[#allocation21_spill] sm:$0xff] %v5240_v49 }
 0x794   :  { %v1065_v20 = vpop.f32.mrf.mxu2 }
 0x795   :  { %v1069_v30 = vrot.slane %v1065_v20, 6 }
 0x797   :  { %v1071_v25 = vadd.f32 %v1069_v30, %v4539_v15 }
 0x799   :  { %v1095_v48 = vadd.f32 %v1093_v38, %v1071_v25 }
 0x79b   :  { %4026 = vtanh.f32 %v1095_v48  ;;  %v3842_v56 = vmul.f32 -1.442695, %v1095_v48 }
 0x79d   :  { %4028 = vpow2.f32 %v3842_v56 }
 0x7a1   :  { %v4027_v52 = vpop.eup %4026 }
 0x7a2   :  { %1121 = vrot.lane.b32.xlu1 %v4027_v52, %s4404_s23 }
 0x7a3   :  { %v4029_v0 = vpop.eup %4028 }
 0x7a4   :  { %v1099_v5 = vadd.f32 1.0, %v4029_v0 }
 0x7a6   :  { %4030 = vrcp.f32 %v1099_v5  ;;  %v1111_v27 = vand.u32 2147483648, %v1099_v5  ;;  %vm1105_vm11 = vweird.f32 %v1099_v5  ;;  %v1109_v28 = vand.u32 2147483647, %v1099_v5 }
 0x7a8   :  { %v1112_v1 = vor.u32 1.1754944e-38, %v1111_v27  ;;  %vm1110_vm13 = vcmp.eq.f32.partialorder %v1109_v28, 8.507059e+37  ;;  %v6538_v28 = vld [vmem:[#allocation11_spill] sm:$0xff] }
 0x7ac   :  { %v4031_v47 = vpop.eup %4030 }
 0x7ad   :  { %v1101_v18 = vmul.f32 %v4031_v47, %v1099_v5  ;;  %vm1106_vm10 = vweird.f32 %v4031_v47 }
 0x7ae   :  { %vm1107_vm12 = vmor %vm1105_vm11, %vm1106_vm10 }
 0x7af   :  { %v1102_v39 = vsub.f32 1.0, %v1101_v18  ;;  %v6536_v18 = vld [vmem:[#allocation9_spill] sm:$0xff] }
 0x7b1   :  { %v1103_v51 = vmul.f32 %v4031_v47, %v1102_v39 }
 0x7b3   :  { %v1104_v10 = vadd.f32 %v4031_v47, %v1103_v51 }
 0x7b5   :  { %v1108_v59 = vsel %vm1107_vm12, %v4031_v47, %v1104_v10 }
 0x7b6   :  { %v1113_v7 = vsel %vm1110_vm13, %v1112_v1, %v1108_v59 }
 0x7b7   :  { %v1119_v35 = vmul.f32 %v1117_v14, %v1113_v7 }
 0x814   :  { %v1122_v21 = vpop.permute.xlu1 %1121 }
 0x815   :  { %v1124_v43 = vmul.f32 %v1122_v21, %v1113_v7 }
 0x817   :  { %1126 = vrot.lane.b32.xlu0 %v1124_v43, %s4405_s1 }
 0x889   :  { %v1127_v16 = vpop.permute.xlu0 %1126 }
 0x88a   :  { %v5223_v4 = vadd.f32 %v1127_v16, %v1119_v35  ;;  %v6540_v35 = vld [vmem:[#allocation13_spill] sm:$0xff] }
 0x88c   :  { %6534 = vst [vmem:[#allocation20_spill] sm:$0xff] %v5223_v4  ;;  %4032 = vtanh.f32 %v5223_v4 }
 0x892   :  { %v4033_v20 = vpop.eup %4032 }
 0x893   :  { %1132 = vrot.lane.b32.xlu2 %v4033_v20, %s4404_s23 }
 0x8ed   :  { %v1133_v30 = vpop.permute.xlu2 %1132 }
 0x8ee   :  { %v1135_v38 = vmul.f32 %v1133_v30, %v1113_v7  ;;  %v6539_v7 = vld [vmem:[#allocation12_spill] sm:$0xff]  ;;  %v6541_v30 = vld [vmem:[#allocation14_spill] sm:$0xff] }
 0x8f0   :  { %v1137_v25 = vrot.slane %v1135_v38, 2 }
 0x8f2   :  { %1138 = vrot.lane.b32.xlu1 %v1137_v25, %s4405_s1 }
 0x964   :  { %v5228_v48 = vpop.permute.xlu1 %1138 }
 0x965   :  { %3843 = vmatmul.msk.f32.vlgmr.msrb.gmra.mxu0 %vm389_vm7, %v5228_v48 }
 0x966   :  { %1744 = vmatpush.msrb.mxu0 %v5021_v57 }
 0x968   :  { %1745 = vmatpush.msrb.mxu0 %v5027_v3 }
 0x96d   :  { %3862 = vmatmul.msk.f32.vlgmr.msra.gmra.mxu0 %vm389_vm7, %v5228_v48 }
 0x96e   :  { %1836 = vmatpush.msra.mxu0 %v5164_v12 }
 0x970   :  { %1837 = vmatpush.msra.mxu0 %v5176_v11 }
 0x972   :  { %1838 = vmatpush.msra.mxu0 %v5188_v23 }
 0x974   :  { %1839 = vmatpush.msra.mxu0 %v5200_v58 }
 0x9e2   :  { %v1159_v52 = vpop.f32.mrf.mxu0 }
 0x9e3   :  { %v1164_v56 = vperm.slane %v1159_v52, 0  ;;  %v1163_v27 = vrot.slane %v1159_v52, 1  ;;  %v6542_v52 = vld [vmem:[#allocation15_spill] sm:$0xff] }
 0x9e5   :  { %v1168_v0 = vadd.f32 %v1164_v56, %v4806_v8  ;;  %v1169_v57 = vadd.f32 %v1164_v56, %v4823_v31  ;;  %v1170_v12 = vadd.f32 %v1164_v56, %v4825_v33  ;;  %v1171_v23 = vadd.f32 %v1164_v56, %v4827_v34 }
 0x9e6   :  { %v1172_v5 = vadd.f32 %v1164_v56, %v4831_v42  ;;  %v1173_v39 = vadd.f32 %v1164_v56, %v6536_v18  ;;  %v1175_v59 = vadd.f32 %v1164_v56, %v6538_v28  ;;  %v1165_v21 = vperm.slane %v1163_v27, 0 }
 0x9e7   :  { %4034 = vtanh.f32 %v1168_v0 }
 0x9e8   :  { %4036 = vtanh.f32 %v1169_v57  ;;  %v1176_v43 = vadd.f32 %v1165_v21, %v6539_v7  ;;  %v1177_v16 = vadd.f32 %v1165_v21, %v6540_v35  ;;  %v1178_v38 = vadd.f32 %v1165_v21, %v6541_v30  ;;  %v6543_v57 = vld [vmem:[#allocation16_spill] sm:$0xff] }
 0x9e9   :  { %4038 = vtanh.f32 %v1170_v12 }
 0x9ea   :  { %4040 = vtanh.f32 %v1171_v23 }
 0x9eb   :  { %4042 = vtanh.f32 %v1172_v5  ;;  %v6545_v5 = vld [vmem:[#allocation18_spill] sm:$0xff] }
 0x9ec   :  { %4044 = vtanh.f32 %v1173_v39 }
 0x9ed   :  { %v4035_v3 = vpop.eup %4034 }
 0x9ee   :  { %1216 = vmatmul.f32.vlgmr.msra.gmra.mxu3 %v4035_v3  ;;  %v4037_v11 = vpop.eup %4036  ;;  %v1180_v3 = vadd.f32 %v1165_v21, %v6543_v57 }
 0x9ef   :  { %2406 = vmatpush.msra.mxu3 %v5150_v44  ;;  %v4039_v58 = vpop.eup %4038 }
 0x9f0   :  { %v4041_v47 = vpop.eup %4040 }
 0x9f1   :  { %2407 = vmatpush.msra.mxu3 %v5155_v36  ;;  %v4043_v44 = vpop.eup %4042  ;;  %v6537_v36 = vld [vmem:[#allocation10_spill] sm:$0xff] }
 0x9f2   :  { %v1174_v51 = vadd.f32 %v1164_v56, %v6537_v36  ;;  %v4045_v10 = vpop.eup %4044  ;;  %v1179_v56 = vadd.f32 %v1165_v21, %v6542_v52 }
 0x9f4   :  { %4046 = vtanh.f32 %v1174_v51 }
 0x9f5   :  { %4048 = vtanh.f32 %v1175_v59 }
 0x9f6   :  { %1219 = vmatmul.f32.gmra.mxu3 %v4037_v11  ;;  %4050 = vtanh.f32 %v1176_v43  ;;  %v6544_v11 = vld [vmem:[#allocation17_spill] sm:$0xff] }
 0x9f7   :  { %4052 = vtanh.f32 %v1177_v16  ;;  %v1181_v23 = vadd.f32 %v1165_v21, %v6544_v11 }
 0x9f8   :  { %4054 = vtanh.f32 %v1178_v38 }
 0x9f9   :  { %4056 = vtanh.f32 %v1179_v56 }
 0x9fa   :  { %v4047_v1 = vpop.eup %4046  ;;  %4058 = vtanh.f32 %v1180_v3 }
 0x9fb   :  { %v4049_v14 = vpop.eup %4048  ;;  %4060 = vtanh.f32 %v1181_v23 }
 0x9fc   :  { %v4051_v20 = vpop.eup %4050 }
 0x9fd   :  { %v4053_v25 = vpop.eup %4052 }
 0x9fe   :  { %1222 = vmatmul.f32.gmra.mxu3 %v4039_v58  ;;  %v4055_v0 = vpop.eup %4054 }
 0x9ff   :  { %v4057_v12 = vpop.eup %4056 }
 0xa00   :  { %v4059_v58 = vpop.eup %4058 }
 0xa01   :  { %v4061_v39 = vpop.eup %4060 }
 0xa06   :  { %1225 = vmatmul.f32.gmra.mxu3 %v4041_v47  ;;  %v1182_v47 = vadd.f32 %v1165_v21, %v6545_v5 }
 0xa08   :  { %4062 = vtanh.f32 %v1182_v47 }
 0xa0e   :  { %1228 = vmatmul.f32.gmra.mxu3 %v4043_v44  ;;  %v6546_v44 = vld [vmem:[#allocation19_spill] sm:$0xff] }
 0xa0f   :  { %v1183_v51 = vadd.f32 %v1165_v21, %v6546_v44 }
 0xa11   :  { %4064 = vtanh.f32 %v1183_v51 }
 0xa16   :  { %1231 = vmatmul.f32.gmra.mxu3 %v4045_v10  ;;  %v4063_v10 = vpop.eup %4062 }
 0xa17   :  { %v4065_v27 = vpop.eup %4064 }
 0xa1e   :  { %1234 = vmatmul.f32.gmra.mxu3 %v4047_v1 }
 0xa26   :  { %1237 = vmatmul.f32.gmra.mxu3 %v4049_v14 }
 0xa2e   :  { %1240 = vmatmul.f32.gmra.mxu3 %v4051_v20 }
 0xa36   :  { %1243 = vmatmul.f32.gmra.mxu3 %v4053_v25 }
 0xa3e   :  { %1246 = vmatmul.f32.gmra.mxu3 %v4055_v0 }
 0xa46   :  { %1249 = vmatmul.f32.gmra.mxu3 %v4057_v12 }
 0xa4e   :  { %1252 = vmatmul.f32.gmra.mxu3 %v4059_v58 }
 0xa56   :  { %1255 = vmatmul.f32.gmra.mxu3 %v4061_v39 }
 0xa5e   :  { %1258 = vmatmul.f32.gmra.mxu3 %v4063_v10 }
 0xa66   :  { %1261 = vmatmul.f32.gmra.mxu3 %v4065_v27 }
 0xa71   :  { %v5260_v59 = vpop.f32.mrf.mxu3 }
 0xa72   :  { %v1265_v1 = vsel %vm578_vm8, %v5260_v59, -inf }
 0xa73   :  { %1266 = vmax.xlane.f32.xlu0 %v1265_v1 }
 0xa79   :  { %v5264_v43 = vpop.f32.mrf.mxu3 }
 0xa7a   :  { %v1268_v14 = vsel %vm578_vm8, %v5264_v43, -inf }
 0xa7b   :  { %1269 = vmax.xlane.f32.xlu2 %v1268_v14 }
 0xa81   :  { %v5268_v16 = vpop.f32.mrf.mxu3 }
 0xa82   :  { %v1271_v21 = vsel %vm578_vm8, %v5268_v16, -inf }
 0xa83   :  { %1272 = vmax.xlane.f32.xlu1 %v1271_v21 }
 0xa89   :  { %v5272_v20 = vpop.f32.mrf.mxu3 }
 0xa8a   :  { %v1274_v38 = vsel %vm578_vm8, %v5272_v20, -inf }
 0xa8b   :  { %1275 = vmax.xlane.f32.xlu0 %v1274_v38 }
 0xa91   :  { %v5276_v25 = vpop.f32.mrf.mxu3 }
 0xa92   :  { %v1277_v56 = vsel %vm578_vm8, %v5276_v25, -inf }
 0xa93   :  { %1278 = vmax.xlane.f32.xlu2 %v1277_v56 }
 0xa99   :  { %v5280_v0 = vpop.f32.mrf.mxu3 }
 0xa9a   :  { %v1280_v3 = vsel %vm578_vm8, %v5280_v0, -inf }
 0xa9b   :  { %1281 = vmax.xlane.f32.xlu1 %v1280_v3 }
 0xaa1   :  { %v5284_v12 = vpop.f32.mrf.mxu3 }
 0xaa2   :  { %v1283_v23 = vsel %vm578_vm8, %v5284_v12, -inf }
 0xaa3   :  { %1284 = vmax.xlane.f32.xlu0 %v1283_v23 }
 0xaa9   :  { %v5288_v58 = vpop.f32.mrf.mxu3 }
 0xaaa   :  { %v1286_v47 = vsel %vm578_vm8, %v5288_v58, -inf }
 0xaab   :  { %1287 = vmax.xlane.f32.xlu2 %v1286_v47 }
 0xab1   :  { %v5292_v39 = vpop.f32.mrf.mxu3 }
 0xab2   :  { %v1289_v51 = vsel %vm578_vm8, %v5292_v39, -inf }
 0xab3   :  { %1290 = vmax.xlane.f32.xlu1 %v1289_v51 }
 0xab9   :  { %v5296_v10 = vpop.f32.mrf.mxu3 }
 0xaba   :  { %v1292_v27 = vsel %vm578_vm8, %v5296_v10, -inf }
 0xabb   :  { %1293 = vmax.xlane.f32.xlu0 %v1292_v27 }
 0xac1   :  { %v5300_v1 = vpop.f32.mrf.mxu3 }
 0xac2   :  { %v1295_v14 = vsel %vm578_vm8, %v5300_v1, -inf }
 0xac3   :  { %1296 = vmax.xlane.f32.xlu2 %v1295_v14 }
 0xac9   :  { %v5304_v21 = vpop.f32.mrf.mxu3 }
 0xaca   :  { %v1298_v38 = vsel %vm578_vm8, %v5304_v21, -inf }
 0xacb   :  { %1299 = vmax.xlane.f32.xlu1 %v1298_v38 }
 0xad1   :  { %v5308_v56 = vpop.f32.mrf.mxu3 }
 0xad2   :  { %v1301_v3 = vsel %vm578_vm8, %v5308_v56, -inf }
 0xad3   :  { %1302 = vmax.xlane.f32.xlu0 %v1301_v3 }
 0xad9   :  { %v5312_v23 = vpop.f32.mrf.mxu3 }
 0xada   :  { %v1304_v47 = vsel %vm578_vm8, %v5312_v23, -inf }
 0xadb   :  { %1305 = vmax.xlane.f32.xlu2 %v1304_v47 }
 0xae1   :  { %v5316_v51 = vpop.f32.mrf.mxu3 }
 0xae2   :  { %v1307_v27 = vsel %vm578_vm8, %v5316_v51, -inf }
 0xae3   :  { %1308 = vmax.xlane.f32.xlu1 %v1307_v27 }
 0xae6   :  { %v1267_v49 = vpop.xlane.xlu0 %1266 }
 0xae9   :  { %v5320_v14 = vpop.f32.mrf.mxu3 }
 0xaea   :  { %v1310_v38 = vsel %vm578_vm8, %v5320_v14, -inf }
 0xaeb   :  { %1311 = vmax.xlane.f32.xlu0 %v1310_v38 }
 0xaee   :  { %v1270_v3 = vpop.xlane.xlu2 %1269 }
 0xaf6   :  { %v1273_v44 = vpop.xlane.xlu1 %1272 }
 0xaf7   :  { %v1313_v52 = vmax.f32 %v1267_v49, %v1273_v44 }
 0xafe   :  { %v1276_v5 = vpop.xlane.xlu0 %1275 }
 0xaff   :  { %v1314_v47 = vmax.f32 %v1270_v3, %v1276_v5 }
 0xb06   :  { %v1279_v11 = vpop.xlane.xlu2 %1278 }
 0xb07   :  { %v1315_v35 = vmax.f32 %v1313_v52, %v1279_v11 }
 0xb0e   :  { %v1282_v57 = vpop.xlane.xlu1 %1281 }
 0xb0f   :  { %v1316_v7 = vmax.f32 %v1314_v47, %v1282_v57 }
 0xb16   :  { %v1285_v30 = vpop.xlane.xlu0 %1284 }
 0xb17   :  { %v1317_v36 = vmax.f32 %v1315_v35, %v1285_v30 }
 0xb1e   :  { %v1288_v28 = vpop.xlane.xlu2 %1287 }
 0xb1f   :  { %v1318_v27 = vmax.f32 %v1316_v7, %v1288_v28 }
 0xb21   :  { %v1319_v18 = vmax.f32 %v1317_v36, %v1318_v27 }
 0xb23   :  { %v1320_v42 = vrot.slane %v1319_v18, 4 }
 0xb25   :  { %v1321_v34 = vmax.f32 %v1319_v18, %v1320_v42 }
 0xb27   :  { %v1322_v33 = vrot.slane %v1321_v34, 2 }
 0xb29   :  { %v1323_v31 = vmax.f32 %v1321_v34, %v1322_v33 }
 0xb2b   :  { %v1324_v38 = vrot.slane %v1323_v31, 1 }
 0xb2d   :  { %v1325_v8 = vmax.f32 %v1323_v31, %v1324_v38  ;;  %v1291_v38 = vpop.xlane.xlu1 %1290 }
 0xb2f   :  { %v1339_v4 = vsub.f32 %v5260_v59, %v1325_v8  ;;  %v1340_v15 = vsub.f32 %v5264_v43, %v1325_v8  ;;  %v1341_v49 = vsub.f32 %v5268_v16, %v1325_v8  ;;  %v1342_v57 = vsub.f32 %v5272_v20, %v1325_v8 }
 0xb30   :  { %v1343_v28 = vsub.f32 %v5276_v25, %v1325_v8  ;;  %v1344_v42 = vsub.f32 %v5280_v0, %v1325_v8  ;;  %v1345_v36 = vsub.f32 %v5284_v12, %v1325_v8  ;;  %v1346_v7 = vsub.f32 %v5288_v58, %v1325_v8 }
 0xb31   :  { %v1355_v5 = vmul.f32 1.442695, %v1339_v4  ;;  %v1357_v44 = vmul.f32 1.442695, %v1340_v15  ;;  %v1359_v52 = vmul.f32 1.442695, %v1341_v49  ;;  %v1294_v49 = vpop.xlane.xlu0 %1293 }
 0xb32   :  { %v1361_v33 = vmul.f32 1.442695, %v1342_v57  ;;  %v1363_v31 = vmul.f32 1.442695, %v1343_v28  ;;  %v1365_v34 = vmul.f32 1.442695, %v1344_v42 }
 0xb33   :  { %4066 = vpow2.f32 %v1355_v5  ;;  %v1367_v59 = vmul.f32 1.442695, %v1345_v36  ;;  %v1369_v43 = vmul.f32 1.442695, %v1346_v7 }
 0xb34   :  { %4068 = vpow2.f32 %v1357_v44 }
 0xb35   :  { %4070 = vpow2.f32 %v1359_v52 }
 0xb36   :  { %4072 = vpow2.f32 %v1361_v33  ;;  %v1297_v5 = vpop.xlane.xlu2 %1296 }
 0xb37   :  { %4074 = vpow2.f32 %v1363_v31  ;;  %v1326_v28 = vmax.f32 %v1291_v38, %v1297_v5 }
 0xb38   :  { %4076 = vpow2.f32 %v1365_v34 }
 0xb39   :  { %v5330_v18 = vpop.eup %4066  ;;  %4078 = vpow2.f32 %v1367_v59 }
 0xb3a   :  { %v5333_v4 = vpop.eup %4068  ;;  %v1387_v15 = vsel %vm578_vm8, %v5330_v18, 0.0  ;;  %4080 = vpow2.f32 %v1369_v43 }
 0xb3b   :  { %v5338_v35 = vpop.eup %4070  ;;  %1388 = vadd.xlane.f32.xlu2 %v1387_v15  ;;  %v1390_v30 = vsel %vm578_vm8, %v5333_v4, 0.0 }
 0xb3c   :  { %1391 = vadd.xlane.f32.xlu1 %v1390_v30  ;;  %v1393_v11 = vsel %vm578_vm8, %v5338_v35, 0.0  ;;  %v5344_v16 = vpop.eup %4072 }
 0xb3d   :  { %1394 = vadd.xlane.f32.xlu0 %v1393_v11  ;;  %v5346_v20 = vpop.eup %4074  ;;  %v1396_v8 = vsel %vm578_vm8, %v5344_v16, 0.0 }
 0xb3e   :  { %v5348_v25 = vpop.eup %4076  ;;  %v1399_v0 = vsel %vm578_vm8, %v5346_v20, 0.0  ;;  %v1300_v44 = vpop.xlane.xlu1 %1299 }
 0xb3f   :  { %v1402_v12 = vsel %vm578_vm8, %v5348_v25, 0.0  ;;  %v5356_v58 = vpop.eup %4078  ;;  %v1327_v42 = vmax.f32 %v1294_v49, %v1300_v44 }
 0xb40   :  { %v5358_v3 = vpop.eup %4080  ;;  %v1405_v47 = vsel %vm578_vm8, %v5356_v58, 0.0 }
 0xb41   :  { %v1408_v27 = vsel %vm578_vm8, %v5358_v3, 0.0 }
 0xb43   :  { %1397 = vadd.xlane.f32.xlu2 %v1396_v8 }
 0xb44   :  { %1400 = vadd.xlane.f32.xlu1 %v1399_v0 }
 0xb45   :  { %1403 = vadd.xlane.f32.xlu0 %v1402_v12 }
 0xb46   :  { %v1303_v52 = vpop.xlane.xlu0 %1302 }
 0xb47   :  { %v1328_v31 = vmax.f32 %v1326_v28, %v1303_v52 }
 0xb4b   :  { %1406 = vadd.xlane.f32.xlu2 %v1405_v47 }
 0xb4c   :  { %1409 = vadd.xlane.f32.xlu1 %v1408_v27 }
 0xb4e   :  { %v1306_v57 = vpop.xlane.xlu2 %1305 }
 0xb4f   :  { %v1329_v34 = vmax.f32 %v1327_v42, %v1306_v57 }
 0xb56   :  { %v1309_v33 = vpop.xlane.xlu1 %1308 }
 0xb57   :  { %v1330_v15 = vmax.f32 %v1328_v31, %v1309_v33 }
 0xb5e   :  { %v1312_v36 = vpop.xlane.xlu0 %1311 }
 0xb5f   :  { %v1331_v7 = vmax.f32 %v1329_v34, %v1312_v36 }
 0xb61   :  { %v1332_v30 = vmax.f32 %v1330_v15, %v1331_v7 }
 0xb63   :  { %v1333_v11 = vrot.slane %v1332_v30, 4 }
 0xb65   :  { %v1334_v59 = vmax.f32 %v1332_v30, %v1333_v11 }
 0xb67   :  { %v1335_v43 = vrot.slane %v1334_v59, 2 }
 0xb69   :  { %v1336_v8 = vmax.f32 %v1334_v59, %v1335_v43 }
 0xb6b   :  { %v1337_v0 = vrot.slane %v1336_v8, 1 }
 0xb6d   :  { %v1338_v12 = vmax.f32 %v1336_v8, %v1337_v0 }
 0xb6f   :  { %v1349_v47 = vsub.f32 %v5300_v1, %v1338_v12  ;;  %v1348_v27 = vsub.f32 %v5296_v10, %v1338_v12  ;;  %v1347_v38 = vsub.f32 %v5292_v39, %v1338_v12  ;;  %v1352_v52 = vsub.f32 %v5312_v23, %v1338_v12 }
 0xb70   :  { %v1351_v57 = vsub.f32 %v5308_v56, %v1338_v12  ;;  %v1350_v28 = vsub.f32 %v5304_v21, %v1338_v12  ;;  %v1354_v23 = vsub.f32 %v5320_v14, %v1338_v12  ;;  %v1353_v34 = vsub.f32 %v5316_v51, %v1338_v12 }
 0xb71   :  { %v1375_v49 = vmul.f32 1.442695, %v1349_v47  ;;  %v1373_v5 = vmul.f32 1.442695, %v1348_v27  ;;  %v1371_v44 = vmul.f32 1.442695, %v1347_v38 }
 0xb72   :  { %v1381_v42 = vmul.f32 1.442695, %v1352_v52  ;;  %v1379_v33 = vmul.f32 1.442695, %v1351_v57  ;;  %v1377_v31 = vmul.f32 1.442695, %v1350_v28 }
 0xb73   :  { %4082 = vpow2.f32 %v1375_v49  ;;  %v1385_v15 = vmul.f32 1.442695, %v1354_v23  ;;  %v1383_v30 = vmul.f32 1.442695, %v1353_v34 }
 0xb74   :  { %4084 = vpow2.f32 %v1373_v5 }
 0xb75   :  { %4086 = vpow2.f32 %v1371_v44 }
 0xb76   :  { %4088 = vpow2.f32 %v1381_v42 }
 0xb77   :  { %4090 = vpow2.f32 %v1379_v33 }
 0xb78   :  { %4092 = vpow2.f32 %v1377_v31 }
 0xb79   :  { %v5370_v1 = vpop.eup %4082  ;;  %4094 = vpow2.f32 %v1385_v15 }
 0xb7a   :  { %v5372_v10 = vpop.eup %4084  ;;  %v1417_v39 = vsel %vm578_vm8, %v5370_v1, 0.0  ;;  %4096 = vpow2.f32 %v1383_v30 }
 0xb7b   :  { %v5377_v56 = vpop.eup %4086  ;;  %1418 = vadd.xlane.f32.xlu1 %v1417_v39  ;;  %v1414_v21 = vsel %vm578_vm8, %v5372_v10, 0.0 }
 0xb7c   :  { %1415 = vadd.xlane.f32.xlu2 %v1414_v21  ;;  %v1411_v36 = vsel %vm578_vm8, %v5377_v56, 0.0  ;;  %v5384_v7 = vpop.eup %4088 }
 0xb7d   :  { %1412 = vadd.xlane.f32.xlu0 %v1411_v36  ;;  %v5386_v11 = vpop.eup %4090  ;;  %v1426_v59 = vsel %vm578_vm8, %v5384_v7, 0.0 }
 0xb7e   :  { %v5388_v14 = vpop.eup %4092  ;;  %v1423_v51 = vsel %vm578_vm8, %v5386_v11, 0.0 }
 0xb7f   :  { %v1420_v43 = vsel %vm578_vm8, %v5388_v14, 0.0  ;;  %v5396_v8 = vpop.eup %4094 }
 0xb80   :  { %v5398_v0 = vpop.eup %4096  ;;  %v1432_v12 = vsel %vm578_vm8, %v5396_v8, 0.0 }
 0xb81   :  { %v1429_v47 = vsel %vm578_vm8, %v5398_v0, 0.0 }
 0xb83   :  { %1427 = vadd.xlane.f32.xlu1 %v1426_v59 }
 0xb84   :  { %1424 = vadd.xlane.f32.xlu2 %v1423_v51 }
 0xb85   :  { %1421 = vadd.xlane.f32.xlu0 %v1420_v43 }
 0xb8c   :  { %1433 = vadd.xlane.f32.xlu2 %v1432_v12 }
 0xb8d   :  { %1430 = vadd.xlane.f32.xlu0 %v1429_v47 }
 0xbae   :  { %v1389_v27 = vpop.xlane.xlu2 %1388 }
 0xbaf   :  { %v1392_v38 = vpop.xlane.xlu1 %1391 }
 0xbb0   :  { %v1435_v49 = vadd.f32 %v1392_v38, %v1389_v27  ;;  %v1395_v5 = vpop.xlane.xlu0 %1394 }
 0xbb2   :  { %v1436_v44 = vadd.f32 %v1435_v49, %v1395_v5 }
 0xbb6   :  { %v1398_v52 = vpop.xlane.xlu2 %1397 }
 0xbb7   :  { %v1437_v57 = vadd.f32 %v1436_v44, %v1398_v52  ;;  %v1401_v28 = vpop.xlane.xlu1 %1400 }
 0xbb8   :  { %v1404_v33 = vpop.xlane.xlu0 %1403 }
 0xbb9   :  { %v1438_v42 = vadd.f32 %v1437_v57, %v1401_v28 }
 0xbbb   :  { %v1439_v31 = vadd.f32 %v1438_v42, %v1404_v33 }
 0xbbe   :  { %v1407_v39 = vpop.xlane.xlu2 %1406 }
 0xbbf   :  { %v1440_v23 = vadd.f32 %v1439_v31, %v1407_v39  ;;  %v1410_v21 = vpop.xlane.xlu1 %1409 }
 0xbc1   :  { %v1441_v34 = vadd.f32 %v1440_v23, %v1410_v21 }
 0xbc3   :  { %v1442_v36 = vrot.slane %v1441_v34, 4 }
 0xbc5   :  { %v1443_v15 = vadd.f32 %v1442_v36, %v1441_v34 }
 0xbc7   :  { %v1444_v30 = vrot.slane %v1443_v15, 2 }
 0xbc9   :  { %v1445_v59 = vadd.f32 %v1444_v30, %v1443_v15 }
 0xbcb   :  { %v1446_v51 = vrot.slane %v1445_v59, 1 }
 0xbcd   :  { %v1447_v43 = vadd.f32 %v1446_v51, %v1445_v59 }
 0xbcf   :  { %4098 = vrcp.f32 %v1447_v43 }
 0xbd5   :  { %v4099_v12 = vpop.eup %4098 }
 0xbd6   :  { %v1463_v47 = vmul.f32 %v4099_v12, %v5330_v18  ;;  %v1464_v27 = vmul.f32 %v4099_v12, %v5333_v4  ;;  %v1465_v38 = vmul.f32 %v4099_v12, %v5338_v35  ;;  %v1466_v18 = vmul.f32 %v4099_v12, %v5344_v16 }
 0xbd7   :  { %v1468_v28 = vmul.f32 %v4099_v12, %v5348_v25  ;;  %v1470_v30 = vmul.f32 %v4099_v12, %v5358_v3 }
 0xbd8   :  { %3845 = vmatmul.msk.f32.vlgmr.msra.gmra.mxu2 %vm578_vm8, %v1463_v47 }
 0xbd9   :  { %2380 = vmatpush.msra.mxu2 %v5121_v54 }
 0xbdb   :  { %2381 = vmatpush.msra.mxu2 %v5126_v55 }
 0xbdd   :  { %2382 = vmatpush.msra.mxu2 %v5132_v61  ;;  %v1467_v61 = vmul.f32 %v4099_v12, %v5346_v20  ;;  %v1469_v20 = vmul.f32 %v4099_v12, %v5356_v58 }
 0xbdf   :  { %2383 = vmatpush.msra.mxu2 %v5138_v19 }
 0xbe0   :  { %3846 = vmatmul.msk.f32.gmra.mxu2 %vm578_vm8, %v1464_v27 }
 0xbe8   :  { %3847 = vmatmul.msk.f32.gmra.mxu2 %vm578_vm8, %v1465_v38 }
 0xbee   :  { %v1419_v55 = vpop.xlane.xlu1 %1418 }
 0xbef   :  { %v1416_v49 = vpop.xlane.xlu2 %1415 }
 0xbf0   :  { %v1413_v5 = vpop.xlane.xlu0 %1412  ;;  %3848 = vmatmul.msk.f32.gmra.mxu2 %vm578_vm8, %v1466_v18 }
 0xbf1   :  { %v1448_v54 = vadd.f32 %v1416_v49, %v1413_v5 }
 0xbf3   :  { %v1449_v44 = vadd.f32 %v1448_v54, %v1419_v55 }
 0xbf6   :  { %v1428_v35 = vpop.xlane.xlu1 %1427 }
 0xbf7   :  { %v1425_v4 = vpop.xlane.xlu2 %1424 }
 0xbf8   :  { %v1422_v52 = vpop.xlane.xlu0 %1421  ;;  %3849 = vmatmul.msk.f32.gmra.mxu2 %vm578_vm8, %v1467_v61 }
 0xbf9   :  { %v1450_v19 = vadd.f32 %v1449_v44, %v1422_v52 }
 0xbfb   :  { %v1451_v57 = vadd.f32 %v1450_v19, %v1425_v4 }
 0xbfd   :  { %v1452_v42 = vadd.f32 %v1451_v57, %v1428_v35 }
 0xbff   :  { %v1434_v31 = vpop.xlane.xlu2 %1433 }
 0xc00   :  { %v1431_v16 = vpop.xlane.xlu0 %1430  ;;  %3850 = vmatmul.msk.f32.gmra.mxu2 %vm578_vm8, %v1468_v28 }
 0xc01   :  { %v1453_v33 = vadd.f32 %v1452_v42, %v1431_v16 }
 0xc03   :  { %v1454_v39 = vadd.f32 %v1453_v33, %v1434_v31 }
 0xc05   :  { %v1455_v23 = vrot.slane %v1454_v39, 4 }
 0xc07   :  { %v1456_v21 = vadd.f32 %v1455_v23, %v1454_v39 }
 0xc08   :  { %3851 = vmatmul.msk.f32.gmra.mxu2 %vm578_vm8, %v1469_v20 }
 0xc09   :  { %v1457_v34 = vrot.slane %v1456_v21, 2 }
 0xc0b   :  { %v1458_v36 = vadd.f32 %v1457_v34, %v1456_v21 }
 0xc0d   :  { %v1459_v15 = vrot.slane %v1458_v36, 1 }
 0xc0f   :  { %v1460_v59 = vadd.f32 %v1459_v15, %v1458_v36 }
 0xc10   :  { %3852 = vmatmul.msk.f32.gmra.mxu2 %vm578_vm8, %v1470_v30 }
 0xc11   :  { %4100 = vrcp.f32 %v1460_v59 }
 0xc17   :  { %v4101_v25 = vpop.eup %4100 }
 0xc18   :  { %v1471_v51 = vmul.f32 %v4101_v25, %v5377_v56  ;;  %v1472_v43 = vmul.f32 %v4101_v25, %v5372_v10  ;;  %v1473_v58 = vmul.f32 %v4101_v25, %v5370_v1  ;;  %v1474_v47 = vmul.f32 %v4101_v25, %v5388_v14 }
 0xc19   :  { %v1475_v3 = vmul.f32 %v4101_v25, %v5386_v11  ;;  %v1476_v56 = vmul.f32 %v4101_v25, %v5384_v7  ;;  %v1477_v10 = vmul.f32 %v4101_v25, %v5398_v0  ;;  %v1478_v1 = vmul.f32 %v4101_v25, %v5396_v8 }
 0xc1a   :  { %3853 = vmatmul.msk.f32.gmra.mxu2 %vm578_vm8, %v1471_v51 }
 0xc22   :  { %3854 = vmatmul.msk.f32.gmra.mxu2 %vm578_vm8, %v1472_v43 }
 0xc2a   :  { %3855 = vmatmul.msk.f32.gmra.mxu2 %vm578_vm8, %v1473_v58 }
 0xc32   :  { %3856 = vmatmul.msk.f32.gmra.mxu2 %vm578_vm8, %v1474_v47 }
 0xc3a   :  { %3857 = vmatmul.msk.f32.gmra.mxu2 %vm578_vm8, %v1475_v3 }
 0xc42   :  { %3858 = vmatmul.msk.f32.gmra.mxu2 %vm578_vm8, %v1476_v56 }
 0xc4a   :  { %3859 = vmatmul.msk.f32.gmra.mxu2 %vm578_vm8, %v1477_v10 }
 0xc52   :  { %3860 = vmatmul.msk.f32.gmra.mxu2 %vm578_vm8, %v1478_v1 }
 0xc5b   :  { %v1544_v12 = vpop.f32.mrf.mxu2 }
 0xc5c   :  { %v1592_v7 = vmul.f32 %v1544_v12, %v4670_v17 }
 0xc63   :  { %v1547_v14 = vpop.f32.mrf.mxu2 }
 0xc64   :  { %v1593_v49 = vmul.f32 %v1547_v14, %v4683_v22 }
 0xc66   :  { %v1608_v54 = vadd.f32 %v1593_v49, %v1592_v7 }
 0xc6b   :  { %v1550_v27 = vpop.f32.mrf.mxu2 }
 0xc6c   :  { %v1594_v5 = vmul.f32 %v1550_v27, %v4698_v24 }
 0xc6e   :  { %v1609_v61 = vadd.f32 %v1608_v54, %v1594_v5 }
 0xc73   :  { %v1553_v38 = vpop.f32.mrf.mxu2 }
 0xc74   :  { %v1595_v0 = vmul.f32 %v1553_v38, %v4702_v26 }
 0xc76   :  { %v1610_v44 = vadd.f32 %v1609_v61, %v1595_v0 }
 0xc7b   :  { %v1556_v18 = vpop.f32.mrf.mxu2 }
 0xc7c   :  { %v1596_v8 = vmul.f32 %v1556_v18, %v4706_v29 }
 0xc7e   :  { %v1611_v52 = vadd.f32 %v1610_v44, %v1596_v8 }
 0xc83   :  { %v1559_v11 = vpop.f32.mrf.mxu2 }
 0xc84   :  { %v1597_v4 = vmul.f32 %v1559_v11, %v4710_v32 }
 0xc86   :  { %v1612_v57 = vadd.f32 %v1611_v52, %v1597_v4 }
 0xc8b   :  { %v1562_v55 = vpop.f32.mrf.mxu2 }
 0xc8c   :  { %v1598_v19 = vmul.f32 %v1562_v55, %v4716_v37 }
 0xc8e   :  { %v1613_v28 = vadd.f32 %v1612_v57, %v1598_v19 }
 0xc93   :  { %v1565_v35 = vpop.f32.mrf.mxu2 }
 0xc94   :  { %v1599_v42 = vmul.f32 %v1565_v35, %v4720_v41 }
 0xc96   :  { %v1614_v16 = vadd.f32 %v1613_v28, %v1599_v42 }
 0xc98   :  { %v1615_v33 = vrot.slane %v1614_v16, 4 }
 0xc9a   :  { %v1616_v31 = vadd.f32 %v1615_v33, %v1614_v16 }
 0xc9c   :  { %v1617_v39 = vrot.slane %v1616_v31, 2 }
 0xc9d   :  { %v1568_v23 = vpop.f32.mrf.mxu2 }
 0xc9e   :  { %v1618_v20 = vadd.f32 %v1617_v39, %v1616_v31  ;;  %v1600_v43 = vmul.f32 %v1568_v23, %v4724_v40 }
 0xca0   :  { %v1619_v21 = vrot.slane %v1618_v20, 1 }
 0xca2   :  { %v1620_v34 = vadd.f32 %v1619_v21, %v1618_v20 }
 0xca4   :  { %1636 = vrot.lane.b32.xlu0 %v1620_v34, %s4406_s25 }
 0xca5   :  { %v1571_v36 = vpop.f32.mrf.mxu2 }
 0xca6   :  { %v1601_v51 = vmul.f32 %v1571_v36, %v4728_v46 }
 0xca8   :  { %v1621_v47 = vadd.f32 %v1601_v51, %v1600_v43  ;;  %v5509_v51 = vld [vmem:[%s6475_s10 + $0x50] sm:$0xff]  ;;  %v5515_v43 = vld [vmem:[%s6475_s10 + $0x48] sm:$0xff] }
 0xcac   :  { %1644 = vrot.lane.b32.xlu0 %v1620_v34, %s4404_s23 }
 0xcad   :  { %v1574_v15 = vpop.f32.mrf.mxu2 }
 0xcae   :  { %v1602_v58 = vmul.f32 %v1574_v15, %v4732_v50 }
 0xcb0   :  { %v1622_v10 = vadd.f32 %v1621_v47, %v1602_v58  ;;  %v5527_v58 = vld [vmem:[%s6475_s10 + $0x38] sm:$0xff]  ;;  %v5533_v47 = vld [vmem:[%s6475_s10 + $0x30] sm:$0xff] }
 0xcb5   :  { %v1577_v30 = vpop.f32.mrf.mxu2 }
 0xcb6   :  { %v1603_v3 = vmul.f32 %v1577_v30, %v4736_v53 }
 0xcb8   :  { %v1623_v12 = vadd.f32 %v1622_v10, %v1603_v3  ;;  %v5539_v3 = vld [vmem:[%s6475_s10 + $0x28] sm:$0xff]  ;;  %v5551_v10 = vld [vmem:[%s6475_s10 + $0x18] sm:$0xff] }
 0xcbd   :  { %v1580_v59 = vpop.f32.mrf.mxu2 }
 0xcbe   :  { %v1604_v1 = vmul.f32 %v1580_v59, %v4752_v60  ;;  %v5473_v59 = vld [vmem:[%s6475_s10 + $0x78] sm:$0xff] }
 0xcc0   :  { %v1624_v27 = vadd.f32 %v1623_v12, %v1604_v1  ;;  %v5557_v1 = vld [vmem:[%s6475_s10 + $0x10] sm:$0xff]  ;;  %v5563_v12 = vld [vmem:[%s6475_s10 + $0x8] sm:$0xff] }
 0xcc5   :  { %v1583_v25 = vpop.f32.mrf.mxu2 }
 0xcc6   :  { %v1605_v14 = vmul.f32 %v1583_v25, %v4756_v63  ;;  %v5503_v25 = vld [vmem:[%s6475_s10 + $0x58] sm:$0xff] }
 0xcc8   :  { %v1625_v18 = vadd.f32 %v1624_v27, %v1605_v14  ;;  %v5569_v14 = vld [vmem:[%s6475_s10] sm:$0xff]  ;;  %v5575_v27 = vld [vmem:[%s6467_s6 + $0x8] sm:$0xff] }
 0xccd   :  { %v1586_v56 = vpop.f32.mrf.mxu2 }
 0xcce   :  { %v1606_v38 = vmul.f32 %v1586_v56, %v4760_v2  ;;  %v5545_v56 = vld [vmem:[%s6475_s10 + $0x20] sm:$0xff] }
 0xcd0   :  { %v1626_v49 = vadd.f32 %v1625_v18, %v1606_v38  ;;  %v5581_v38 = vld [vmem:[%s6467_s6] sm:$0xff] }
 0xcd5   :  { %v1589_v11 = vpop.f32.mrf.mxu2 }
 0xcd6   :  { %v1607_v7 = vmul.f32 %v1589_v11, %v4764_v9 }
 0xcd8   :  { %v1627_v5 = vadd.f32 %v1626_v49, %v1607_v7 }
 0xcda   :  { %v1628_v54 = vrot.slane %v1627_v5, 4 }
 0xcdc   :  { %v1629_v0 = vadd.f32 %v1628_v54, %v1627_v5  ;;  %v6548_v5 = vld [vmem:[#allocation3_spill] sm:$0xff] }
 0xcde   :  { %v1630_v55 = vrot.slane %v1629_v0, 2 }
 0xce0   :  { %v1631_v61 = vadd.f32 %v1630_v55, %v1629_v0 }
 0xce2   :  { %v1632_v8 = vrot.slane %v1631_v61, 1 }
 0xce4   :  { %v1633_v44 = vadd.f32 %v1632_v8, %v1631_v61 }
 0xce6   :  { %1646 = vrot.lane.b32.xlu2 %v1633_v44, %s4404_s23  ;;  %1638 = vrot.lane.b32.xlu1 %v1633_v44, %s4406_s25 }
 0xcee   :  { %1652 = vrot.lane.b32.xlu2 %v1620_v34, %s4405_s1  ;;  %1654 = vrot.lane.b32.xlu1 %v1633_v44, %s4405_s1 }
 0xd16   :  { %v1637_v4 = vpop.permute.xlu0 %1636 }
 0xd17   :  { %v1642_v28 = vadd.f32 %v1637_v4, %v1620_v34  ;;  %v1703_v34 = vpop.f32.mrf.mxu0 }
 0xd1e   :  { %v1645_v35 = vpop.permute.xlu0 %1644 }
 0xd1f   :  { %v1650_v31 = vadd.f32 %v1645_v35, %v1642_v28 }
 0xd40   :  { %v1647_v52 = vpop.permute.xlu2 %1646 }
 0xd48   :  { %v1653_v16 = vpop.permute.xlu2 %1652 }
 0xd49   :  { %v1658_v23 = vadd.f32 %v1653_v16, %v1650_v31 }
 0xd58   :  { %v1639_v19 = vpop.permute.xlu1 %1638 }
 0xd59   :  { %v1643_v57 = vadd.f32 %v1639_v19, %v1633_v44 }
 0xd5b   :  { %v1651_v42 = vadd.f32 %v1647_v52, %v1643_v57 }
 0xd60   :  { %v1655_v33 = vpop.permute.xlu1 %1654 }
 0xd61   :  { %v1659_v39 = vadd.f32 %v1655_v33, %v1651_v42 }
 0xd63   :  { %v1662_v20 = vrot.slane %v1659_v39, 7 }
 0xd65   :  { %v1663_v21 = vsel %vm980_vm9, %v1662_v20, %v1658_v23 }
 0xd66   :  { %3861 = vmatmul.msk.f32.vlgmr.msrb.gmra.mxu3 %vm389_vm7, %v1663_v21  ;;  %v6549_v21 = vld [vmem:[#allocation20_spill] sm:$0xff] }
 0xd67   :  { %2448 = vmatpush.msrb.mxu3 %v5170_v13  ;;  %v4349_v13 = vld [vmem:[%s6476_s11] sm:$0xf] }
 0xd69   :  { %2449 = vmatpush.msrb.mxu3 %v5182_v62  ;;  %v5483_v62 = vld [vmem:[%s6475_s10 + $0x70] sm:$0xff] }
 0xd6b   :  { %2450 = vmatpush.msrb.mxu3 %v5194_v6  ;;  %v5489_v6 = vld [vmem:[%s6475_s10 + $0x68] sm:$0xff] }
 0xd6d   :  { %2451 = vmatpush.msrb.mxu3 %v5206_v45  ;;  %v5495_v45 = vld [vmem:[%s6475_s10 + $0x60] sm:$0xff] }
 0xde9   :  { %v1683_v36 = vpop.f32.mrf.mxu3 }
 0xdea   :  { %v1704_v15 = vadd.f32 %v1703_v34, %v1683_v36  ;;  %v1799_v34 = vrot.slane %v6549_v21, 6  ;;  %v6559_v21 = vld [vmem:[#allocation13_spill] sm:$0xff] }
 0xdec   :  { %4102 = vtanh.f32 %v1704_v15 }
 0xdf2   :  { %v4103_v30 = vpop.eup %4102 }
 0xdf3   :  { %3863 = vmatmul.msk.f32.vlgmr.msra.gmra.mxu1 %vm335_vm0, %v4103_v30  ;;  %3864 = vmatmul.msk.f32.vlgmr.msrb.gmra.mxu0 %vm335_vm0, %v4103_v30 }
 0xdf4   :  { %1882 = vmatpush.msra.mxu1 %v5473_v59  ;;  %3868 = vmatpush.msk.msrb.mxu0 %vm124_vm1, %v4349_v13 }
 0xdf6   :  { %1883 = vmatpush.msra.mxu1 %v5483_v62 }
 0xdf8   :  { %1884 = vmatpush.msra.mxu1 %v5489_v6 }
 0xdfa   :  { %1885 = vmatpush.msra.mxu1 %v5495_v45 }
 0xdfb   :  { %3865 = vmatmul.msk.f32.vlgmr.msrb.gmra.mxu1 %vm389_vm7, %v5228_v48  ;;  %v5521_v48 = vld [vmem:[%s6475_s10 + $0x40] sm:$0xff] }
 0xdfc   :  { %1886 = vmatpush.msra.mxu1 %v5503_v25 }
 0xdfe   :  { %1887 = vmatpush.msra.mxu1 %v5509_v51 }
 0xe00   :  { %1888 = vmatpush.msra.mxu1 %v5515_v43 }
 0xe02   :  { %1889 = vmatpush.msra.mxu1 %v5521_v48 }
 0xe04   :  { %1890 = vmatpush.msra.mxu1 %v5527_v58 }
 0xe06   :  { %1891 = vmatpush.msra.mxu1 %v5533_v47 }
 0xe08   :  { %1892 = vmatpush.msra.mxu1 %v5539_v3 }
 0xe0a   :  { %1893 = vmatpush.msra.mxu1 %v5545_v56 }
 0xe0c   :  { %1894 = vmatpush.msra.mxu1 %v5551_v10 }
 0xe0e   :  { %1895 = vmatpush.msra.mxu1 %v5557_v1 }
 0xe10   :  { %1896 = vmatpush.msra.mxu1 %v5563_v12 }
 0xe12   :  { %1897 = vmatpush.msra.mxu1 %v5569_v14 }
 0xe14   :  { %3108 = vmatpush.msrb.mxu1 %v5575_v27 }
 0xe16   :  { %3109 = vmatpush.msrb.mxu1 %v5581_v38 }
 0xe70   :  { %v5584_v18 = vpop.f32.mrf.mxu1  ;;  %v1747_v11 = vpop.f32.mrf.mxu0 }
 0xe71   :  { %6547 = vst [vmem:[#allocation22_spill] sm:$0xff] %v5584_v18  ;;  %v1751_v49 = vrot.slane %v1747_v11, 4 }
 0xe73   :  { %v1753_v54 = vadd.f32 %v1751_v49, %v6548_v5 }
 0xe78   :  { %v1771_v7 = vpop.f32.mrf.mxu1 }
 0xe79   :  { %v1775_v0 = vrot.slane %v1771_v7, 4 }
 0xe7b   :  { %v1777_v55 = vadd.f32 %v1775_v0, %v1753_v54 }
 0xe7d   :  { %4104 = vtanh.f32 %v1777_v55  ;;  %v3866_v8 = vmul.f32 -1.442695, %v1777_v55  ;;  %v6554_v55 = vld [vmem:[#allocation8_spill] sm:$0xff] }
 0xe7f   :  { %4106 = vpow2.f32 %v3866_v8 }
 0xe83   :  { %v4105_v61 = vpop.eup %4104 }
 0xe84   :  { %1803 = vrot.lane.b32.xlu0 %v4105_v61, %s4404_s23 }
 0xe85   :  { %v4107_v44 = vpop.eup %4106 }
 0xe86   :  { %v1781_v4 = vadd.f32 1.0, %v4107_v44  ;;  %v6555_v44 = vld [vmem:[#allocation9_spill] sm:$0xff] }
 0xe88   :  { %4108 = vrcp.f32 %v1781_v4  ;;  %v1793_v42 = vand.u32 2147483648, %v1781_v4  ;;  %vm1787_vm15 = vweird.f32 %v1781_v4  ;;  %v1791_v16 = vand.u32 2147483647, %v1781_v4 }
 0xe8a   :  { %v1794_v31 = vor.u32 1.1754944e-38, %v1793_v42  ;;  %vm1792_vm3 = vcmp.eq.f32.partialorder %v1791_v16, 8.507059e+37  ;;  %v6557_v42 = vld [vmem:[#allocation11_spill] sm:$0xff] }
 0xe8e   :  { %v4109_v52 = vpop.eup %4108 }
 0xe8f   :  { %v1783_v19 = vmul.f32 %v4109_v52, %v1781_v4  ;;  %vm1788_vm14 = vweird.f32 %v4109_v52 }
 0xe90   :  { %vm1789_vm2 = vmor %vm1787_vm15, %vm1788_vm14  ;;  %vm3787_vm14 = vcmask 392192   ;;  %vm3791_vm15 = vcmask 785408  }
 0xe91   :  { %v1784_v57 = vsub.f32 1.0, %v1783_v19  ;;  %v6556_v19 = vld [vmem:[#allocation10_spill] sm:$0xff] }
 0xe93   :  { %v1785_v35 = vmul.f32 %v4109_v52, %v1784_v57 }
 0xe95   :  { %v1786_v28 = vadd.f32 %v4109_v52, %v1785_v35 }
 0xe97   :  { %v1790_v33 = vsel %vm1789_vm2, %v4109_v52, %v1786_v28 }
 0xe98   :  { %v1795_v23 = vsel %vm1792_vm3, %v1794_v31, %v1790_v33 }
 0xe99   :  { %v1801_v36 = vmul.f32 %v1799_v34, %v1795_v23 }
 0xef6   :  { %v1804_v39 = vpop.permute.xlu0 %1803 }
 0xef7   :  { %v1806_v20 = vmul.f32 %v1804_v39, %v1795_v23  ;;  %v6558_v39 = vld [vmem:[#allocation12_spill] sm:$0xff] }
 0xef9   :  { %1808 = vrot.lane.b32.xlu1 %v1806_v20, %s4405_s1 }
 0xf6b   :  { %v1809_v15 = vpop.permute.xlu1 %1808 }
 0xf6c   :  { %v5590_v30 = vadd.f32 %v1809_v15, %v1801_v36  ;;  %v6560_v15 = vld [vmem:[#allocation14_spill] sm:$0xff] }
 0xf6e   :  { %4110 = vtanh.f32 %v5590_v30 }
 0xf74   :  { %v4111_v13 = vpop.eup %4110 }
 0xf75   :  { %1814 = vrot.lane.b32.xlu2 %v4111_v13, %s4404_s23 }
 0xfcf   :  { %v1815_v11 = vpop.permute.xlu2 %1814 }
 0xfd0   :  { %v1817_v49 = vmul.f32 %v1815_v11, %v1795_v23 }
 0xfd2   :  { %v1819_v7 = vrot.slane %v1817_v49, 4  ;;  %v6561_v49 = vld [vmem:[#allocation15_spill] sm:$0xff] }
 0xfd4   :  { %1820 = vrot.lane.b32.xlu0 %v1819_v7, %s4405_s1 }
0x1046   :  { %v5595_v54 = vpop.permute.xlu0 %1820 }
0x1047   :  { %3867 = vmatmul.msk.f32.vlgmr.msra.gmra.mxu0 %vm389_vm7, %v5595_v54 }
0x1048   :  { %2564 = vmatpush.msra.mxu0 %v5473_v59 }
0x104a   :  { %2565 = vmatpush.msra.mxu0 %v5483_v62 }
0x104c   :  { %2566 = vmatpush.msra.mxu0 %v5489_v6  ;;  %v6550_v6 = vld [vmem:[#allocation4_spill] sm:$0xff] }
0x104e   :  { %2567 = vmatpush.msra.mxu0 %v5495_v45 }
0x1050   :  { %2568 = vmatpush.msra.mxu0 %v5503_v25  ;;  %v6551_v25 = vld [vmem:[#allocation5_spill] sm:$0xff] }
0x1052   :  { %2569 = vmatpush.msra.mxu0 %v5509_v51 }
0x1054   :  { %2570 = vmatpush.msra.mxu0 %v5515_v43 }
0x1056   :  { %2571 = vmatpush.msra.mxu0 %v5521_v48  ;;  %v5620_v48 = vld [vmem:[%s6474_s9 + $0x18] sm:$0xff] }
0x1058   :  { %2572 = vmatpush.msra.mxu0 %v5527_v58  ;;  %v5626_v58 = vld [vmem:[%s6474_s9 + $0x10] sm:$0xff] }
0x105a   :  { %2573 = vmatpush.msra.mxu0 %v5533_v47  ;;  %v6552_v47 = vld [vmem:[#allocation6_spill] sm:$0xff] }
0x105c   :  { %2574 = vmatpush.msra.mxu0 %v5539_v3 }
0x105e   :  { %2575 = vmatpush.msra.mxu0 %v5545_v56  ;;  %v5633_v56 = vld [vmem:[%s6474_s9 + $0x8] sm:$0xff] }
0x1060   :  { %2576 = vmatpush.msra.mxu0 %v5551_v10 }
0x1062   :  { %2577 = vmatpush.msra.mxu0 %v5557_v1  ;;  %v5639_v1 = vld [vmem:[%s6474_s9] sm:$0xff] }
0x1064   :  { %2578 = vmatpush.msra.mxu0 %v5563_v12  ;;  %v6553_v12 = vld [vmem:[#allocation7_spill] sm:$0xff] }
0x1066   :  { %2579 = vmatpush.msra.mxu0 %v5569_v14 }
0x10c4   :  { %v1841_v59 = vpop.f32.mrf.mxu0 }
0x10c5   :  { %v1846_v62 = vperm.slane %v1841_v59, 0  ;;  %v1845_v28 = vrot.slane %v1841_v59, 1 }
0x10c7   :  { %v1850_v45 = vadd.f32 %v1846_v62, %v6550_v6  ;;  %v1851_v51 = vadd.f32 %v1846_v62, %v6551_v25  ;;  %v1852_v3 = vadd.f32 %v1846_v62, %v6552_v47  ;;  %v1853_v14 = vadd.f32 %v1846_v62, %v6553_v12 }
0x10c8   :  { %v1854_v61 = vadd.f32 %v1846_v62, %v6554_v55  ;;  %v1855_v4 = vadd.f32 %v1846_v62, %v6555_v44  ;;  %v1856_v57 = vadd.f32 %v1846_v62, %v6556_v19  ;;  %v1857_v16 = vadd.f32 %v1846_v62, %v6557_v42  ;;  %v6562_v62 = vld [vmem:[#allocation16_spill] sm:$0xff] }
0x10c9   :  { %4112 = vtanh.f32 %v1850_v45  ;;  %v1847_v31 = vperm.slane %v1845_v28, 0 }
0x10ca   :  { %4114 = vtanh.f32 %v1851_v51 }
0x10cb   :  { %4116 = vtanh.f32 %v1852_v3  ;;  %v1858_v23 = vadd.f32 %v1847_v31, %v6558_v39  ;;  %v1859_v34 = vadd.f32 %v1847_v31, %v6559_v21  ;;  %v1860_v13 = vadd.f32 %v1847_v31, %v6560_v15 }
0x10cc   :  { %4118 = vtanh.f32 %v1853_v14  ;;  %v1861_v7 = vadd.f32 %v1847_v31, %v6561_v49  ;;  %v1862_v45 = vadd.f32 %v1847_v31, %v6562_v62  ;;  %v6564_v14 = vld [vmem:[#allocation18_spill] sm:$0xff] }
0x10cd   :  { %4120 = vtanh.f32 %v1854_v61 }
0x10ce   :  { %4122 = vtanh.f32 %v1855_v4 }
0x10cf   :  { %v4113_v43 = vpop.eup %4112  ;;  %4124 = vtanh.f32 %v1856_v57 }
0x10d0   :  { %1898 = vmatmul.f32.vlgmr.msra.gmra.mxu1 %v4113_v43  ;;  %v4115_v10 = vpop.eup %4114  ;;  %4126 = vtanh.f32 %v1857_v16  ;;  %v6563_v43 = vld [vmem:[#allocation17_spill] sm:$0xff] }
0x10d1   :  { %3193 = vmatpush.msra.mxu1 %v5620_v48  ;;  %v4117_v0 = vpop.eup %4116  ;;  %4128 = vtanh.f32 %v1858_v23  ;;  %v1863_v3 = vadd.f32 %v1847_v31, %v6563_v43 }
0x10d2   :  { %v4119_v8 = vpop.eup %4118  ;;  %4130 = vtanh.f32 %v1859_v34 }
0x10d3   :  { %3194 = vmatpush.msra.mxu1 %v5626_v58  ;;  %v4121_v52 = vpop.eup %4120  ;;  %4132 = vtanh.f32 %v1860_v13 }
0x10d4   :  { %v4123_v35 = vpop.eup %4122  ;;  %4134 = vtanh.f32 %v1861_v7 }
0x10d5   :  { %3195 = vmatpush.msra.mxu1 %v5633_v56  ;;  %v4125_v33 = vpop.eup %4124  ;;  %4136 = vtanh.f32 %v1862_v45 }
0x10d6   :  { %v4127_v20 = vpop.eup %4126  ;;  %4138 = vtanh.f32 %v1863_v3 }
0x10d7   :  { %3196 = vmatpush.msra.mxu1 %v5639_v1  ;;  %v4129_v36 = vpop.eup %4128 }
0x10d8   :  { %1901 = vmatmul.f32.gmra.mxu1 %v4115_v10  ;;  %v4131_v11 = vpop.eup %4130 }
0x10d9   :  { %v4133_v59 = vpop.eup %4132 }
0x10da   :  { %v4135_v51 = vpop.eup %4134 }
0x10db   :  { %v4137_v10 = vpop.eup %4136 }
0x10dc   :  { %v4139_v61 = vpop.eup %4138 }
0x10e0   :  { %1904 = vmatmul.f32.gmra.mxu1 %v4117_v0  ;;  %v1864_v0 = vadd.f32 %v1847_v31, %v6564_v14 }
0x10e2   :  { %4140 = vtanh.f32 %v1864_v0 }
0x10e8   :  { %1907 = vmatmul.f32.gmra.mxu1 %v4119_v8  ;;  %v6565_v8 = vld [vmem:[#allocation19_spill] sm:$0xff] }
0x10e9   :  { %v1865_v4 = vadd.f32 %v1847_v31, %v6565_v8 }
0x10eb   :  { %4142 = vtanh.f32 %v1865_v4 }
0x10f0   :  { %1910 = vmatmul.f32.gmra.mxu1 %v4121_v52  ;;  %v4141_v52 = vpop.eup %4140 }
0x10f1   :  { %v4143_v57 = vpop.eup %4142 }
0x10f8   :  { %1913 = vmatmul.f32.gmra.mxu1 %v4123_v35 }
0x1100   :  { %1916 = vmatmul.f32.gmra.mxu1 %v4125_v33 }
0x1108   :  { %1919 = vmatmul.f32.gmra.mxu1 %v4127_v20 }
0x1110   :  { %1922 = vmatmul.f32.gmra.mxu1 %v4129_v36 }
0x1118   :  { %1925 = vmatmul.f32.gmra.mxu1 %v4131_v11 }
0x1120   :  { %1928 = vmatmul.f32.gmra.mxu1 %v4133_v59 }
0x1128   :  { %1931 = vmatmul.f32.gmra.mxu1 %v4135_v51 }
0x1130   :  { %1934 = vmatmul.f32.gmra.mxu1 %v4137_v10 }
0x1138   :  { %1937 = vmatmul.f32.gmra.mxu1 %v4139_v61 }
0x1140   :  { %1940 = vmatmul.f32.gmra.mxu1 %v4141_v52 }
0x1148   :  { %1943 = vmatmul.f32.gmra.mxu1 %v4143_v57 }
0x114d   :  { %v5655_v35 = vpop.f32.mrf.mxu1 }
0x114e   :  { %v1947_v28 = vsel %vm578_vm8, %v5655_v35, -inf }
0x114f   :  { %1948 = vmax.xlane.f32.xlu1 %v1947_v28 }
0x1155   :  { %v5659_v16 = vpop.f32.mrf.mxu1 }
0x1156   :  { %v1950_v33 = vsel %vm578_vm8, %v5659_v16, -inf }
0x1157   :  { %1951 = vmax.xlane.f32.xlu2 %v1950_v33 }
0x115d   :  { %v5663_v23 = vpop.f32.mrf.mxu1 }
0x115e   :  { %v1953_v31 = vsel %vm578_vm8, %v5663_v23, -inf }
0x115f   :  { %1954 = vmax.xlane.f32.xlu0 %v1953_v31 }
0x1165   :  { %v5667_v20 = vpop.f32.mrf.mxu1 }
0x1166   :  { %v1956_v34 = vsel %vm578_vm8, %v5667_v20, -inf }
0x1167   :  { %1957 = vmax.xlane.f32.xlu1 %v1956_v34 }
0x116d   :  { %v5671_v36 = vpop.f32.mrf.mxu1 }
0x116e   :  { %v1959_v13 = vsel %vm578_vm8, %v5671_v36, -inf }
0x116f   :  { %1960 = vmax.xlane.f32.xlu2 %v1959_v13 }
0x1175   :  { %v5675_v11 = vpop.f32.mrf.mxu1 }
0x1176   :  { %v1962_v7 = vsel %vm578_vm8, %v5675_v11, -inf }
0x1177   :  { %1963 = vmax.xlane.f32.xlu0 %v1962_v7 }
0x117d   :  { %v5679_v59 = vpop.f32.mrf.mxu1 }
0x117e   :  { %v1965_v45 = vsel %vm578_vm8, %v5679_v59, -inf }
0x117f   :  { %1966 = vmax.xlane.f32.xlu1 %v1965_v45 }
0x1185   :  { %v5683_v51 = vpop.f32.mrf.mxu1 }
0x1186   :  { %v1968_v3 = vsel %vm578_vm8, %v5683_v51, -inf }
0x1187   :  { %1969 = vmax.xlane.f32.xlu2 %v1968_v3 }
0x118d   :  { %v5687_v10 = vpop.f32.mrf.mxu1 }
0x118e   :  { %v1971_v0 = vsel %vm578_vm8, %v5687_v10, -inf }
0x118f   :  { %1972 = vmax.xlane.f32.xlu0 %v1971_v0 }
0x1195   :  { %v5691_v61 = vpop.f32.mrf.mxu1 }
0x1196   :  { %v1974_v4 = vsel %vm578_vm8, %v5691_v61, -inf }
0x1197   :  { %1975 = vmax.xlane.f32.xlu1 %v1974_v4 }
0x119d   :  { %v5695_v52 = vpop.f32.mrf.mxu1 }
0x119e   :  { %v1977_v57 = vsel %vm578_vm8, %v5695_v52, -inf }
0x119f   :  { %1978 = vmax.xlane.f32.xlu2 %v1977_v57 }
0x11a5   :  { %v5699_v28 = vpop.f32.mrf.mxu1 }
0x11a6   :  { %v1980_v33 = vsel %vm578_vm8, %v5699_v28, -inf }
0x11a7   :  { %1981 = vmax.xlane.f32.xlu0 %v1980_v33 }
0x11ad   :  { %v5703_v31 = vpop.f32.mrf.mxu1 }
0x11ae   :  { %v1983_v34 = vsel %vm578_vm8, %v5703_v31, -inf }
0x11af   :  { %1984 = vmax.xlane.f32.xlu1 %v1983_v34 }
0x11b5   :  { %v5707_v13 = vpop.f32.mrf.mxu1 }
0x11b6   :  { %v1986_v7 = vsel %vm578_vm8, %v5707_v13, -inf }
0x11b7   :  { %1987 = vmax.xlane.f32.xlu2 %v1986_v7 }
0x11bd   :  { %v5711_v45 = vpop.f32.mrf.mxu1 }
0x11be   :  { %v1989_v3 = vsel %vm578_vm8, %v5711_v45, -inf }
0x11bf   :  { %1990 = vmax.xlane.f32.xlu0 %v1989_v3 }
0x11c2   :  { %v1949_v57 = vpop.xlane.xlu1 %1948 }
0x11c5   :  { %v5715_v0 = vpop.f32.mrf.mxu1 }
0x11c6   :  { %v1992_v4 = vsel %vm578_vm8, %v5715_v0, -inf }
0x11c7   :  { %1993 = vmax.xlane.f32.xlu1 %v1992_v4 }
0x11ca   :  { %v1952_v33 = vpop.xlane.xlu2 %1951 }
0x11d2   :  { %v1955_v34 = vpop.xlane.xlu0 %1954 }
0x11d3   :  { %v1995_v43 = vmax.f32 %v1949_v57, %v1955_v34 }
0x11da   :  { %v1958_v18 = vpop.xlane.xlu1 %1957 }
0x11db   :  { %v1996_v7 = vmax.f32 %v1952_v33, %v1958_v18 }
0x11e2   :  { %v1961_v8 = vpop.xlane.xlu2 %1960 }
0x11e3   :  { %v1997_v49 = vmax.f32 %v1995_v43, %v1961_v8 }
0x11ea   :  { %v1964_v14 = vpop.xlane.xlu0 %1963 }
0x11eb   :  { %v1998_v15 = vmax.f32 %v1996_v7, %v1964_v14 }
0x11f2   :  { %v1967_v62 = vpop.xlane.xlu1 %1966 }
0x11f3   :  { %v1999_v39 = vmax.f32 %v1997_v49, %v1967_v62 }
0x11fa   :  { %v1970_v21 = vpop.xlane.xlu2 %1969 }
0x11fb   :  { %v2000_v3 = vmax.f32 %v1998_v15, %v1970_v21 }
0x11fd   :  { %v2001_v42 = vmax.f32 %v1999_v39, %v2000_v3 }
0x11ff   :  { %v2002_v19 = vrot.slane %v2001_v42, 4 }
0x1201   :  { %v2003_v44 = vmax.f32 %v2001_v42, %v2002_v19 }
0x1203   :  { %v2004_v55 = vrot.slane %v2003_v44, 2 }
0x1205   :  { %v2005_v12 = vmax.f32 %v2003_v44, %v2004_v55 }
0x1207   :  { %v2006_v4 = vrot.slane %v2005_v12, 1 }
0x1209   :  { %v2007_v47 = vmax.f32 %v2005_v12, %v2006_v4  ;;  %v1973_v4 = vpop.xlane.xlu0 %1972 }
0x120b   :  { %v2021_v25 = vsub.f32 %v5655_v35, %v2007_v47  ;;  %v2022_v6 = vsub.f32 %v5659_v16, %v2007_v47  ;;  %v2023_v57 = vsub.f32 %v5663_v23, %v2007_v47  ;;  %v2024_v14 = vsub.f32 %v5667_v20, %v2007_v47 }
0x120c   :  { %v2025_v21 = vsub.f32 %v5671_v36, %v2007_v47  ;;  %v2026_v19 = vsub.f32 %v5675_v11, %v2007_v47  ;;  %v2027_v39 = vsub.f32 %v5679_v59, %v2007_v47  ;;  %v2028_v15 = vsub.f32 %v5683_v51, %v2007_v47 }
0x120d   :  { %v2037_v18 = vmul.f32 1.442695, %v2021_v25  ;;  %v2039_v33 = vmul.f32 1.442695, %v2022_v6  ;;  %v2041_v43 = vmul.f32 1.442695, %v2023_v57  ;;  %v1976_v57 = vpop.xlane.xlu1 %1975 }
0x120e   :  { %v2043_v55 = vmul.f32 1.442695, %v2024_v14  ;;  %v2045_v12 = vmul.f32 1.442695, %v2025_v21  ;;  %v2047_v44 = vmul.f32 1.442695, %v2026_v19 }
0x120f   :  { %4144 = vpow2.f32 %v2037_v18  ;;  %v2049_v35 = vmul.f32 1.442695, %v2027_v39  ;;  %v2051_v16 = vmul.f32 1.442695, %v2028_v15 }
0x1210   :  { %4146 = vpow2.f32 %v2039_v33 }
0x1211   :  { %4148 = vpow2.f32 %v2041_v43 }
0x1212   :  { %4150 = vpow2.f32 %v2043_v55  ;;  %v1979_v18 = vpop.xlane.xlu2 %1978 }
0x1213   :  { %4152 = vpow2.f32 %v2045_v12  ;;  %v2008_v21 = vmax.f32 %v1973_v4, %v1979_v18 }
0x1214   :  { %4154 = vpow2.f32 %v2047_v44 }
0x1215   :  { %v5725_v42 = vpop.eup %4144  ;;  %4156 = vpow2.f32 %v2049_v35 }
0x1216   :  { %v5728_v25 = vpop.eup %4146  ;;  %v2069_v6 = vsel %vm578_vm8, %v5725_v42, 0.0  ;;  %4158 = vpow2.f32 %v2051_v16 }
0x1217   :  { %v5733_v49 = vpop.eup %4148  ;;  %2070 = vadd.xlane.f32.xlu2 %v2069_v6  ;;  %v2072_v62 = vsel %vm578_vm8, %v5728_v25, 0.0 }
0x1218   :  { %2073 = vadd.xlane.f32.xlu0 %v2072_v62  ;;  %v2075_v8 = vsel %vm578_vm8, %v5733_v49, 0.0  ;;  %v5739_v23 = vpop.eup %4150 }
0x1219   :  { %2076 = vadd.xlane.f32.xlu1 %v2075_v8  ;;  %v5741_v20 = vpop.eup %4152  ;;  %v2078_v47 = vsel %vm578_vm8, %v5739_v23, 0.0 }
0x121a   :  { %v5743_v36 = vpop.eup %4154  ;;  %v2081_v11 = vsel %vm578_vm8, %v5741_v20, 0.0  ;;  %v1982_v33 = vpop.xlane.xlu0 %1981 }
0x121b   :  { %v2084_v59 = vsel %vm578_vm8, %v5743_v36, 0.0  ;;  %v5751_v51 = vpop.eup %4156  ;;  %v2009_v19 = vmax.f32 %v1976_v57, %v1982_v33 }
0x121c   :  { %v5753_v34 = vpop.eup %4158  ;;  %v2087_v7 = vsel %vm578_vm8, %v5751_v51, 0.0 }
0x121d   :  { %v2090_v3 = vsel %vm578_vm8, %v5753_v34, 0.0 }
0x121f   :  { %2079 = vadd.xlane.f32.xlu2 %v2078_v47 }
0x1220   :  { %2082 = vadd.xlane.f32.xlu0 %v2081_v11 }
0x1221   :  { %2085 = vadd.xlane.f32.xlu1 %v2084_v59 }
0x1222   :  { %v1985_v43 = vpop.xlane.xlu1 %1984 }
0x1223   :  { %v2010_v12 = vmax.f32 %v2008_v21, %v1985_v43 }
0x1227   :  { %2088 = vadd.xlane.f32.xlu2 %v2087_v7 }
0x1228   :  { %2091 = vadd.xlane.f32.xlu0 %v2090_v3 }
0x122a   :  { %v1988_v14 = vpop.xlane.xlu2 %1987 }
0x122b   :  { %v2011_v44 = vmax.f32 %v2009_v19, %v1988_v14 }
0x1232   :  { %v1991_v55 = vpop.xlane.xlu0 %1990 }
0x1233   :  { %v2012_v6 = vmax.f32 %v2010_v12, %v1991_v55 }
0x123a   :  { %v1994_v39 = vpop.xlane.xlu1 %1993 }
0x123b   :  { %v2013_v15 = vmax.f32 %v2011_v44, %v1994_v39 }
0x123d   :  { %v2014_v62 = vmax.f32 %v2012_v6, %v2013_v15 }
0x123f   :  { %v2015_v8 = vrot.slane %v2014_v62, 4 }
0x1241   :  { %v2016_v35 = vmax.f32 %v2014_v62, %v2015_v8 }
0x1243   :  { %v2017_v16 = vrot.slane %v2016_v35, 2 }
0x1245   :  { %v2018_v47 = vmax.f32 %v2016_v35, %v2017_v16 }
0x1247   :  { %v2019_v11 = vrot.slane %v2018_v47, 1 }
0x1249   :  { %v2020_v59 = vmax.f32 %v2018_v47, %v2019_v11 }
0x124b   :  { %v2031_v7 = vsub.f32 %v5695_v52, %v2020_v59  ;;  %v2030_v3 = vsub.f32 %v5691_v61, %v2020_v59  ;;  %v2029_v4 = vsub.f32 %v5687_v10, %v2020_v59  ;;  %v2034_v43 = vsub.f32 %v5707_v13, %v2020_v59 }
0x124c   :  { %v2033_v14 = vsub.f32 %v5703_v31, %v2020_v59  ;;  %v2032_v21 = vsub.f32 %v5699_v28, %v2020_v59  ;;  %v2036_v13 = vsub.f32 %v5715_v0, %v2020_v59  ;;  %v2035_v44 = vsub.f32 %v5711_v45, %v2020_v59 }
0x124d   :  { %v2057_v57 = vmul.f32 1.442695, %v2031_v7  ;;  %v2055_v18 = vmul.f32 1.442695, %v2030_v3  ;;  %v2053_v33 = vmul.f32 1.442695, %v2029_v4 }
0x124e   :  { %v2063_v19 = vmul.f32 1.442695, %v2034_v43  ;;  %v2061_v55 = vmul.f32 1.442695, %v2033_v14  ;;  %v2059_v12 = vmul.f32 1.442695, %v2032_v21 }
0x124f   :  { %4160 = vpow2.f32 %v2057_v57  ;;  %v2067_v6 = vmul.f32 1.442695, %v2036_v13  ;;  %v2065_v62 = vmul.f32 1.442695, %v2035_v44 }
0x1250   :  { %4162 = vpow2.f32 %v2055_v18 }
0x1251   :  { %4164 = vpow2.f32 %v2053_v33 }
0x1252   :  { %4166 = vpow2.f32 %v2063_v19 }
0x1253   :  { %4168 = vpow2.f32 %v2061_v55 }
0x1254   :  { %4170 = vpow2.f32 %v2059_v12 }
0x1255   :  { %v5765_v52 = vpop.eup %4160  ;;  %4172 = vpow2.f32 %v2067_v6 }
0x1256   :  { %v5767_v61 = vpop.eup %4162  ;;  %v2099_v10 = vsel %vm578_vm8, %v5765_v52, 0.0  ;;  %4174 = vpow2.f32 %v2065_v62 }
0x1257   :  { %v5772_v31 = vpop.eup %4164  ;;  %2100 = vadd.xlane.f32.xlu0 %v2099_v10  ;;  %v2096_v28 = vsel %vm578_vm8, %v5767_v61, 0.0 }
0x1258   :  { %2097 = vadd.xlane.f32.xlu2 %v2096_v28  ;;  %v2093_v39 = vsel %vm578_vm8, %v5772_v31, 0.0  ;;  %v5779_v15 = vpop.eup %4166 }
0x1259   :  { %2094 = vadd.xlane.f32.xlu1 %v2093_v39  ;;  %v5781_v8 = vpop.eup %4168  ;;  %v2108_v35 = vsel %vm578_vm8, %v5779_v15, 0.0 }
0x125a   :  { %v5783_v0 = vpop.eup %4170  ;;  %v2105_v45 = vsel %vm578_vm8, %v5781_v8, 0.0 }
0x125b   :  { %v2102_v16 = vsel %vm578_vm8, %v5783_v0, 0.0  ;;  %v5791_v47 = vpop.eup %4172 }
0x125c   :  { %v5793_v11 = vpop.eup %4174  ;;  %v2114_v59 = vsel %vm578_vm8, %v5791_v47, 0.0 }
0x125d   :  { %v2111_v7 = vsel %vm578_vm8, %v5793_v11, 0.0 }
0x125f   :  { %2109 = vadd.xlane.f32.xlu0 %v2108_v35 }
0x1260   :  { %2106 = vadd.xlane.f32.xlu2 %v2105_v45 }
0x1261   :  { %2103 = vadd.xlane.f32.xlu1 %v2102_v16 }
0x1268   :  { %2115 = vadd.xlane.f32.xlu2 %v2114_v59 }
0x1269   :  { %2112 = vadd.xlane.f32.xlu1 %v2111_v7 }
0x128a   :  { %v2071_v3 = vpop.xlane.xlu2 %2070 }
0x128b   :  { %v2074_v4 = vpop.xlane.xlu0 %2073 }
0x128c   :  { %v2117_v57 = vadd.f32 %v2074_v4, %v2071_v3  ;;  %v2077_v18 = vpop.xlane.xlu1 %2076  ;;  %v5804_v3 = vld [vmem:[%s6478_s12 + $0x18] sm:$0xff]  ;;  %v5810_v4 = vld [vmem:[%s6478_s12 + $0x10] sm:$0xff] }
0x128e   :  { %v2118_v33 = vadd.f32 %v2117_v57, %v2077_v18  ;;  %v5823_v18 = vld [vmem:[%s6478_s12] sm:$0xff] }
0x1292   :  { %v2080_v43 = vpop.xlane.xlu2 %2079 }
0x1293   :  { %v2119_v14 = vadd.f32 %v2118_v33, %v2080_v43  ;;  %v2083_v21 = vpop.xlane.xlu0 %2082 }
0x1294   :  { %v2086_v55 = vpop.xlane.xlu1 %2085 }
0x1295   :  { %v2120_v19 = vadd.f32 %v2119_v14, %v2083_v21 }
0x1297   :  { %v2121_v12 = vadd.f32 %v2120_v19, %v2086_v55 }
0x129a   :  { %v2089_v10 = vpop.xlane.xlu2 %2088 }
0x129b   :  { %v2122_v13 = vadd.f32 %v2121_v12, %v2089_v10  ;;  %v2092_v28 = vpop.xlane.xlu0 %2091 }
0x129d   :  { %v2123_v44 = vadd.f32 %v2122_v13, %v2092_v28 }
0x129f   :  { %v2124_v39 = vrot.slane %v2123_v44, 4 }
0x12a1   :  { %v2125_v6 = vadd.f32 %v2124_v39, %v2123_v44 }
0x12a3   :  { %v2126_v62 = vrot.slane %v2125_v6, 2 }
0x12a5   :  { %v2127_v35 = vadd.f32 %v2126_v62, %v2125_v6 }
0x12a7   :  { %v2128_v45 = vrot.slane %v2127_v35, 1 }
0x12a9   :  { %v2129_v16 = vadd.f32 %v2128_v45, %v2127_v35 }
0x12ab   :  { %4176 = vrcp.f32 %v2129_v16 }
0x12b1   :  { %v4177_v59 = vpop.eup %4176 }
0x12b2   :  { %v2145_v7 = vmul.f32 %v4177_v59, %v5725_v42  ;;  %v5816_v42 = vld [vmem:[%s6478_s12 + $0x8] sm:$0xff]  ;;  %v2146_v57 = vmul.f32 %v4177_v59, %v5728_v25  ;;  %v2147_v33 = vmul.f32 %v4177_v59, %v5733_v49  ;;  %v2148_v43 = vmul.f32 %v4177_v59, %v5739_v23 }
0x12b3   :  { %v2149_v55 = vmul.f32 %v4177_v59, %v5741_v20  ;;  %v2150_v39 = vmul.f32 %v4177_v59, %v5743_v36  ;;  %v2151_v20 = vmul.f32 %v4177_v59, %v5751_v51 }
0x12b4   :  { %3869 = vmatmul.msk.f32.vlgmr.msrb.gmra.mxu0 %vm578_vm8, %v2145_v7 }
0x12b5   :  { %3737 = vmatpush.msrb.mxu0 %v5804_v3 }
0x12b7   :  { %3738 = vmatpush.msrb.mxu0 %v5810_v4 }
0x12b9   :  { %3739 = vmatpush.msrb.mxu0 %v5816_v42 }
0x12bb   :  { %3740 = vmatpush.msrb.mxu0 %v5823_v18 }
0x12bc   :  { %3870 = vmatmul.msk.f32.gmra.mxu0 %vm578_vm8, %v2146_v57 }
0x12c4   :  { %3871 = vmatmul.msk.f32.gmra.mxu0 %vm578_vm8, %v2147_v33 }
0x12ca   :  { %v2101_v19 = vpop.xlane.xlu0 %2100 }
0x12cb   :  { %v2098_v14 = vpop.xlane.xlu2 %2097 }
0x12cc   :  { %v2095_v21 = vpop.xlane.xlu1 %2094  ;;  %3872 = vmatmul.msk.f32.gmra.mxu0 %vm578_vm8, %v2148_v43 }
0x12cd   :  { %v2130_v25 = vadd.f32 %v2098_v14, %v2095_v21  ;;  %v2152_v14 = vmul.f32 %v4177_v59, %v5753_v34 }
0x12cf   :  { %v2131_v12 = vadd.f32 %v2130_v25, %v2101_v19 }
0x12d2   :  { %v2110_v49 = vpop.xlane.xlu0 %2109 }
0x12d3   :  { %v2107_v10 = vpop.xlane.xlu2 %2106 }
0x12d4   :  { %v2104_v13 = vpop.xlane.xlu1 %2103  ;;  %3873 = vmatmul.msk.f32.gmra.mxu0 %vm578_vm8, %v2149_v55 }
0x12d5   :  { %v2132_v28 = vadd.f32 %v2131_v12, %v2104_v13 }
0x12d7   :  { %v2133_v44 = vadd.f32 %v2132_v28, %v2107_v10 }
0x12d9   :  { %v2134_v6 = vadd.f32 %v2133_v44, %v2110_v49 }
0x12db   :  { %v2116_v35 = vpop.xlane.xlu2 %2115 }
0x12dc   :  { %v2113_v23 = vpop.xlane.xlu1 %2112  ;;  %3874 = vmatmul.msk.f32.gmra.mxu0 %vm578_vm8, %v2150_v39 }
0x12dd   :  { %v2135_v62 = vadd.f32 %v2134_v6, %v2113_v23 }
0x12df   :  { %v2136_v45 = vadd.f32 %v2135_v62, %v2116_v35 }
0x12e1   :  { %v2137_v16 = vrot.slane %v2136_v45, 4 }
0x12e3   :  { %v2138_v7 = vadd.f32 %v2137_v16, %v2136_v45 }
0x12e4   :  { %3875 = vmatmul.msk.f32.gmra.mxu0 %vm578_vm8, %v2151_v20 }
0x12e5   :  { %v2139_v57 = vrot.slane %v2138_v7, 2 }
0x12e7   :  { %v2140_v33 = vadd.f32 %v2139_v57, %v2138_v7 }
0x12e9   :  { %v2141_v43 = vrot.slane %v2140_v33, 1 }
0x12eb   :  { %v2142_v21 = vadd.f32 %v2141_v43, %v2140_v33 }
0x12ec   :  { %3876 = vmatmul.msk.f32.gmra.mxu0 %vm578_vm8, %v2152_v14 }
0x12ed   :  { %4178 = vrcp.f32 %v2142_v21 }
0x12f3   :  { %v4179_v36 = vpop.eup %4178 }
0x12f4   :  { %v2153_v25 = vmul.f32 %v4179_v36, %v5772_v31  ;;  %v2154_v19 = vmul.f32 %v4179_v36, %v5767_v61  ;;  %v2155_v51 = vmul.f32 %v4179_v36, %v5765_v52  ;;  %v2156_v55 = vmul.f32 %v4179_v36, %v5783_v0 }
0x12f5   :  { %v2157_v34 = vmul.f32 %v4179_v36, %v5781_v8  ;;  %v2158_v31 = vmul.f32 %v4179_v36, %v5779_v15  ;;  %v2159_v61 = vmul.f32 %v4179_v36, %v5793_v11  ;;  %v2160_v52 = vmul.f32 %v4179_v36, %v5791_v47 }
0x12f6   :  { %3877 = vmatmul.msk.f32.gmra.mxu0 %vm578_vm8, %v2153_v25 }
0x12fe   :  { %3878 = vmatmul.msk.f32.gmra.mxu0 %vm578_vm8, %v2154_v19 }
0x1306   :  { %3879 = vmatmul.msk.f32.gmra.mxu0 %vm578_vm8, %v2155_v51 }
0x130e   :  { %3880 = vmatmul.msk.f32.gmra.mxu0 %vm578_vm8, %v2156_v55 }
0x1316   :  { %3881 = vmatmul.msk.f32.gmra.mxu0 %vm578_vm8, %v2157_v34 }
0x131e   :  { %3882 = vmatmul.msk.f32.gmra.mxu0 %vm578_vm8, %v2158_v31 }
0x1326   :  { %3883 = vmatmul.msk.f32.gmra.mxu0 %vm578_vm8, %v2159_v61 }
0x132e   :  { %3884 = vmatmul.msk.f32.gmra.mxu0 %vm578_vm8, %v2160_v52 }
0x1331   :  { %v2226_v59 = vpop.f32.mrf.mxu0 }
0x1332   :  { %v2274_v15 = vmul.f32 %v2226_v59, %v4670_v17 }
0x1339   :  { %v2229_v0 = vpop.f32.mrf.mxu0 }
0x133a   :  { %v2275_v28 = vmul.f32 %v2229_v0, %v4683_v22 }
0x133c   :  { %v2290_v49 = vadd.f32 %v2275_v28, %v2274_v15 }
0x1341   :  { %v2232_v12 = vpop.f32.mrf.mxu0 }
0x1342   :  { %v2276_v44 = vmul.f32 %v2232_v12, %v4698_v24 }
0x1344   :  { %v2291_v6 = vadd.f32 %v2290_v49, %v2276_v44 }
0x1349   :  { %v2235_v10 = vpop.f32.mrf.mxu0 }
0x134a   :  { %v2277_v11 = vmul.f32 %v2235_v10, %v4702_v26 }
0x134c   :  { %v2292_v23 = vadd.f32 %v2291_v6, %v2277_v11 }
0x1351   :  { %v2238_v13 = vpop.f32.mrf.mxu0 }
0x1352   :  { %v2278_v47 = vmul.f32 %v2238_v13, %v4706_v29 }
0x1354   :  { %v2293_v35 = vadd.f32 %v2292_v23, %v2278_v47 }
0x1359   :  { %v2241_v8 = vpop.f32.mrf.mxu0 }
0x135a   :  { %v2279_v62 = vmul.f32 %v2241_v8, %v4710_v32 }
0x135c   :  { %v2294_v16 = vadd.f32 %v2293_v35, %v2279_v62 }
0x1361   :  { %v2244_v39 = vpop.f32.mrf.mxu0 }
0x1362   :  { %v2280_v45 = vmul.f32 %v2244_v39, %v4716_v37 }
0x1364   :  { %v2295_v7 = vadd.f32 %v2294_v16, %v2280_v45 }
0x1369   :  { %v2247_v20 = vpop.f32.mrf.mxu0 }
0x136a   :  { %v2281_v57 = vmul.f32 %v2247_v20, %v4720_v41 }
0x136c   :  { %v2296_v33 = vadd.f32 %v2295_v7, %v2281_v57 }
0x136e   :  { %v2297_v43 = vrot.slane %v2296_v33, 4 }
0x1370   :  { %v2298_v14 = vadd.f32 %v2297_v43, %v2296_v33 }
0x1372   :  { %v2299_v21 = vrot.slane %v2298_v14, 2 }
0x1373   :  { %v2250_v36 = vpop.f32.mrf.mxu0 }
0x1374   :  { %v2300_v25 = vadd.f32 %v2299_v21, %v2298_v14  ;;  %v2282_v0 = vmul.f32 %v2250_v36, %v4724_v40 }
0x1376   :  { %v2301_v19 = vrot.slane %v2300_v25, 1 }
0x1378   :  { %v2302_v51 = vadd.f32 %v2301_v19, %v2300_v25 }
0x137a   :  { %2318 = vrot.lane.b32.xlu1 %v2302_v51, %s4406_s25 }
0x137b   :  { %v2253_v55 = vpop.f32.mrf.mxu0 }
0x137c   :  { %v2283_v59 = vmul.f32 %v2253_v55, %v4728_v46 }
0x137e   :  { %v2303_v10 = vadd.f32 %v2283_v59, %v2282_v0 }
0x1383   :  { %v2256_v34 = vpop.f32.mrf.mxu0 }
0x1384   :  { %v2284_v12 = vmul.f32 %v2256_v34, %v4732_v50 }
0x1386   :  { %v2304_v28 = vadd.f32 %v2303_v10, %v2284_v12 }
0x138b   :  { %v2259_v31 = vpop.f32.mrf.mxu0 }
0x138c   :  { %v2285_v13 = vmul.f32 %v2259_v31, %v4736_v53 }
0x138e   :  { %v2305_v44 = vadd.f32 %v2304_v28, %v2285_v13 }
0x1393   :  { %v2262_v61 = vpop.f32.mrf.mxu0 }
0x1394   :  { %v2286_v15 = vmul.f32 %v2262_v61, %v4752_v60 }
0x1396   :  { %v2306_v11 = vadd.f32 %v2305_v44, %v2286_v15 }
0x139b   :  { %v2265_v52 = vpop.f32.mrf.mxu0 }
0x139c   :  { %v2287_v49 = vmul.f32 %v2265_v52, %v4756_v63 }
0x139e   :  { %v2307_v6 = vadd.f32 %v2306_v11, %v2287_v49 }
0x13a3   :  { %v2268_v8 = vpop.f32.mrf.mxu0 }
0x13a4   :  { %v2288_v39 = vmul.f32 %v2268_v8, %v4760_v2 }
0x13a6   :  { %v2308_v23 = vadd.f32 %v2307_v6, %v2288_v39 }
0x13ab   :  { %v2271_v47 = vpop.f32.mrf.mxu0 }
0x13ac   :  { %v2289_v62 = vmul.f32 %v2271_v47, %v4764_v9 }
0x13ae   :  { %v2309_v35 = vadd.f32 %v2308_v23, %v2289_v62 }
0x13b0   :  { %v2310_v45 = vrot.slane %v2309_v35, 4 }
0x13b2   :  { %v2311_v16 = vadd.f32 %v2310_v45, %v2309_v35 }
0x13b4   :  { %v2312_v20 = vrot.slane %v2311_v16, 2 }
0x13b6   :  { %v2313_v7 = vadd.f32 %v2312_v20, %v2311_v16 }
0x13b8   :  { %v2314_v57 = vrot.slane %v2313_v7, 1 }
0x13ba   :  { %v2315_v33 = vadd.f32 %v2314_v57, %v2313_v7 }
0x13bc   :  { %2336 = vrot.lane.b32.xlu1 %v2315_v33, %s4405_s1  ;;  %2328 = vrot.lane.b32.xlu2 %v2315_v33, %s4404_s23 }
0x13bd   :  { %2320 = vrot.lane.b32.xlu0 %v2315_v33, %s4406_s25 }
0x13c5   :  { %2326 = vrot.lane.b32.xlu0 %v2302_v51, %s4404_s23 }
0x13cd   :  { %2334 = vrot.lane.b32.xlu0 %v2302_v51, %s4405_s1 }
0x13ec   :  { %v2319_v14 = vpop.permute.xlu1 %2318 }
0x13ed   :  { %v2324_v34 = vadd.f32 %v2319_v14, %v2302_v51 }
0x1416   :  { %v2329_v36 = vpop.permute.xlu2 %2328 }
0x142e   :  { %v2337_v55 = vpop.permute.xlu1 %2336 }
0x142f   :  { %v2321_v43 = vpop.permute.xlu0 %2320 }
0x1430   :  { %v2325_v21 = vadd.f32 %v2321_v43, %v2315_v33 }
0x1432   :  { %v2333_v19 = vadd.f32 %v2329_v36, %v2325_v21  ;;  %v2481_v36 = vrot.slane %v5590_v30, 6 }
0x1434   :  { %v2341_v31 = vadd.f32 %v2337_v55, %v2333_v19 }
0x1436   :  { %v2344_v59 = vrot.slane %v2341_v31, 7 }
0x1437   :  { %v2327_v25 = vpop.permute.xlu0 %2326 }
0x1438   :  { %v2332_v61 = vadd.f32 %v2327_v25, %v2324_v34 }
0x143f   :  { %v2335_v52 = vpop.permute.xlu0 %2334 }
0x1440   :  { %v2340_v0 = vadd.f32 %v2335_v52, %v2332_v61 }
0x1442   :  { %v2345_v12 = vsel %vm980_vm9, %v2344_v59, %v2340_v0 }
0x1443   :  { %3885 = vmatmul.msk.f32.vlgmr.msrb.gmra.mxu2 %vm389_vm7, %v2345_v12  ;;  %v6567_v12 = vld [vmem:[#allocation4_spill] sm:$0xff] }
0x1444   :  { %2426 = vmatpush.msrb.mxu2 %v5575_v27  ;;  %v5892_v27 = vld [vmem:[%s6476_s11] sm:$0xf] }
0x1446   :  { %2427 = vmatpush.msrb.mxu2 %v5581_v38  ;;  %v4376_v38 = vld [vmem:[%s6477_s13 + $0x18] sm:$0xff] }
0x144b   :  { %3886 = vmatmul.msk.f32.vlgmr.msra.gmra.mxu2 %vm389_vm7, %v5595_v54 }
0x144c   :  { %2518 = vmatpush.msra.mxu2 %v5620_v48  ;;  %v4377_v48 = vld [vmem:[%s6477_s13 + $0x10] sm:$0xff] }
0x144e   :  { %2519 = vmatpush.msra.mxu2 %v5626_v58  ;;  %v4378_v58 = vld [vmem:[%s6477_s13 + $0x8] sm:$0xff] }
0x1450   :  { %2520 = vmatpush.msra.mxu2 %v5633_v56  ;;  %v4379_v56 = vld [vmem:[%s6477_s13] sm:$0xff] }
0x1452   :  { %2521 = vmatpush.msra.mxu2 %v5639_v1 }
0x14c6   :  { %v2365_v51 = vpop.f32.mrf.mxu2 }
0x14ce   :  { %v2385_v10 = vpop.f32.mrf.mxu2 }
0x14cf   :  { %v2386_v13 = vadd.f32 %v2385_v10, %v2365_v51  ;;  %v6568_v10 = vld [vmem:[#allocation5_spill] sm:$0xff] }
0x14d1   :  { %4180 = vtanh.f32 %v2386_v13 }
0x14d7   :  { %v4181_v8 = vpop.eup %4180 }
0x14d8   :  { %3887 = vmatmul.msk.f32.vlgmr.msra.gmra.mxu3 %vm335_vm0, %v4181_v8  ;;  %3888 = vmatmul.msk.f32.vlgmr.msrb.gmra.mxu2 %vm335_vm0, %v4181_v8 }
0x14d9   :  { %3892 = vmatpush.msk.msra.mxu3 %vm124_vm1, %v5892_v27  ;;  %3042 = vmatpush.msrb.mxu2 %v4376_v38 }
0x14db   :  { %3043 = vmatpush.msrb.mxu2 %v4377_v48 }
0x14dd   :  { %3044 = vmatpush.msrb.mxu2 %v4378_v58 }
0x14df   :  { %3045 = vmatpush.msrb.mxu2 %v4379_v56 }
0x14e0   :  { %3889 = vmatmul.msk.f32.vlgmr.msrb.gmra.mxu3 %vm389_vm7, %v5595_v54 }
0x14e1   :  { %3717 = vmatpush.msrb.mxu3 %v4376_v38  ;;  %v6569_v38 = vld [vmem:[#allocation6_spill] sm:$0xff] }
0x14e3   :  { %3718 = vmatpush.msrb.mxu3 %v4377_v48 }
0x14e5   :  { %3719 = vmatpush.msrb.mxu3 %v4378_v58 }
0x14e7   :  { %3720 = vmatpush.msrb.mxu3 %v4379_v56 }
0x155b   :  { %v5910_v1 = vpop.f32.mrf.mxu3  ;;  %v2429_v28 = vpop.f32.mrf.mxu2 }
0x155c   :  { %6566 = vst [vmem:[#allocation3_spill] sm:$0xff] %v5910_v1  ;;  %v2433_v15 = vrot.slane %v2429_v28, 2 }
0x155e   :  { %v2435_v49 = vadd.f32 %v2433_v15, %v6548_v5  ;;  %v6572_v15 = vld [vmem:[#allocation9_spill] sm:$0xff] }
0x1563   :  { %v2453_v44 = vpop.f32.mrf.mxu3 }
0x1564   :  { %v2457_v11 = vrot.slane %v2453_v44, 2 }
0x1566   :  { %v2459_v39 = vadd.f32 %v2457_v11, %v2435_v49  ;;  %v6573_v11 = vld [vmem:[#allocation10_spill] sm:$0xff] }
0x1568   :  { %4182 = vtanh.f32 %v2459_v39  ;;  %v3890_v47 = vmul.f32 -1.442695, %v2459_v39 }
0x156a   :  { %4184 = vpow2.f32 %v3890_v47 }
0x156e   :  { %v4183_v6 = vpop.eup %4182 }
0x156f   :  { %2485 = vrot.lane.b32.xlu2 %v4183_v6, %s4404_s23 }
0x1570   :  { %v4185_v54 = vpop.eup %4184 }
0x1571   :  { %v2463_v23 = vadd.f32 1.0, %v4185_v54  ;;  %v6574_v54 = vld [vmem:[#allocation11_spill] sm:$0xff] }
0x1573   :  { %4186 = vrcp.f32 %v2463_v23  ;;  %v2475_v7 = vand.u32 2147483648, %v2463_v23  ;;  %vm2469_vm5 = vweird.f32 %v2463_v23  ;;  %v2473_v5 = vand.u32 2147483647, %v2463_v23 }
0x1575   :  { %v2476_v33 = vor.u32 1.1754944e-38, %v2475_v7  ;;  %vm2474_vm10 = vcmp.eq.f32.partialorder %v2473_v5, 8.507059e+37  ;;  %v6576_v7 = vld [vmem:[#allocation13_spill] sm:$0xff] }
0x1579   :  { %v4187_v62 = vpop.eup %4186 }
0x157a   :  { %v2465_v35 = vmul.f32 %v4187_v62, %v2463_v23  ;;  %vm2470_vm4 = vweird.f32 %v4187_v62 }
0x157b   :  { %vm2471_vm6 = vmor %vm2469_vm5, %vm2470_vm4 }
0x157c   :  { %v2466_v45 = vsub.f32 1.0, %v2465_v35 }
0x157e   :  { %v2467_v16 = vmul.f32 %v4187_v62, %v2466_v45  ;;  %v6575_v45 = vld [vmem:[#allocation12_spill] sm:$0xff] }
0x1580   :  { %v2468_v20 = vadd.f32 %v4187_v62, %v2467_v16 }
0x1582   :  { %v2472_v57 = vsel %vm2471_vm6, %v4187_v62, %v2468_v20 }
0x1583   :  { %v2477_v14 = vsel %vm2474_vm10, %v2476_v33, %v2472_v57  ;;  %v6577_v33 = vld [vmem:[#allocation14_spill] sm:$0xff] }
0x1584   :  { %v2483_v25 = vmul.f32 %v2481_v36, %v2477_v14 }
0x15c9   :  { %v2486_v43 = vpop.permute.xlu2 %2485 }
0x15ca   :  { %v2488_v21 = vmul.f32 %v2486_v43, %v2477_v14 }
0x15cc   :  { %2490 = vrot.lane.b32.xlu1 %v2488_v21, %s4405_s1  ;;  %v6578_v21 = vld [vmem:[#allocation15_spill] sm:$0xff] }
0x163e   :  { %v2491_v19 = vpop.permute.xlu1 %2490 }
0x163f   :  { %v5916_v55 = vadd.f32 %v2491_v19, %v2483_v25  ;;  %v6579_v19 = vld [vmem:[#allocation16_spill] sm:$0xff] }
0x1641   :  { %4188 = vtanh.f32 %v5916_v55 }
0x1647   :  { %v4189_v34 = vpop.eup %4188 }
0x1648   :  { %2496 = vrot.lane.b32.xlu0 %v4189_v34, %s4404_s23 }
0x16ba   :  { %v2497_v31 = vpop.permute.xlu0 %2496 }
0x16bb   :  { %v2499_v61 = vmul.f32 %v2497_v31, %v2477_v14 }
0x16bd   :  { %v2501_v52 = vrot.slane %v2499_v61, 6  ;;  %v6580_v61 = vld [vmem:[#allocation17_spill] sm:$0xff] }
0x16bf   :  { %2502 = vrot.lane.b32.xlu2 %v2501_v52, %s4405_s1 }
0x1719   :  { %v5921_v59 = vpop.permute.xlu2 %2502 }
0x171a   :  { %3891 = vmatmul.msk.f32.vlgmr.msra.gmra.mxu2 %vm389_vm7, %v5921_v59 }
0x171b   :  { %3062 = vmatpush.msra.mxu2 %v5804_v3  ;;  %v6570_v3 = vld [vmem:[#allocation7_spill] sm:$0xff] }
0x171d   :  { %3063 = vmatpush.msra.mxu2 %v5810_v4 }
0x171f   :  { %3064 = vmatpush.msra.mxu2 %v5816_v42 }
0x1721   :  { %3065 = vmatpush.msra.mxu2 %v5823_v18  ;;  %v6571_v18 = vld [vmem:[#allocation8_spill] sm:$0xff] }
0x179d   :  { %v2523_v30 = vpop.f32.mrf.mxu2 }
0x179e   :  { %v2528_v0 = vperm.slane %v2523_v30, 0  ;;  %v2527_v47 = vrot.slane %v2523_v30, 1 }
0x17a0   :  { %v2532_v51 = vadd.f32 %v2528_v0, %v6567_v12  ;;  %v2533_v13 = vadd.f32 %v2528_v0, %v6568_v10  ;;  %v2534_v48 = vadd.f32 %v2528_v0, %v6569_v38  ;;  %v2535_v4 = vadd.f32 %v2528_v0, %v6570_v3 }
0x17a1   :  { %v2536_v56 = vadd.f32 %v2528_v0, %v6571_v18  ;;  %v2537_v44 = vadd.f32 %v2528_v0, %v6572_v15  ;;  %v2538_v39 = vadd.f32 %v2528_v0, %v6573_v11  ;;  %v2539_v23 = vadd.f32 %v2528_v0, %v6574_v54  ;;  %v6581_v0 = vld [vmem:[#allocation18_spill] sm:$0xff] }
0x17a2   :  { %4190 = vtanh.f32 %v2532_v51  ;;  %v2529_v35 = vperm.slane %v2527_v47, 0 }
0x17a3   :  { %4192 = vtanh.f32 %v2533_v13 }
0x17a4   :  { %4194 = vtanh.f32 %v2534_v48  ;;  %v2540_v16 = vadd.f32 %v2529_v35, %v6575_v45  ;;  %v2541_v5 = vadd.f32 %v2529_v35, %v6576_v7  ;;  %v2542_v43 = vadd.f32 %v2529_v35, %v6577_v33 }
0x17a5   :  { %4196 = vtanh.f32 %v2535_v4  ;;  %v2543_v36 = vadd.f32 %v2529_v35, %v6578_v21  ;;  %v2544_v34 = vadd.f32 %v2529_v35, %v6579_v19  ;;  %v2545_v52 = vadd.f32 %v2529_v35, %v6580_v61 }
0x17a6   :  { %4198 = vtanh.f32 %v2536_v56  ;;  %v2546_v51 = vadd.f32 %v2529_v35, %v6581_v0 }
0x17a7   :  { %4200 = vtanh.f32 %v2537_v44 }
0x17a8   :  { %v4191_v8 = vpop.eup %4190  ;;  %4202 = vtanh.f32 %v2538_v39 }
0x17a9   :  { %2580 = vmatmul.f32.vlgmr.msra.gmra.mxu0 %v4191_v8  ;;  %v4193_v58 = vpop.eup %4192  ;;  %4204 = vtanh.f32 %v2539_v23  ;;  %v6582_v8 = vld [vmem:[#allocation19_spill] sm:$0xff] }
0x17aa   :  { %v4195_v42 = vpop.eup %4194  ;;  %4206 = vtanh.f32 %v2540_v16  ;;  %v2547_v48 = vadd.f32 %v2529_v35, %v6582_v8 }
0x17ab   :  { %v4197_v28 = vpop.eup %4196  ;;  %4208 = vtanh.f32 %v2541_v5 }
0x17ac   :  { %v4199_v49 = vpop.eup %4198  ;;  %4210 = vtanh.f32 %v2542_v43 }
0x17ad   :  { %v4201_v6 = vpop.eup %4200  ;;  %4212 = vtanh.f32 %v2543_v36 }
0x17ae   :  { %v4203_v62 = vpop.eup %4202  ;;  %4214 = vtanh.f32 %v2544_v34 }
0x17af   :  { %v4205_v20 = vpop.eup %4204  ;;  %4216 = vtanh.f32 %v2545_v52 }
0x17b0   :  { %v4207_v57 = vpop.eup %4206  ;;  %4218 = vtanh.f32 %v2546_v51 }
0x17b1   :  { %2583 = vmatmul.f32.gmra.mxu0 %v4193_v58  ;;  %v4209_v14 = vpop.eup %4208  ;;  %4220 = vtanh.f32 %v2547_v48 }
0x17b2   :  { %v4211_v25 = vpop.eup %4210 }
0x17b3   :  { %v4213_v31 = vpop.eup %4212 }
0x17b4   :  { %v4215_v30 = vpop.eup %4214 }
0x17b5   :  { %v4217_v13 = vpop.eup %4216 }
0x17b6   :  { %v4219_v58 = vpop.eup %4218 }
0x17b7   :  { %v4221_v4 = vpop.eup %4220 }
0x17b9   :  { %2586 = vmatmul.f32.gmra.mxu0 %v4195_v42 }
0x17c1   :  { %2589 = vmatmul.f32.gmra.mxu0 %v4197_v28 }
0x17c9   :  { %2592 = vmatmul.f32.gmra.mxu0 %v4199_v49 }
0x17d1   :  { %2595 = vmatmul.f32.gmra.mxu0 %v4201_v6 }
0x17d9   :  { %2598 = vmatmul.f32.gmra.mxu0 %v4203_v62 }
0x17e1   :  { %2601 = vmatmul.f32.gmra.mxu0 %v4205_v20 }
0x17e9   :  { %2604 = vmatmul.f32.gmra.mxu0 %v4207_v57 }
0x17f1   :  { %2607 = vmatmul.f32.gmra.mxu0 %v4209_v14 }
0x17f9   :  { %2610 = vmatmul.f32.gmra.mxu0 %v4211_v25 }
0x1801   :  { %2613 = vmatmul.f32.gmra.mxu0 %v4213_v31 }
0x1809   :  { %2616 = vmatmul.f32.gmra.mxu0 %v4215_v30 }
0x1811   :  { %2619 = vmatmul.f32.gmra.mxu0 %v4217_v13 }
0x1819   :  { %2622 = vmatmul.f32.gmra.mxu0 %v4219_v58 }
0x1821   :  { %2625 = vmatmul.f32.gmra.mxu0 %v4221_v4 }
0x1826   :  { %v5945_v42 = vpop.f32.mrf.mxu0 }
0x1827   :  { %v2629_v56 = vsel %vm578_vm8, %v5945_v42, -inf }
0x1828   :  { %2630 = vmax.xlane.f32.xlu1 %v2629_v56 }
0x182e   :  { %v5949_v28 = vpop.f32.mrf.mxu0 }
0x182f   :  { %v2632_v44 = vsel %vm578_vm8, %v5949_v28, -inf }
0x1830   :  { %2633 = vmax.xlane.f32.xlu0 %v2632_v44 }
0x1836   :  { %v5953_v49 = vpop.f32.mrf.mxu0 }
0x1837   :  { %v2635_v39 = vsel %vm578_vm8, %v5953_v49, -inf }
0x1838   :  { %2636 = vmax.xlane.f32.xlu2 %v2635_v39 }
0x183e   :  { %v5957_v6 = vpop.f32.mrf.mxu0 }
0x183f   :  { %v2638_v47 = vsel %vm578_vm8, %v5957_v6, -inf }
0x1840   :  { %2639 = vmax.xlane.f32.xlu1 %v2638_v47 }
0x1846   :  { %v5961_v23 = vpop.f32.mrf.mxu0 }
0x1847   :  { %v2641_v62 = vsel %vm578_vm8, %v5961_v23, -inf }
0x1848   :  { %2642 = vmax.xlane.f32.xlu2 %v2641_v62 }
0x184e   :  { %v5965_v35 = vpop.f32.mrf.mxu0 }
0x184f   :  { %v2644_v16 = vsel %vm578_vm8, %v5965_v35, -inf }
0x1850   :  { %2645 = vmax.xlane.f32.xlu0 %v2644_v16 }
0x1856   :  { %v5969_v20 = vpop.f32.mrf.mxu0 }
0x1857   :  { %v2647_v5 = vsel %vm578_vm8, %v5969_v20, -inf }
0x1858   :  { %2648 = vmax.xlane.f32.xlu1 %v2647_v5 }
0x185e   :  { %v5973_v57 = vpop.f32.mrf.mxu0 }
0x185f   :  { %v2650_v43 = vsel %vm578_vm8, %v5973_v57, -inf }
0x1860   :  { %2651 = vmax.xlane.f32.xlu2 %v2650_v43 }
0x1866   :  { %v5977_v14 = vpop.f32.mrf.mxu0 }
0x1867   :  { %v2653_v36 = vsel %vm578_vm8, %v5977_v14, -inf }
0x1868   :  { %2654 = vmax.xlane.f32.xlu0 %v2653_v36 }
0x186e   :  { %v5981_v25 = vpop.f32.mrf.mxu0 }
0x186f   :  { %v2656_v34 = vsel %vm578_vm8, %v5981_v25, -inf }
0x1870   :  { %2657 = vmax.xlane.f32.xlu1 %v2656_v34 }
0x1876   :  { %v5985_v31 = vpop.f32.mrf.mxu0 }
0x1877   :  { %v2659_v52 = vsel %vm578_vm8, %v5985_v31, -inf }
0x1878   :  { %2660 = vmax.xlane.f32.xlu2 %v2659_v52 }
0x187e   :  { %v5989_v30 = vpop.f32.mrf.mxu0 }
0x187f   :  { %v2662_v51 = vsel %vm578_vm8, %v5989_v30, -inf }
0x1880   :  { %2663 = vmax.xlane.f32.xlu0 %v2662_v51 }
0x1886   :  { %v5993_v13 = vpop.f32.mrf.mxu0 }
0x1887   :  { %v2665_v48 = vsel %vm578_vm8, %v5993_v13, -inf }
0x1888   :  { %2666 = vmax.xlane.f32.xlu1 %v2665_v48 }
0x188e   :  { %v5997_v58 = vpop.f32.mrf.mxu0 }
0x188f   :  { %v2668_v4 = vsel %vm578_vm8, %v5997_v58, -inf }
0x1890   :  { %2669 = vmax.xlane.f32.xlu2 %v2668_v4 }
0x1896   :  { %v6001_v56 = vpop.f32.mrf.mxu0 }
0x1897   :  { %v2671_v44 = vsel %vm578_vm8, %v6001_v56, -inf }
0x1898   :  { %2672 = vmax.xlane.f32.xlu0 %v2671_v44 }
0x189b   :  { %v2631_v62 = vpop.xlane.xlu1 %2630 }
0x189e   :  { %v6005_v39 = vpop.f32.mrf.mxu0 }
0x189f   :  { %v2674_v47 = vsel %vm578_vm8, %v6005_v39, -inf }
0x18a0   :  { %2675 = vmax.xlane.f32.xlu1 %v2674_v47 }
0x18a3   :  { %v2634_v5 = vpop.xlane.xlu0 %2633 }
0x18ab   :  { %v2637_v16 = vpop.xlane.xlu2 %2636 }
0x18ac   :  { %v2677_v52 = vmax.f32 %v2631_v62, %v2637_v16 }
0x18b3   :  { %v2640_v43 = vpop.xlane.xlu1 %2639 }
0x18b4   :  { %v2678_v51 = vmax.f32 %v2634_v5, %v2640_v43 }
0x18bb   :  { %v2643_v36 = vpop.xlane.xlu2 %2642 }
0x18bc   :  { %v2679_v4 = vmax.f32 %v2677_v52, %v2643_v36 }
0x18c3   :  { %v2646_v34 = vpop.xlane.xlu0 %2645 }
0x18c4   :  { %v2680_v1 = vmax.f32 %v2678_v51, %v2646_v34 }
0x18cb   :  { %v2649_v48 = vpop.xlane.xlu1 %2648 }
0x18cc   :  { %v2681_v0 = vmax.f32 %v2679_v4, %v2649_v48 }
0x18d3   :  { %v2652_v8 = vpop.xlane.xlu2 %2651 }
0x18d4   :  { %v2682_v44 = vmax.f32 %v2680_v1, %v2652_v8 }
0x18d6   :  { %v2683_v61 = vmax.f32 %v2681_v0, %v2682_v44 }
0x18d8   :  { %v2684_v19 = vrot.slane %v2683_v61, 4 }
0x18da   :  { %v2685_v21 = vmax.f32 %v2683_v61, %v2684_v19 }
0x18dc   :  { %v2686_v33 = vrot.slane %v2685_v21, 2 }
0x18de   :  { %v2687_v7 = vmax.f32 %v2685_v21, %v2686_v33 }
0x18e0   :  { %v2688_v47 = vrot.slane %v2687_v7, 1 }
0x18e2   :  { %v2689_v45 = vmax.f32 %v2687_v7, %v2688_v47  ;;  %v2655_v47 = vpop.xlane.xlu0 %2654 }
0x18e4   :  { %v2703_v54 = vsub.f32 %v5945_v42, %v2689_v45  ;;  %v2704_v11 = vsub.f32 %v5949_v28, %v2689_v45  ;;  %v2705_v62 = vsub.f32 %v5953_v49, %v2689_v45  ;;  %v2706_v36 = vsub.f32 %v5957_v6, %v2689_v45 }
0x18e5   :  { %v2707_v1 = vsub.f32 %v5961_v23, %v2689_v45  ;;  %v2708_v19 = vsub.f32 %v5965_v35, %v2689_v45  ;;  %v2709_v0 = vsub.f32 %v5969_v20, %v2689_v45  ;;  %v2710_v8 = vsub.f32 %v5973_v57, %v2689_v45 }
0x18e6   :  { %v2719_v16 = vmul.f32 1.442695, %v2703_v54  ;;  %v2721_v5 = vmul.f32 1.442695, %v2704_v11  ;;  %v2723_v43 = vmul.f32 1.442695, %v2705_v62  ;;  %v2658_v62 = vpop.xlane.xlu1 %2657 }
0x18e7   :  { %v2725_v33 = vmul.f32 1.442695, %v2706_v36  ;;  %v2727_v7 = vmul.f32 1.442695, %v2707_v1  ;;  %v2729_v21 = vmul.f32 1.442695, %v2708_v19 }
0x18e8   :  { %4222 = vpow2.f32 %v2719_v16  ;;  %v2731_v6 = vmul.f32 1.442695, %v2709_v0  ;;  %v2733_v23 = vmul.f32 1.442695, %v2710_v8 }
0x18e9   :  { %4224 = vpow2.f32 %v2721_v5 }
0x18ea   :  { %4226 = vpow2.f32 %v2723_v43 }
0x18eb   :  { %4228 = vpow2.f32 %v2725_v33  ;;  %v2661_v16 = vpop.xlane.xlu2 %2660 }
0x18ec   :  { %4230 = vpow2.f32 %v2727_v7  ;;  %v2690_v1 = vmax.f32 %v2655_v47, %v2661_v16 }
0x18ed   :  { %4232 = vpow2.f32 %v2729_v21 }
0x18ee   :  { %v6015_v61 = vpop.eup %4222  ;;  %4234 = vpow2.f32 %v2731_v6 }
0x18ef   :  { %v6018_v54 = vpop.eup %4224  ;;  %v2751_v11 = vsel %vm578_vm8, %v6015_v61, 0.0  ;;  %4236 = vpow2.f32 %v2733_v23 }
0x18f0   :  { %v6023_v42 = vpop.eup %4226  ;;  %2752 = vadd.xlane.f32.xlu2 %v2751_v11  ;;  %v2754_v28 = vsel %vm578_vm8, %v6018_v54, 0.0 }
0x18f1   :  { %2755 = vadd.xlane.f32.xlu0 %v2754_v28  ;;  %v2757_v49 = vsel %vm578_vm8, %v6023_v42, 0.0  ;;  %v6029_v35 = vpop.eup %4228 }
0x18f2   :  { %2758 = vadd.xlane.f32.xlu1 %v2757_v49  ;;  %v6031_v20 = vpop.eup %4230  ;;  %v2760_v45 = vsel %vm578_vm8, %v6029_v35, 0.0 }
0x18f3   :  { %v6033_v34 = vpop.eup %4232  ;;  %v2763_v57 = vsel %vm578_vm8, %v6031_v20, 0.0  ;;  %v2664_v5 = vpop.xlane.xlu0 %2663 }
0x18f4   :  { %v2766_v52 = vsel %vm578_vm8, %v6033_v34, 0.0  ;;  %v6041_v51 = vpop.eup %4234  ;;  %v2691_v19 = vmax.f32 %v2658_v62, %v2664_v5 }
0x18f5   :  { %v6043_v48 = vpop.eup %4236  ;;  %v2769_v4 = vsel %vm578_vm8, %v6041_v51, 0.0 }
0x18f6   :  { %v2772_v44 = vsel %vm578_vm8, %v6043_v48, 0.0 }
0x18f8   :  { %2761 = vadd.xlane.f32.xlu2 %v2760_v45 }
0x18f9   :  { %2764 = vadd.xlane.f32.xlu0 %v2763_v57 }
0x18fa   :  { %2767 = vadd.xlane.f32.xlu1 %v2766_v52 }
0x18fb   :  { %v2667_v43 = vpop.xlane.xlu1 %2666 }
0x18fc   :  { %v2692_v7 = vmax.f32 %v2690_v1, %v2667_v43 }
0x1900   :  { %2770 = vadd.xlane.f32.xlu2 %v2769_v4 }
0x1901   :  { %2773 = vadd.xlane.f32.xlu0 %v2772_v44 }
0x1903   :  { %v2670_v36 = vpop.xlane.xlu2 %2669 }
0x1904   :  { %v2693_v21 = vmax.f32 %v2691_v19, %v2670_v36 }
0x190b   :  { %v2673_v33 = vpop.xlane.xlu0 %2672 }
0x190c   :  { %v2694_v11 = vmax.f32 %v2692_v7, %v2673_v33 }
0x1913   :  { %v2676_v0 = vpop.xlane.xlu1 %2675 }
0x1914   :  { %v2695_v8 = vmax.f32 %v2693_v21, %v2676_v0 }
0x1916   :  { %v2696_v28 = vmax.f32 %v2694_v11, %v2695_v8 }
0x1918   :  { %v2697_v49 = vrot.slane %v2696_v28, 4 }
0x191a   :  { %v2698_v6 = vmax.f32 %v2696_v28, %v2697_v49 }
0x191c   :  { %v2699_v23 = vrot.slane %v2698_v6, 2 }
0x191e   :  { %v2700_v45 = vmax.f32 %v2698_v6, %v2699_v23 }
0x1920   :  { %v2701_v57 = vrot.slane %v2700_v45, 1 }
0x1922   :  { %v2702_v52 = vmax.f32 %v2700_v45, %v2701_v57 }
0x1924   :  { %v2713_v4 = vsub.f32 %v5985_v31, %v2702_v52  ;;  %v2712_v44 = vsub.f32 %v5981_v25, %v2702_v52  ;;  %v2711_v47 = vsub.f32 %v5977_v14, %v2702_v52  ;;  %v2716_v43 = vsub.f32 %v5997_v58, %v2702_v52 }
0x1925   :  { %v2715_v36 = vsub.f32 %v5993_v13, %v2702_v52  ;;  %v2714_v1 = vsub.f32 %v5989_v30, %v2702_v52  ;;  %v2718_v58 = vsub.f32 %v6005_v39, %v2702_v52  ;;  %v2717_v21 = vsub.f32 %v6001_v56, %v2702_v52 }
0x1926   :  { %v2739_v62 = vmul.f32 1.442695, %v2713_v4  ;;  %v2737_v16 = vmul.f32 1.442695, %v2712_v44  ;;  %v2735_v5 = vmul.f32 1.442695, %v2711_v47 }
0x1927   :  { %v2745_v19 = vmul.f32 1.442695, %v2716_v43  ;;  %v2743_v33 = vmul.f32 1.442695, %v2715_v36  ;;  %v2741_v7 = vmul.f32 1.442695, %v2714_v1 }
0x1928   :  { %4238 = vpow2.f32 %v2739_v62  ;;  %v2749_v11 = vmul.f32 1.442695, %v2718_v58  ;;  %v2747_v28 = vmul.f32 1.442695, %v2717_v21 }
0x1929   :  { %4240 = vpow2.f32 %v2737_v16 }
0x192a   :  { %4242 = vpow2.f32 %v2735_v5 }
0x192b   :  { %4244 = vpow2.f32 %v2745_v19 }
0x192c   :  { %4246 = vpow2.f32 %v2743_v33 }
0x192d   :  { %4248 = vpow2.f32 %v2741_v7 }
0x192e   :  { %v6055_v31 = vpop.eup %4238  ;;  %4250 = vpow2.f32 %v2749_v11 }
0x192f   :  { %v6057_v25 = vpop.eup %4240  ;;  %v2781_v14 = vsel %vm578_vm8, %v6055_v31, 0.0  ;;  %4252 = vpow2.f32 %v2747_v28 }
0x1930   :  { %v6062_v13 = vpop.eup %4242  ;;  %2782 = vadd.xlane.f32.xlu0 %v2781_v14  ;;  %v2778_v30 = vsel %vm578_vm8, %v6057_v25, 0.0 }
0x1931   :  { %2779 = vadd.xlane.f32.xlu2 %v2778_v30  ;;  %v2775_v0 = vsel %vm578_vm8, %v6062_v13, 0.0  ;;  %v6069_v8 = vpop.eup %4244 }
0x1932   :  { %2776 = vadd.xlane.f32.xlu1 %v2775_v0  ;;  %v6071_v49 = vpop.eup %4246  ;;  %v2790_v6 = vsel %vm578_vm8, %v6069_v8, 0.0 }
0x1933   :  { %v6073_v39 = vpop.eup %4248  ;;  %v2787_v56 = vsel %vm578_vm8, %v6071_v49, 0.0 }
0x1934   :  { %v2784_v23 = vsel %vm578_vm8, %v6073_v39, 0.0  ;;  %v6081_v45 = vpop.eup %4250 }
0x1935   :  { %v6083_v57 = vpop.eup %4252  ;;  %v2796_v52 = vsel %vm578_vm8, %v6081_v45, 0.0 }
0x1936   :  { %v2793_v4 = vsel %vm578_vm8, %v6083_v57, 0.0 }
0x1938   :  { %2791 = vadd.xlane.f32.xlu0 %v2790_v6 }
0x1939   :  { %2788 = vadd.xlane.f32.xlu2 %v2787_v56 }
0x193a   :  { %2785 = vadd.xlane.f32.xlu1 %v2784_v23 }
0x1941   :  { %2797 = vadd.xlane.f32.xlu2 %v2796_v52 }
0x1942   :  { %2794 = vadd.xlane.f32.xlu1 %v2793_v4 }
0x1963   :  { %v2753_v44 = vpop.xlane.xlu2 %2752 }
0x1964   :  { %v2756_v47 = vpop.xlane.xlu0 %2755 }
0x1965   :  { %v2799_v62 = vadd.f32 %v2756_v47, %v2753_v44  ;;  %v2759_v16 = vpop.xlane.xlu1 %2758  ;;  %v6094_v44 = vld [vmem:[%s6479_s14 + $0x8] sm:$0xff]  ;;  %v6100_v47 = vld [vmem:[%s6479_s14] sm:$0xff] }
0x1967   :  { %v2800_v5 = vadd.f32 %v2799_v62, %v2759_v16 }
0x196b   :  { %v2762_v43 = vpop.xlane.xlu2 %2761 }
0x196c   :  { %v2801_v36 = vadd.f32 %v2800_v5, %v2762_v43  ;;  %v2765_v1 = vpop.xlane.xlu0 %2764 }
0x196d   :  { %v2768_v33 = vpop.xlane.xlu1 %2767 }
0x196e   :  { %v2802_v19 = vadd.f32 %v2801_v36, %v2765_v1 }
0x1970   :  { %v2803_v7 = vadd.f32 %v2802_v19, %v2768_v33 }
0x1973   :  { %v2771_v14 = vpop.xlane.xlu2 %2770 }
0x1974   :  { %v2804_v58 = vadd.f32 %v2803_v7, %v2771_v14  ;;  %v2774_v30 = vpop.xlane.xlu0 %2773 }
0x1976   :  { %v2805_v21 = vadd.f32 %v2804_v58, %v2774_v30 }
0x1978   :  { %v2806_v0 = vrot.slane %v2805_v21, 4 }
0x197a   :  { %v2807_v11 = vadd.f32 %v2806_v0, %v2805_v21 }
0x197c   :  { %v2808_v28 = vrot.slane %v2807_v11, 2 }
0x197e   :  { %v2809_v6 = vadd.f32 %v2808_v28, %v2807_v11 }
0x1980   :  { %v2810_v56 = vrot.slane %v2809_v6, 1 }
0x1982   :  { %v2811_v23 = vadd.f32 %v2810_v56, %v2809_v6 }
0x1984   :  { %4254 = vrcp.f32 %v2811_v23 }
0x198a   :  { %v4255_v52 = vpop.eup %4254 }
0x198b   :  { %v2827_v4 = vmul.f32 %v4255_v52, %v6015_v61  ;;  %v2828_v62 = vmul.f32 %v4255_v52, %v6018_v54  ;;  %v2829_v61 = vmul.f32 %v4255_v52, %v6023_v42  ;;  %v2830_v16 = vmul.f32 %v4255_v52, %v6029_v35 }
0x198c   :  { %v2831_v19 = vmul.f32 %v4255_v52, %v6031_v20  ;;  %v2832_v30 = vmul.f32 %v4255_v52, %v6033_v34  ;;  %v2833_v20 = vmul.f32 %v4255_v52, %v6041_v51 }
0x198d   :  { %3893 = vmatmul.msk.f32.vlgmr.msra.gmra.mxu3 %vm578_vm8, %v2827_v4 }
0x198e   :  { %3763 = vmatpush.msra.mxu3 %v6094_v44 }
0x1990   :  { %3764 = vmatpush.msra.mxu3 %v6100_v47 }
0x1995   :  { %3894 = vmatmul.msk.f32.gmra.mxu3 %vm578_vm8, %v2828_v62 }
0x199d   :  { %3895 = vmatmul.msk.f32.gmra.mxu3 %vm578_vm8, %v2829_v61  ;;  %v2834_v61 = vmul.f32 %v4255_v52, %v6043_v48 }
0x19a3   :  { %v2783_v1 = vpop.xlane.xlu0 %2782 }
0x19a4   :  { %v2780_v5 = vpop.xlane.xlu2 %2779 }
0x19a5   :  { %v2777_v43 = vpop.xlane.xlu1 %2776  ;;  %3896 = vmatmul.msk.f32.gmra.mxu3 %vm578_vm8, %v2830_v16 }
0x19a6   :  { %v2812_v36 = vadd.f32 %v2780_v5, %v2777_v43 }
0x19a8   :  { %v2813_v33 = vadd.f32 %v2812_v36, %v2783_v1 }
0x19ab   :  { %v2792_v42 = vpop.xlane.xlu0 %2791 }
0x19ac   :  { %v2789_v7 = vpop.xlane.xlu2 %2788 }
0x19ad   :  { %v2786_v14 = vpop.xlane.xlu1 %2785  ;;  %3897 = vmatmul.msk.f32.gmra.mxu3 %vm578_vm8, %v2831_v19 }
0x19ae   :  { %v2814_v54 = vadd.f32 %v2813_v33, %v2786_v14 }
0x19b0   :  { %v2815_v58 = vadd.f32 %v2814_v54, %v2789_v7 }
0x19b2   :  { %v2816_v21 = vadd.f32 %v2815_v58, %v2792_v42 }
0x19b4   :  { %v2798_v11 = vpop.xlane.xlu2 %2797 }
0x19b5   :  { %v2795_v35 = vpop.xlane.xlu1 %2794  ;;  %3898 = vmatmul.msk.f32.gmra.mxu3 %vm578_vm8, %v2832_v30 }
0x19b6   :  { %v2817_v0 = vadd.f32 %v2816_v21, %v2795_v35 }
0x19b8   :  { %v2818_v28 = vadd.f32 %v2817_v0, %v2798_v11 }
0x19ba   :  { %v2819_v6 = vrot.slane %v2818_v28, 4 }
0x19bc   :  { %v2820_v56 = vadd.f32 %v2819_v6, %v2818_v28 }
0x19bd   :  { %3899 = vmatmul.msk.f32.gmra.mxu3 %vm578_vm8, %v2833_v20 }
0x19be   :  { %v2821_v23 = vrot.slane %v2820_v56, 2 }
0x19c0   :  { %v2822_v4 = vadd.f32 %v2821_v23, %v2820_v56 }
0x19c2   :  { %v2823_v62 = vrot.slane %v2822_v4, 1 }
0x19c4   :  { %v2824_v16 = vadd.f32 %v2823_v62, %v2822_v4 }
0x19c5   :  { %3900 = vmatmul.msk.f32.gmra.mxu3 %vm578_vm8, %v2834_v61 }
0x19c6   :  { %4256 = vrcp.f32 %v2824_v16 }
0x19cc   :  { %v4257_v34 = vpop.eup %4256 }
0x19cd   :  { %v2835_v5 = vmul.f32 %v4257_v34, %v6062_v13  ;;  %v2836_v43 = vmul.f32 %v4257_v34, %v6057_v25  ;;  %v2837_v51 = vmul.f32 %v4257_v34, %v6055_v31  ;;  %v2838_v36 = vmul.f32 %v4257_v34, %v6073_v39 }
0x19ce   :  { %v2839_v48 = vmul.f32 %v4257_v34, %v6071_v49  ;;  %v2840_v13 = vmul.f32 %v4257_v34, %v6069_v8  ;;  %v2841_v25 = vmul.f32 %v4257_v34, %v6083_v57  ;;  %v2842_v31 = vmul.f32 %v4257_v34, %v6081_v45 }
0x19cf   :  { %3901 = vmatmul.msk.f32.gmra.mxu3 %vm578_vm8, %v2835_v5 }
0x19d7   :  { %3902 = vmatmul.msk.f32.gmra.mxu3 %vm578_vm8, %v2836_v43 }
0x19df   :  { %3903 = vmatmul.msk.f32.gmra.mxu3 %vm578_vm8, %v2837_v51 }
0x19e7   :  { %3904 = vmatmul.msk.f32.gmra.mxu3 %vm578_vm8, %v2838_v36 }
0x19ef   :  { %3905 = vmatmul.msk.f32.gmra.mxu3 %vm578_vm8, %v2839_v48 }
0x19f7   :  { %3906 = vmatmul.msk.f32.gmra.mxu3 %vm578_vm8, %v2840_v13 }
0x19ff   :  { %3907 = vmatmul.msk.f32.gmra.mxu3 %vm578_vm8, %v2841_v25 }
0x1a07   :  { %3908 = vmatmul.msk.f32.gmra.mxu3 %vm578_vm8, %v2842_v31 }
0x1a10   :  { %v2908_v52 = vpop.f32.mrf.mxu3 }
0x1a11   :  { %v2956_v8 = vmul.f32 %v2908_v52, %v4670_v17 }
0x1a18   :  { %v2911_v39 = vpop.f32.mrf.mxu3 }
0x1a19   :  { %v2957_v7 = vmul.f32 %v2911_v39, %v4683_v22 }
0x1a1b   :  { %v2972_v54 = vadd.f32 %v2957_v7, %v2956_v8 }
0x1a20   :  { %v2914_v1 = vpop.f32.mrf.mxu3 }
0x1a21   :  { %v2958_v14 = vmul.f32 %v2914_v1, %v4698_v24 }
0x1a23   :  { %v2973_v42 = vadd.f32 %v2972_v54, %v2958_v14 }
0x1a28   :  { %v2917_v19 = vpop.f32.mrf.mxu3 }
0x1a29   :  { %v2959_v57 = vmul.f32 %v2917_v19, %v4702_v26 }
0x1a2b   :  { %v2974_v30 = vadd.f32 %v2973_v42, %v2959_v57 }
0x1a30   :  { %v2920_v33 = vpop.f32.mrf.mxu3 }
0x1a31   :  { %v2960_v45 = vmul.f32 %v2920_v33, %v4706_v29 }
0x1a33   :  { %v2975_v35 = vadd.f32 %v2974_v30, %v2960_v45 }
0x1a38   :  { %v2923_v49 = vpop.f32.mrf.mxu3 }
0x1a39   :  { %v2961_v21 = vmul.f32 %v2923_v49, %v4710_v32 }
0x1a3b   :  { %v2976_v11 = vadd.f32 %v2975_v35, %v2961_v21 }
0x1a40   :  { %v2926_v58 = vpop.f32.mrf.mxu3 }
0x1a41   :  { %v2962_v0 = vmul.f32 %v2926_v58, %v4716_v37 }
0x1a43   :  { %v2977_v6 = vadd.f32 %v2976_v11, %v2962_v0 }
0x1a48   :  { %v2929_v28 = vpop.f32.mrf.mxu3 }
0x1a49   :  { %v2963_v20 = vmul.f32 %v2929_v28, %v4720_v41 }
0x1a4b   :  { %v2978_v56 = vadd.f32 %v2977_v6, %v2963_v20 }
0x1a4d   :  { %v2979_v23 = vrot.slane %v2978_v56, 4 }
0x1a4f   :  { %v2980_v4 = vadd.f32 %v2979_v23, %v2978_v56 }
0x1a51   :  { %v2981_v62 = vrot.slane %v2980_v4, 2 }
0x1a52   :  { %v2932_v61 = vpop.f32.mrf.mxu3 }
0x1a53   :  { %v2982_v16 = vadd.f32 %v2981_v62, %v2980_v4  ;;  %v2964_v31 = vmul.f32 %v2932_v61, %v4724_v40 }
0x1a55   :  { %v2983_v34 = vrot.slane %v2982_v16, 1 }
0x1a57   :  { %v2984_v5 = vadd.f32 %v2983_v34, %v2982_v16 }
0x1a59   :  { %3008 = vrot.lane.b32.xlu0 %v2984_v5, %s4404_s23  ;;  %3000 = vrot.lane.b32.xlu1 %v2984_v5, %s4406_s25 }
0x1a5a   :  { %v2935_v43 = vpop.f32.mrf.mxu3 }
0x1a5b   :  { %v2965_v25 = vmul.f32 %v2935_v43, %v4728_v46 }
0x1a5d   :  { %v2985_v39 = vadd.f32 %v2965_v25, %v2964_v31  ;;  %v4383_v31 = vld [vmem:[%s6468_s7 + $0x10] sm:$0xff] }
0x1a62   :  { %v2938_v51 = vpop.f32.mrf.mxu3 }
0x1a63   :  { %v2966_v52 = vmul.f32 %v2938_v51, %v4732_v50 }
0x1a65   :  { %v2986_v33 = vadd.f32 %v2985_v39, %v2966_v52  ;;  %v4384_v52 = vld [vmem:[%s6468_s7 + $0x8] sm:$0xff] }
0x1a6a   :  { %v2941_v36 = vpop.f32.mrf.mxu3 }
0x1a6b   :  { %v2967_v1 = vmul.f32 %v2941_v36, %v4736_v53 }
0x1a6d   :  { %v2987_v7 = vadd.f32 %v2986_v33, %v2967_v1  ;;  %v4386_v33 = vld [vmem:[%s6475_s10 + $0x78] sm:$0xff] }
0x1a72   :  { %v2944_v48 = vpop.f32.mrf.mxu3 }
0x1a73   :  { %v2968_v49 = vmul.f32 %v2944_v48, %v4752_v60 }
0x1a75   :  { %v2988_v14 = vadd.f32 %v2987_v7, %v2968_v49  ;;  %v4387_v49 = vld [vmem:[%s6475_s10 + $0x70] sm:$0xff]  ;;  %v4388_v7 = vld [vmem:[%s6475_s10 + $0x68] sm:$0xff] }
0x1a7a   :  { %v2947_v13 = vpop.f32.mrf.mxu3 }
0x1a7b   :  { %v2969_v8 = vmul.f32 %v2947_v13, %v4756_v63 }
0x1a7d   :  { %v2989_v57 = vadd.f32 %v2988_v14, %v2969_v8  ;;  %v4389_v8 = vld [vmem:[%s6475_s10 + $0x60] sm:$0xff]  ;;  %v4391_v14 = vld [vmem:[%s6475_s10 + $0x50] sm:$0xff] }
0x1a82   :  { %v2950_v19 = vpop.f32.mrf.mxu3 }
0x1a83   :  { %v2970_v54 = vmul.f32 %v2950_v19, %v4760_v2 }
0x1a85   :  { %v2990_v42 = vadd.f32 %v2989_v57, %v2970_v54  ;;  %v4392_v54 = vld [vmem:[%s6475_s10 + $0x48] sm:$0xff]  ;;  %v4393_v57 = vld [vmem:[%s6475_s10 + $0x40] sm:$0xff] }
0x1a8a   :  { %v2953_v58 = vpop.f32.mrf.mxu3 }
0x1a8b   :  { %v2971_v45 = vmul.f32 %v2953_v58, %v4764_v9  ;;  %v4395_v58 = vld [vmem:[%s6475_s10 + $0x30] sm:$0xff] }
0x1a8d   :  { %v2991_v30 = vadd.f32 %v2990_v42, %v2971_v45  ;;  %v4396_v42 = vld [vmem:[%s6475_s10 + $0x28] sm:$0xff]  ;;  %v4397_v45 = vld [vmem:[%s6475_s10 + $0x20] sm:$0xff] }
0x1a8f   :  { %v2992_v21 = vrot.slane %v2991_v30, 4 }
0x1a91   :  { %v2993_v35 = vadd.f32 %v2992_v21, %v2991_v30  ;;  %v4398_v30 = vld [vmem:[%s6475_s10 + $0x18] sm:$0xff]  ;;  %v4399_v21 = vld [vmem:[%s6475_s10 + $0x10] sm:$0xff] }
0x1a93   :  { %v2994_v0 = vrot.slane %v2993_v35, 2 }
0x1a95   :  { %v2995_v11 = vadd.f32 %v2994_v0, %v2993_v35  ;;  %v4400_v35 = vld [vmem:[%s6475_s10 + $0x8] sm:$0xff]  ;;  %v4401_v0 = vld [vmem:[%s6475_s10] sm:$0xff] }
0x1a97   :  { %v2996_v28 = vrot.slane %v2995_v11, 1 }
0x1a99   :  { %v2997_v6 = vadd.f32 %v2996_v28, %v2995_v11 }
0x1a9b   :  { %3010 = vrot.lane.b32.xlu2 %v2997_v6, %s4404_s23  ;;  %3002 = vrot.lane.b32.xlu0 %v2997_v6, %s4406_s25 }
0x1aa3   :  { %3016 = vrot.lane.b32.xlu2 %v2984_v5, %s4405_s1  ;;  %3018 = vrot.lane.b32.xlu0 %v2997_v6, %s4405_s1 }
0x1acb   :  { %v3009_v20 = vpop.permute.xlu0 %3008  ;;  %v3001_v4 = vpop.permute.xlu1 %3000 }
0x1acc   :  { %v3006_v61 = vadd.f32 %v3001_v4, %v2984_v5  ;;  %v4382_v5 = vld [vmem:[%s6468_s7 + $0x18] sm:$0xff] }
0x1ace   :  { %v3014_v51 = vadd.f32 %v3009_v20, %v3006_v61  ;;  %v6583_v20 = vld [vmem:[#allocation2_spill] sm:$0xff] }
0x1af5   :  { %v3011_v56 = vpop.permute.xlu2 %3010 }
0x1afd   :  { %v3017_v34 = vpop.permute.xlu2 %3016 }
0x1afe   :  { %v3022_v48 = vadd.f32 %v3017_v34, %v3014_v51 }
0x1b0d   :  { %v3003_v23 = vpop.permute.xlu0 %3002 }
0x1b0e   :  { %v3007_v62 = vadd.f32 %v3003_v23, %v2997_v6  ;;  %v4402_v6 = vld [vmem:[%s6469_s8] ss:$0 sm:$0xff]  ;;  %s4407_s8 = smov 24  }
0x1b10   :  { %v3015_v16 = vadd.f32 %v3011_v56, %v3007_v62  ;;  %v363_v56 = vadd.f32 %v4402_v6, %v6583_v20  ;;  %v6584_v6 = vld [vmem:[#allocation10_spill] sm:$0xff] }
0x1b15   :  { %v3019_v43 = vpop.permute.xlu0 %3018 }
0x1b16   :  { %v3023_v36 = vadd.f32 %v3019_v43, %v3015_v16 }
0x1b18   :  { %v3026_v13 = vrot.slane %v3023_v36, 7 }
0x1b1a   :  { %v3027_v25 = vsel %vm980_vm9, %v3026_v13, %v3022_v48 }
0x1b1b   :  { %3909 = vmatmul.msk.f32.vlgmr.msrb.gmra.mxu2 %vm389_vm7, %v3027_v25 }
0x1b1c   :  { %3088 = vmatpush.msrb.mxu2 %v6094_v44  ;;  %v4385_v44 = vld [vmem:[%s6468_s7] sm:$0xff] }
0x1b1e   :  { %3089 = vmatpush.msrb.mxu2 %v6100_v47 }
0x1b23   :  { %3910 = vmatmul.msk.f32.vlgmr.msra.gmra.mxu2 %vm389_vm7, %v5921_v59 }
0x1b24   :  { %3127 = vmatpush.msra.mxu2 %v4382_v5 }
0x1b26   :  { %3128 = vmatpush.msra.mxu2 %v4383_v31 }
0x1b28   :  { %3129 = vmatpush.msra.mxu2 %v4384_v52 }
0x1b2a   :  { %3130 = vmatpush.msra.mxu2 %v4385_v44 }
0x1b9e   :  { %v3047_v47 = vpop.f32.mrf.mxu2 }
0x1ba6   :  { %v3067_v39 = vpop.f32.mrf.mxu2 }
0x1ba7   :  { %v3068_v1 = vadd.f32 %v3067_v39, %v3047_v47 }
0x1ba9   :  { %4258 = vtanh.f32 %v3068_v1 }
0x1baf   :  { %v4259_v19 = vpop.eup %4258 }
0x1bb0   :  { %3911 = vmatmul.msk.f32.vlgmr.msrb.gmra.mxu2 %vm335_vm0, %v4259_v19  ;;  %3912 = vmatmul.msk.f32.vlgmr.msrb.gmra.mxu1 %vm335_vm0, %v4259_v19  ;;  %v3157_v19 = vrot.slane %v5916_v55, 6 }
0x1bb1   :  { %3239 = vmatpush.msrb.mxu2 %v4386_v33  ;;  %3916 = vmatpush.msk.msrb.mxu1 %vm124_vm1, %v5892_v27  ;;  %v4390_v27 = vld [vmem:[%s6475_s10 + $0x58] sm:$0xff] }
0x1bb3   :  { %3240 = vmatpush.msrb.mxu2 %v4387_v49 }
0x1bb5   :  { %3241 = vmatpush.msrb.mxu2 %v4388_v7 }
0x1bb7   :  { %3242 = vmatpush.msrb.mxu2 %v4389_v8 }
0x1bb8   :  { %3913 = vmatmul.msk.f32.vlgmr.msra.gmra.mxu2 %vm389_vm7, %v5921_v59  ;;  %v4394_v59 = vld [vmem:[%s6475_s10 + $0x38] sm:$0xff]  ;;  %s4408_s10 = smov 72  }
0x1bb9   :  { %3243 = vmatpush.msrb.mxu2 %v4390_v27 }
0x1bbb   :  { %3244 = vmatpush.msrb.mxu2 %v4391_v14 }
0x1bbd   :  { %3245 = vmatpush.msrb.mxu2 %v4392_v54 }
0x1bbf   :  { %3246 = vmatpush.msrb.mxu2 %v4393_v57 }
0x1bc1   :  { %3247 = vmatpush.msrb.mxu2 %v4394_v59 }
0x1bc3   :  { %3248 = vmatpush.msrb.mxu2 %v4395_v58 }
0x1bc5   :  { %3249 = vmatpush.msrb.mxu2 %v4396_v42 }
0x1bc7   :  { %3250 = vmatpush.msrb.mxu2 %v4397_v45 }
0x1bc9   :  { %3251 = vmatpush.msrb.mxu2 %v4398_v30 }
0x1bcb   :  { %3252 = vmatpush.msrb.mxu2 %v4399_v21 }
0x1bcd   :  { %3253 = vmatpush.msrb.mxu2 %v4400_v35 }
0x1bcf   :  { %3254 = vmatpush.msrb.mxu2 %v4401_v0 }
0x1c2d   :  { %v3111_v28 = vpop.f32.mrf.mxu1 }
0x1c2e   :  { %v3114_v23 = vadd.f32 %v3111_v28, %v363_v56 }
0x1c33   :  { %v6227_v11 = vpop.f32.mrf.mxu2 }
0x1c3b   :  { %v3132_v4 = vpop.f32.mrf.mxu2 }
0x1c3c   :  { %v3135_v62 = vadd.f32 %v3132_v4, %v3114_v23 }
0x1c3e   :  { %4260 = vtanh.f32 %v3135_v62  ;;  %v3914_v16 = vmul.f32 -1.442695, %v3135_v62 }
0x1c40   :  { %4262 = vpow2.f32 %v3914_v16 }
0x1c44   :  { %v4261_v61 = vpop.eup %4260 }
0x1c45   :  { %3161 = vrot.lane.b32.xlu1 %v4261_v61, %s4404_s23 }
0x1c46   :  { %v4263_v34 = vpop.eup %4262 }
0x1c47   :  { %v3139_v43 = vadd.f32 1.0, %v4263_v34 }
0x1c49   :  { %4264 = vrcp.f32 %v3139_v43  ;;  %v3151_v5 = vand.u32 2147483648, %v3139_v43  ;;  %vm3145_vm11 = vweird.f32 %v3139_v43  ;;  %v3149_v31 = vand.u32 2147483647, %v3139_v43 }
0x1c4b   :  { %v3152_v44 = vor.u32 1.1754944e-38, %v3151_v5  ;;  %vm3150_vm13 = vcmp.eq.f32.partialorder %v3149_v31, 8.507059e+37  ;;  %v6590_v31 = vld [vmem:[#allocation16_spill] sm:$0xff] }
0x1c4f   :  { %v4265_v51 = vpop.eup %4264 }
0x1c50   :  { %v3141_v36 = vmul.f32 %v4265_v51, %v3139_v43  ;;  %vm3146_vm1 = vweird.f32 %v4265_v51 }
0x1c51   :  { %vm3147_vm12 = vmor %vm3145_vm11, %vm3146_vm1 }
0x1c52   :  { %v3142_v48 = vsub.f32 1.0, %v3141_v36 }
0x1c54   :  { %v3143_v13 = vmul.f32 %v4265_v51, %v3142_v48 }
0x1c56   :  { %v3144_v25 = vadd.f32 %v4265_v51, %v3143_v13  ;;  %v6589_v13 = vld [vmem:[#allocation15_spill] sm:$0xff] }
0x1c58   :  { %v3148_v52 = vsel %vm3147_vm12, %v4265_v51, %v3144_v25  ;;  %v6588_v51 = vld [vmem:[#allocation14_spill] sm:$0xff] }
0x1c59   :  { %v3153_v39 = vsel %vm3150_vm13, %v3152_v44, %v3148_v52 }
0x1c5a   :  { %v3159_v33 = vmul.f32 %v3157_v19, %v3153_v39  ;;  %v6592_v19 = vld [vmem:[#allocation18_spill] sm:$0xff] }
0x1cb7   :  { %v3162_v47 = vpop.permute.xlu1 %3161 }
0x1cb8   :  { %v3164_v1 = vmul.f32 %v3162_v47, %v3153_v39  ;;  %v6591_v47 = vld [vmem:[#allocation17_spill] sm:$0xff] }
0x1cba   :  { %3166 = vrot.lane.b32.xlu0 %v3164_v1, %s4405_s1 }
0x1d2c   :  { %v3167_v49 = vpop.permute.xlu0 %3166 }
0x1d2d   :  { %v3169_v7 = vadd.f32 %v3167_v49, %v3159_v33 }
0x1d2f   :  { %4266 = vtanh.f32 %v3169_v7  ;;  %v6593_v7 = vld [vmem:[#allocation19_spill] sm:$0xff] }
0x1d35   :  { %v4267_v8 = vpop.eup %4266 }
0x1d36   :  { %3172 = vrot.lane.b32.xlu2 %v4267_v8, %s4404_s23 }
0x1d90   :  { %v3173_v27 = vpop.permute.xlu2 %3172 }
0x1d91   :  { %v3175_v14 = vmul.f32 %v3173_v27, %v3153_v39 }
0x1d93   :  { %3177 = vrot.lane.b32.xlu1 %v3175_v14, %s4405_s1 }
0x1e05   :  { %v3178_v54 = vpop.permute.xlu1 %3177 }
0x1e06   :  { %3915 = vmatmul.msk.f32.vlgmr.msra.gmra.mxu1 %vm389_vm7, %v3178_v54  ;;  %3934 = vmatmul.msk.f32.vlgmr.msrb.gmra.mxu0 %vm389_vm7, %v3178_v54 }
0x1e83   :  { %v3198_v57 = vpop.f32.mrf.mxu1 }
0x1e84   :  { %v3203_v59 = vperm.slane %v3198_v57, 0  ;;  %v3202_v56 = vrot.slane %v3198_v57, 1 }
0x1e86   :  { %v3207_v55 = vadd.f32 %v3203_v59, %v6567_v12  ;;  %v3208_v58 = vadd.f32 %v3203_v59, %v6568_v10  ;;  %v3209_v45 = vadd.f32 %v3203_v59, %v6569_v38  ;;  %v3210_v21 = vadd.f32 %v3203_v59, %v6570_v3  ;;  %v6585_v3 = vld [vmem:[#allocation11_spill] sm:$0xff] }
0x1e87   :  { %v3211_v0 = vadd.f32 %v3203_v59, %v6571_v18  ;;  %v3212_v12 = vadd.f32 %v3203_v59, %v6572_v15  ;;  %v3213_v38 = vadd.f32 %v3203_v59, %v6584_v6  ;;  %v3214_v23 = vadd.f32 %v3203_v59, %v6585_v3  ;;  %v6586_v18 = vld [vmem:[#allocation12_spill] sm:$0xff]  ;;  %v6587_v15 = vld [vmem:[#allocation13_spill] sm:$0xff] }
0x1e88   :  { %4268 = vtanh.f32 %v3207_v55  ;;  %v3204_v62 = vperm.slane %v3202_v56, 0 }
0x1e89   :  { %4270 = vtanh.f32 %v3208_v58 }
0x1e8a   :  { %4272 = vtanh.f32 %v3209_v45  ;;  %v3215_v61 = vadd.f32 %v3204_v62, %v6586_v18  ;;  %v3216_v34 = vadd.f32 %v3204_v62, %v6587_v15  ;;  %v3217_v36 = vadd.f32 %v3204_v62, %v6588_v51 }
0x1e8b   :  { %4274 = vtanh.f32 %v3210_v21  ;;  %v3218_v25 = vadd.f32 %v3204_v62, %v6589_v13  ;;  %v3219_v52 = vadd.f32 %v3204_v62, %v6590_v31  ;;  %v3220_v39 = vadd.f32 %v3204_v62, %v6591_v47 }
0x1e8c   :  { %4276 = vtanh.f32 %v3211_v0  ;;  %v3221_v33 = vadd.f32 %v3204_v62, %v6592_v19  ;;  %v3222_v8 = vadd.f32 %v3204_v62, %v6593_v7 }
0x1e8d   :  { %4278 = vtanh.f32 %v3212_v12 }
0x1e8e   :  { %v4269_v42 = vpop.eup %4268  ;;  %4280 = vtanh.f32 %v3213_v38 }
0x1e8f   :  { %3255 = vmatmul.f32.vlgmr.msrb.gmra.mxu2 %v4269_v42  ;;  %v4271_v30 = vpop.eup %4270  ;;  %4282 = vtanh.f32 %v3214_v23 }
0x1e90   :  { %v4273_v35 = vpop.eup %4272  ;;  %4284 = vtanh.f32 %v3215_v61 }
0x1e91   :  { %v4275_v28 = vpop.eup %4274  ;;  %4286 = vtanh.f32 %v3216_v34 }
0x1e92   :  { %v4277_v10 = vpop.eup %4276  ;;  %4288 = vtanh.f32 %v3217_v36 }
0x1e93   :  { %v4279_v20 = vpop.eup %4278  ;;  %4290 = vtanh.f32 %v3218_v25 }
0x1e94   :  { %v4281_v4 = vpop.eup %4280  ;;  %4292 = vtanh.f32 %v3219_v52 }
0x1e95   :  { %v4283_v16 = vpop.eup %4282  ;;  %4294 = vtanh.f32 %v3220_v39 }
0x1e96   :  { %v4285_v43 = vpop.eup %4284  ;;  %4296 = vtanh.f32 %v3221_v33 }
0x1e97   :  { %3258 = vmatmul.f32.gmra.mxu2 %v4271_v30  ;;  %v4287_v48 = vpop.eup %4286  ;;  %4298 = vtanh.f32 %v3222_v8 }
0x1e98   :  { %v4289_v5 = vpop.eup %4288 }
0x1e99   :  { %v4291_v44 = vpop.eup %4290 }
0x1e9a   :  { %v4293_v1 = vpop.eup %4292 }
0x1e9b   :  { %v4295_v49 = vpop.eup %4294 }
0x1e9c   :  { %v4297_v27 = vpop.eup %4296 }
0x1e9d   :  { %v4299_v14 = vpop.eup %4298 }
0x1e9f   :  { %3261 = vmatmul.f32.gmra.mxu2 %v4273_v35 }
0x1ea7   :  { %3264 = vmatmul.f32.gmra.mxu2 %v4275_v28 }
0x1eaf   :  { %3267 = vmatmul.f32.gmra.mxu2 %v4277_v10 }
0x1eb7   :  { %3270 = vmatmul.f32.gmra.mxu2 %v4279_v20 }
0x1ebf   :  { %3273 = vmatmul.f32.gmra.mxu2 %v4281_v4 }
0x1ec7   :  { %3276 = vmatmul.f32.gmra.mxu2 %v4283_v16 }
0x1ecf   :  { %3279 = vmatmul.f32.gmra.mxu2 %v4285_v43 }
0x1ed7   :  { %3282 = vmatmul.f32.gmra.mxu2 %v4287_v48 }
0x1edf   :  { %3285 = vmatmul.f32.gmra.mxu2 %v4289_v5 }
0x1ee7   :  { %3288 = vmatmul.f32.gmra.mxu2 %v4291_v44 }
0x1eef   :  { %3291 = vmatmul.f32.gmra.mxu2 %v4293_v1 }
0x1ef7   :  { %3294 = vmatmul.f32.gmra.mxu2 %v4295_v49 }
0x1eff   :  { %3297 = vmatmul.f32.gmra.mxu2 %v4297_v27 }
0x1f07   :  { %3300 = vmatmul.f32.gmra.mxu2 %v4299_v14 }
0x1f12   :  { %v6256_v54 = vpop.f32.mrf.mxu2 }
0x1f13   :  { %v3304_v57 = vsel %vm578_vm8, %v6256_v54, -inf }
0x1f14   :  { %3305 = vmax.xlane.f32.xlu0 %v3304_v57 }
0x1f1a   :  { %v6260_v59 = vpop.f32.mrf.mxu2 }
0x1f1b   :  { %v3307_v55 = vsel %vm578_vm8, %v6260_v59, -inf }
0x1f1c   :  { %3308 = vmax.xlane.f32.xlu2 %v3307_v55 }
0x1f22   :  { %v6264_v58 = vpop.f32.mrf.mxu2 }
0x1f23   :  { %v3310_v42 = vsel %vm578_vm8, %v6264_v58, -inf }
0x1f24   :  { %3311 = vmax.xlane.f32.xlu1 %v3310_v42 }
0x1f2a   :  { %v6268_v45 = vpop.f32.mrf.mxu2 }
0x1f2b   :  { %v3313_v30 = vsel %vm578_vm8, %v6268_v45, -inf }
0x1f2c   :  { %3314 = vmax.xlane.f32.xlu0 %v3313_v30 }
0x1f32   :  { %v6272_v21 = vpop.f32.mrf.mxu2 }
0x1f33   :  { %v3316_v35 = vsel %vm578_vm8, %v6272_v21, -inf }
0x1f34   :  { %3317 = vmax.xlane.f32.xlu2 %v3316_v35 }
0x1f3a   :  { %v6276_v0 = vpop.f32.mrf.mxu2 }
0x1f3b   :  { %v3319_v28 = vsel %vm578_vm8, %v6276_v0, -inf }
0x1f3c   :  { %3320 = vmax.xlane.f32.xlu1 %v3319_v28 }
0x1f42   :  { %v6280_v12 = vpop.f32.mrf.mxu2 }
0x1f43   :  { %v3322_v10 = vsel %vm578_vm8, %v6280_v12, -inf }
0x1f44   :  { %3323 = vmax.xlane.f32.xlu0 %v3322_v10 }
0x1f4a   :  { %v6284_v6 = vpop.f32.mrf.mxu2 }
0x1f4b   :  { %v3325_v38 = vsel %vm578_vm8, %v6284_v6, -inf }
0x1f4c   :  { %3326 = vmax.xlane.f32.xlu2 %v3325_v38 }
0x1f52   :  { %v6288_v20 = vpop.f32.mrf.mxu2 }
0x1f53   :  { %v3328_v56 = vsel %vm578_vm8, %v6288_v20, -inf }
0x1f54   :  { %3329 = vmax.xlane.f32.xlu1 %v3328_v56 }
0x1f5a   :  { %v6292_v3 = vpop.f32.mrf.mxu2 }
0x1f5b   :  { %v3331_v23 = vsel %vm578_vm8, %v6292_v3, -inf }
0x1f5c   :  { %3332 = vmax.xlane.f32.xlu0 %v3331_v23 }
0x1f62   :  { %v6296_v4 = vpop.f32.mrf.mxu2 }
0x1f63   :  { %v3334_v62 = vsel %vm578_vm8, %v6296_v4, -inf }
0x1f64   :  { %3335 = vmax.xlane.f32.xlu2 %v3334_v62 }
0x1f6a   :  { %v6300_v18 = vpop.f32.mrf.mxu2 }
0x1f6b   :  { %v3337_v61 = vsel %vm578_vm8, %v6300_v18, -inf }
0x1f6c   :  { %3338 = vmax.xlane.f32.xlu1 %v3337_v61 }
0x1f72   :  { %v6304_v16 = vpop.f32.mrf.mxu2 }
0x1f73   :  { %v3340_v15 = vsel %vm578_vm8, %v6304_v16, -inf }
0x1f74   :  { %3341 = vmax.xlane.f32.xlu0 %v3340_v15 }
0x1f7a   :  { %v6308_v34 = vpop.f32.mrf.mxu2 }
0x1f7b   :  { %v3343_v43 = vsel %vm578_vm8, %v6308_v34, -inf }
0x1f7c   :  { %3344 = vmax.xlane.f32.xlu2 %v3343_v43 }
0x1f82   :  { %v6312_v51 = vpop.f32.mrf.mxu2 }
0x1f83   :  { %v3346_v36 = vsel %vm578_vm8, %v6312_v51, -inf }
0x1f84   :  { %3347 = vmax.xlane.f32.xlu1 %v3346_v36 }
0x1f87   :  { %v3306_v25 = vpop.xlane.xlu0 %3305 }
0x1f8a   :  { %v6316_v48 = vpop.f32.mrf.mxu2 }
0x1f8b   :  { %v3349_v13 = vsel %vm578_vm8, %v6316_v48, -inf }
0x1f8c   :  { %3350 = vmax.xlane.f32.xlu0 %v3349_v13 }
0x1f8f   :  { %v3309_v5 = vpop.xlane.xlu2 %3308 }
0x1f97   :  { %v3312_v31 = vpop.xlane.xlu1 %3311 }
0x1f98   :  { %v3352_v39 = vmax.f32 %v3306_v25, %v3312_v31 }
0x1f9f   :  { %v3315_v52 = vpop.xlane.xlu0 %3314 }
0x1fa0   :  { %v3353_v1 = vmax.f32 %v3309_v5, %v3315_v52 }
0x1fa7   :  { %v3318_v44 = vpop.xlane.xlu2 %3317 }
0x1fa8   :  { %v3354_v33 = vmax.f32 %v3352_v39, %v3318_v44 }
0x1faf   :  { %v3321_v47 = vpop.xlane.xlu1 %3320 }
0x1fb0   :  { %v3355_v49 = vmax.f32 %v3353_v1, %v3321_v47 }
0x1fb7   :  { %v3324_v19 = vpop.xlane.xlu0 %3323 }
0x1fb8   :  { %v3356_v8 = vmax.f32 %v3354_v33, %v3324_v19 }
0x1fbf   :  { %v3327_v7 = vpop.xlane.xlu2 %3326 }
0x1fc0   :  { %v3357_v27 = vmax.f32 %v3355_v49, %v3327_v7 }
0x1fc2   :  { %v3358_v14 = vmax.f32 %v3356_v8, %v3357_v27 }
0x1fc4   :  { %v3359_v57 = vrot.slane %v3358_v14, 4 }
0x1fc6   :  { %v3360_v55 = vmax.f32 %v3358_v14, %v3359_v57 }
0x1fc7   :  { %v3330_v14 = vpop.xlane.xlu1 %3329 }
0x1fc8   :  { %v3361_v42 = vrot.slane %v3360_v55, 2 }
0x1fca   :  { %v3362_v30 = vmax.f32 %v3360_v55, %v3361_v42 }
0x1fcc   :  { %v3363_v35 = vrot.slane %v3362_v30, 1 }
0x1fce   :  { %v3364_v28 = vmax.f32 %v3362_v30, %v3363_v35 }
0x1fcf   :  { %v3333_v57 = vpop.xlane.xlu0 %3332 }
0x1fd0   :  { %v3378_v10 = vsub.f32 %v6256_v54, %v3364_v28  ;;  %v3379_v38 = vsub.f32 %v6260_v59, %v3364_v28  ;;  %v3380_v56 = vsub.f32 %v6264_v58, %v3364_v28  ;;  %v3381_v15 = vsub.f32 %v6268_v45, %v3364_v28 }
0x1fd1   :  { %v3382_v43 = vsub.f32 %v6272_v21, %v3364_v28  ;;  %v3383_v36 = vsub.f32 %v6276_v0, %v3364_v28  ;;  %v3384_v59 = vsub.f32 %v6280_v12, %v3364_v28  ;;  %v3385_v21 = vsub.f32 %v6284_v6, %v3364_v28 }
0x1fd2   :  { %v3394_v23 = vmul.f32 1.442695, %v3378_v10  ;;  %v3396_v62 = vmul.f32 1.442695, %v3379_v38  ;;  %v3398_v61 = vmul.f32 1.442695, %v3380_v56 }
0x1fd3   :  { %v3400_v13 = vmul.f32 1.442695, %v3381_v15  ;;  %v3402_v25 = vmul.f32 1.442695, %v3382_v43  ;;  %v3404_v5 = vmul.f32 1.442695, %v3383_v36 }
0x1fd4   :  { %4300 = vpow2.f32 %v3394_v23  ;;  %v3406_v12 = vmul.f32 1.442695, %v3384_v59  ;;  %v3408_v44 = vmul.f32 1.442695, %v3385_v21 }
0x1fd5   :  { %4302 = vpow2.f32 %v3396_v62 }
0x1fd6   :  { %4304 = vpow2.f32 %v3398_v61 }
0x1fd7   :  { %4306 = vpow2.f32 %v3400_v13  ;;  %v3336_v55 = vpop.xlane.xlu2 %3335 }
0x1fd8   :  { %4308 = vpow2.f32 %v3402_v25  ;;  %v3365_v28 = vmax.f32 %v3330_v14, %v3336_v55 }
0x1fd9   :  { %4310 = vpow2.f32 %v3404_v5 }
0x1fda   :  { %v6326_v54 = vpop.eup %4300  ;;  %4312 = vpow2.f32 %v3406_v12 }
0x1fdb   :  { %v6329_v58 = vpop.eup %4302  ;;  %v3426_v45 = vsel %vm578_vm8, %v6326_v54, 0.0  ;;  %4314 = vpow2.f32 %v3408_v44 }
0x1fdc   :  { %v6334_v31 = vpop.eup %4304  ;;  %3427 = vadd.xlane.f32.xlu2 %v3426_v45  ;;  %v3429_v0 = vsel %vm578_vm8, %v6329_v58, 0.0 }
0x1fdd   :  { %3430 = vadd.xlane.f32.xlu1 %v3429_v0  ;;  %v3432_v52 = vsel %vm578_vm8, %v6334_v31, 0.0  ;;  %v6340_v47 = vpop.eup %4306 }
0x1fde   :  { %3433 = vadd.xlane.f32.xlu0 %v3432_v52  ;;  %v6342_v39 = vpop.eup %4308  ;;  %v3435_v6 = vsel %vm578_vm8, %v6340_v47, 0.0 }
0x1fdf   :  { %v6344_v1 = vpop.eup %4310  ;;  %v3438_v19 = vsel %vm578_vm8, %v6342_v39, 0.0  ;;  %v3339_v42 = vpop.xlane.xlu1 %3338 }
0x1fe0   :  { %v3441_v33 = vsel %vm578_vm8, %v6344_v1, 0.0  ;;  %v6352_v49 = vpop.eup %4312  ;;  %v3366_v10 = vmax.f32 %v3333_v57, %v3339_v42 }
0x1fe1   :  { %v6354_v7 = vpop.eup %4314  ;;  %v3444_v8 = vsel %vm578_vm8, %v6352_v49, 0.0 }
0x1fe2   :  { %v3447_v27 = vsel %vm578_vm8, %v6354_v7, 0.0 }
0x1fe4   :  { %3436 = vadd.xlane.f32.xlu2 %v3435_v6 }
0x1fe5   :  { %3439 = vadd.xlane.f32.xlu1 %v3438_v19 }
0x1fe6   :  { %3442 = vadd.xlane.f32.xlu0 %v3441_v33 }
0x1fe7   :  { %v3342_v30 = vpop.xlane.xlu0 %3341 }
0x1fe8   :  { %v3367_v56 = vmax.f32 %v3365_v28, %v3342_v30 }
0x1fec   :  { %3445 = vadd.xlane.f32.xlu2 %v3444_v8 }
0x1fed   :  { %3448 = vadd.xlane.f32.xlu1 %v3447_v27 }
0x1fef   :  { %v3345_v35 = vpop.xlane.xlu2 %3344 }
0x1ff0   :  { %v3368_v23 = vmax.f32 %v3366_v10, %v3345_v35 }
0x1ff7   :  { %v3348_v38 = vpop.xlane.xlu1 %3347 }
0x1ff8   :  { %v3369_v61 = vmax.f32 %v3367_v56, %v3348_v38 }
0x1fff   :  { %v3351_v62 = vpop.xlane.xlu0 %3350 }
0x2000   :  { %v3370_v15 = vmax.f32 %v3368_v23, %v3351_v62 }
0x2002   :  { %v3371_v43 = vmax.f32 %v3369_v61, %v3370_v15 }
0x2004   :  { %v3372_v36 = vrot.slane %v3371_v43, 4 }
0x2006   :  { %v3373_v13 = vmax.f32 %v3371_v43, %v3372_v36 }
0x2008   :  { %v3374_v25 = vrot.slane %v3373_v13, 2 }
0x200a   :  { %v3375_v5 = vmax.f32 %v3373_v13, %v3374_v25 }
0x200c   :  { %v3376_v59 = vrot.slane %v3375_v5, 1 }
0x200e   :  { %v3377_v45 = vmax.f32 %v3375_v5, %v3376_v59 }
0x2010   :  { %v3388_v21 = vsub.f32 %v6296_v4, %v3377_v45  ;;  %v3387_v0 = vsub.f32 %v6292_v3, %v3377_v45  ;;  %v3386_v52 = vsub.f32 %v6288_v20, %v3377_v45  ;;  %v3391_v19 = vsub.f32 %v6308_v34, %v3377_v45 }
0x2011   :  { %v3390_v33 = vsub.f32 %v6304_v16, %v3377_v45  ;;  %v3389_v8 = vsub.f32 %v6300_v18, %v3377_v45  ;;  %v3393_v34 = vsub.f32 %v6316_v48, %v3377_v45  ;;  %v3392_v55 = vsub.f32 %v6312_v51, %v3377_v45 }
0x2012   :  { %v3414_v12 = vmul.f32 1.442695, %v3388_v21  ;;  %v3412_v44 = vmul.f32 1.442695, %v3387_v0  ;;  %v3410_v6 = vmul.f32 1.442695, %v3386_v52 }
0x2013   :  { %v3420_v27 = vmul.f32 1.442695, %v3391_v19  ;;  %v3418_v14 = vmul.f32 1.442695, %v3390_v33  ;;  %v3416_v57 = vmul.f32 1.442695, %v3389_v8 }
0x2014   :  { %4316 = vpow2.f32 %v3414_v12  ;;  %v3424_v30 = vmul.f32 1.442695, %v3393_v34  ;;  %v3422_v28 = vmul.f32 1.442695, %v3392_v55 }
0x2015   :  { %4318 = vpow2.f32 %v3412_v44 }
0x2016   :  { %4320 = vpow2.f32 %v3410_v6 }
0x2017   :  { %4322 = vpow2.f32 %v3420_v27 }
0x2018   :  { %4324 = vpow2.f32 %v3418_v14 }
0x2019   :  { %4326 = vpow2.f32 %v3416_v57 }
0x201a   :  { %v6366_v4 = vpop.eup %4316  ;;  %4328 = vpow2.f32 %v3424_v30 }
0x201b   :  { %v6368_v3 = vpop.eup %4318  ;;  %v3456_v20 = vsel %vm578_vm8, %v6366_v4, 0.0  ;;  %4330 = vpow2.f32 %v3422_v28 }
0x201c   :  { %v6373_v16 = vpop.eup %4320  ;;  %3457 = vadd.xlane.f32.xlu1 %v3456_v20  ;;  %v3453_v18 = vsel %vm578_vm8, %v6368_v3, 0.0 }
0x201d   :  { %3454 = vadd.xlane.f32.xlu2 %v3453_v18  ;;  %v3450_v42 = vsel %vm578_vm8, %v6373_v16, 0.0  ;;  %v6380_v35 = vpop.eup %4322 }
0x201e   :  { %3451 = vadd.xlane.f32.xlu0 %v3450_v42  ;;  %v6382_v10 = vpop.eup %4324  ;;  %v3465_v38 = vsel %vm578_vm8, %v6380_v35, 0.0 }
0x201f   :  { %v6384_v48 = vpop.eup %4326  ;;  %v3462_v51 = vsel %vm578_vm8, %v6382_v10, 0.0 }
0x2020   :  { %v3459_v56 = vsel %vm578_vm8, %v6384_v48, 0.0  ;;  %v6392_v23 = vpop.eup %4328 }
0x2021   :  { %v6394_v62 = vpop.eup %4330  ;;  %v3471_v61 = vsel %vm578_vm8, %v6392_v23, 0.0 }
0x2022   :  { %v3468_v15 = vsel %vm578_vm8, %v6394_v62, 0.0 }
0x2024   :  { %3466 = vadd.xlane.f32.xlu1 %v3465_v38 }
0x2025   :  { %3463 = vadd.xlane.f32.xlu2 %v3462_v51 }
0x2026   :  { %3460 = vadd.xlane.f32.xlu0 %v3459_v56 }
0x202d   :  { %3472 = vadd.xlane.f32.xlu2 %v3471_v61 }
0x202e   :  { %3469 = vadd.xlane.f32.xlu0 %v3468_v15 }
0x204f   :  { %v3428_v43 = vpop.xlane.xlu2 %3427 }
0x2050   :  { %v3431_v36 = vpop.xlane.xlu1 %3430 }
0x2051   :  { %v3474_v13 = vadd.f32 %v3431_v36, %v3428_v43  ;;  %v3434_v25 = vpop.xlane.xlu0 %3433 }
0x2053   :  { %v3475_v5 = vadd.f32 %v3474_v13, %v3434_v25 }
0x2057   :  { %v3437_v59 = vpop.xlane.xlu2 %3436 }
0x2058   :  { %v3476_v45 = vadd.f32 %v3475_v5, %v3437_v59  ;;  %v3440_v21 = vpop.xlane.xlu1 %3439 }
0x2059   :  { %v3443_v52 = vpop.xlane.xlu0 %3442 }
0x205a   :  { %v3477_v0 = vadd.f32 %v3476_v45, %v3440_v21 }
0x205c   :  { %v3478_v12 = vadd.f32 %v3477_v0, %v3443_v52 }
0x205f   :  { %v3446_v44 = vpop.xlane.xlu2 %3445 }
0x2060   :  { %v3479_v6 = vadd.f32 %v3478_v12, %v3446_v44  ;;  %v3449_v19 = vpop.xlane.xlu1 %3448 }
0x2062   :  { %v3480_v33 = vadd.f32 %v3479_v6, %v3449_v19 }
0x2064   :  { %v3481_v8 = vrot.slane %v3480_v33, 4 }
0x2066   :  { %v3482_v27 = vadd.f32 %v3481_v8, %v3480_v33 }
0x2068   :  { %v3483_v14 = vrot.slane %v3482_v27, 2 }
0x206a   :  { %v3484_v57 = vadd.f32 %v3483_v14, %v3482_v27 }
0x206c   :  { %v3485_v20 = vrot.slane %v3484_v57, 1 }
0x206e   :  { %v3486_v34 = vadd.f32 %v3485_v20, %v3484_v57 }
0x2070   :  { %4332 = vrcp.f32 %v3486_v34 }
0x2076   :  { %v4333_v18 = vpop.eup %4332 }
0x2077   :  { %v3502_v55 = vmul.f32 %v4333_v18, %v6326_v54  ;;  %v3503_v42 = vmul.f32 %v4333_v18, %v6329_v58  ;;  %v3504_v30 = vmul.f32 %v4333_v18, %v6334_v31  ;;  %v3505_v28 = vmul.f32 %v4333_v18, %v6340_v47 }
0x2078   :  { %v3506_v54 = vmul.f32 %v4333_v18, %v6342_v39  ;;  %v3507_v25 = vmul.f32 %v4333_v18, %v6344_v1  ;;  %v3508_v39 = vmul.f32 %v4333_v18, %v6352_v49  ;;  %v3509_v19 = vmul.f32 %v4333_v18, %v6354_v7 }
0x2079   :  { %3917 = vmatmul.msk.f32.vlgmr.msrb.gmra.mxu1 %vm578_vm8, %v3502_v55 }
0x2081   :  { %3918 = vmatmul.msk.f32.gmra.mxu1 %vm578_vm8, %v3503_v42 }
0x2089   :  { %3919 = vmatmul.msk.f32.gmra.mxu1 %vm578_vm8, %v3504_v30 }
0x208f   :  { %v3458_v61 = vpop.xlane.xlu1 %3457 }
0x2090   :  { %v3455_v38 = vpop.xlane.xlu2 %3454 }
0x2091   :  { %v3452_v51 = vpop.xlane.xlu0 %3451  ;;  %3920 = vmatmul.msk.f32.gmra.mxu1 %vm578_vm8, %v3505_v28 }
0x2092   :  { %v3487_v56 = vadd.f32 %v3455_v38, %v3452_v51 }
0x2094   :  { %v3488_v15 = vadd.f32 %v3487_v56, %v3458_v61 }
0x2097   :  { %v3467_v31 = vpop.xlane.xlu1 %3466 }
0x2098   :  { %v3464_v43 = vpop.xlane.xlu2 %3463 }
0x2099   :  { %v3461_v36 = vpop.xlane.xlu0 %3460  ;;  %3921 = vmatmul.msk.f32.gmra.mxu1 %vm578_vm8, %v3506_v54 }
0x209a   :  { %v3489_v58 = vadd.f32 %v3488_v15, %v3461_v36 }
0x209c   :  { %v3490_v13 = vadd.f32 %v3489_v58, %v3464_v43 }
0x209e   :  { %v3491_v5 = vadd.f32 %v3490_v13, %v3467_v31 }
0x20a0   :  { %v3473_v45 = vpop.xlane.xlu2 %3472 }
0x20a1   :  { %v3470_v47 = vpop.xlane.xlu0 %3469  ;;  %3922 = vmatmul.msk.f32.gmra.mxu1 %vm578_vm8, %v3507_v25 }
0x20a2   :  { %v3492_v59 = vadd.f32 %v3491_v5, %v3470_v47 }
0x20a4   :  { %v3493_v21 = vadd.f32 %v3492_v59, %v3473_v45 }
0x20a6   :  { %v3494_v0 = vrot.slane %v3493_v21, 4 }
0x20a8   :  { %v3495_v52 = vadd.f32 %v3494_v0, %v3493_v21 }
0x20a9   :  { %3923 = vmatmul.msk.f32.gmra.mxu1 %vm578_vm8, %v3508_v39 }
0x20aa   :  { %v3496_v12 = vrot.slane %v3495_v52, 2 }
0x20ac   :  { %v3497_v44 = vadd.f32 %v3496_v12, %v3495_v52 }
0x20ae   :  { %v3498_v6 = vrot.slane %v3497_v44, 1 }
0x20b0   :  { %v3499_v33 = vadd.f32 %v3498_v6, %v3497_v44 }
0x20b1   :  { %3924 = vmatmul.msk.f32.gmra.mxu1 %vm578_vm8, %v3509_v19 }
0x20b2   :  { %4334 = vrcp.f32 %v3499_v33 }
0x20b8   :  { %v4335_v1 = vpop.eup %4334 }
0x20b9   :  { %v3510_v8 = vmul.f32 %v4335_v1, %v6373_v16  ;;  %v3511_v27 = vmul.f32 %v4335_v1, %v6368_v3  ;;  %v3512_v49 = vmul.f32 %v4335_v1, %v6366_v4  ;;  %v3513_v14 = vmul.f32 %v4335_v1, %v6384_v48 }
0x20ba   :  { %v3514_v7 = vmul.f32 %v4335_v1, %v6382_v10  ;;  %v3515_v16 = vmul.f32 %v4335_v1, %v6380_v35  ;;  %v3516_v3 = vmul.f32 %v4335_v1, %v6394_v62  ;;  %v3517_v4 = vmul.f32 %v4335_v1, %v6392_v23 }
0x20bb   :  { %3925 = vmatmul.msk.f32.gmra.mxu1 %vm578_vm8, %v3510_v8 }
0x20c3   :  { %3926 = vmatmul.msk.f32.gmra.mxu1 %vm578_vm8, %v3511_v27 }
0x20cb   :  { %3927 = vmatmul.msk.f32.gmra.mxu1 %vm578_vm8, %v3512_v49 }
0x20d3   :  { %3928 = vmatmul.msk.f32.gmra.mxu1 %vm578_vm8, %v3513_v14 }
0x20db   :  { %3929 = vmatmul.msk.f32.gmra.mxu1 %vm578_vm8, %v3514_v7 }
0x20e3   :  { %3930 = vmatmul.msk.f32.gmra.mxu1 %vm578_vm8, %v3515_v16 }
0x20eb   :  { %3931 = vmatmul.msk.f32.gmra.mxu1 %vm578_vm8, %v3516_v3 }
0x20f3   :  { %3932 = vmatmul.msk.f32.gmra.mxu1 %vm578_vm8, %v3517_v4  ;;  %vm3785_vm8 = vcmask 195584  }
0x20f6   :  { %v3583_v57 = vpop.f32.mrf.mxu1 }
0x20f7   :  { %v3631_v35 = vmul.f32 %v3583_v57, %v4670_v17 }
0x20fe   :  { %v3586_v48 = vpop.f32.mrf.mxu1 }
0x20ff   :  { %v3632_v55 = vmul.f32 %v3586_v48, %v4683_v22 }
0x2101   :  { %v3647_v30 = vadd.f32 %v3632_v55, %v3631_v35 }
0x2106   :  { %v3589_v20 = vpop.f32.mrf.mxu1 }
0x2107   :  { %v3633_v42 = vmul.f32 %v3589_v20, %v4698_v24 }
0x2109   :  { %v3648_v38 = vadd.f32 %v3647_v30, %v3633_v42 }
0x210e   :  { %v3592_v34 = vpop.f32.mrf.mxu1 }
0x210f   :  { %v3634_v62 = vmul.f32 %v3592_v34, %v4702_v26 }
0x2111   :  { %v3649_v51 = vadd.f32 %v3648_v38, %v3634_v62 }
0x2116   :  { %v3595_v18 = vpop.f32.mrf.mxu1 }
0x2117   :  { %v3635_v23 = vmul.f32 %v3595_v18, %v4706_v29 }
0x2119   :  { %v3650_v61 = vadd.f32 %v3649_v51, %v3635_v23 }
0x211e   :  { %v3598_v10 = vpop.f32.mrf.mxu1 }
0x211f   :  { %v3636_v56 = vmul.f32 %v3598_v10, %v4710_v32 }
0x2121   :  { %v3651_v15 = vadd.f32 %v3650_v61, %v3636_v56 }
0x2126   :  { %v3601_v28 = vpop.f32.mrf.mxu1 }
0x2127   :  { %v3637_v54 = vmul.f32 %v3601_v28, %v4716_v37  ;;  %v6594_v37 = vld [vmem:[#allocation22_spill] sm:$0xff] }
0x2129   :  { %v3652_v22 = vadd.f32 %v3651_v15, %v3637_v54  ;;  %v6596_v54 = vld [vmem:[#allocation21_spill] sm:$0xff] }
0x212e   :  { %v3604_v43 = vpop.f32.mrf.mxu1 }
0x212f   :  { %v3638_v17 = vmul.f32 %v3604_v43, %v4720_v41 }
0x2131   :  { %v3653_v36 = vadd.f32 %v3652_v22, %v3638_v17 }
0x2133   :  { %v3654_v24 = vrot.slane %v3653_v36, 4 }
0x2135   :  { %v3655_v58 = vadd.f32 %v3654_v24, %v3653_v36 }
0x2137   :  { %v3656_v13 = vrot.slane %v3655_v58, 2 }
0x2138   :  { %v3607_v26 = vpop.f32.mrf.mxu1 }
0x2139   :  { %v3657_v31 = vadd.f32 %v3656_v13, %v3655_v58  ;;  %v3639_v21 = vmul.f32 %v3607_v26, %v4724_v40 }
0x213b   :  { %v3658_v25 = vrot.slane %v3657_v31, 1 }
0x213d   :  { %v3659_v5 = vadd.f32 %v3658_v25, %v3657_v31 }
0x213f   :  { %3675 = vrot.lane.b32.xlu0 %v3659_v5, %s4406_s25 }
0x2140   :  { %v3610_v29 = vpop.f32.mrf.mxu1 }
0x2141   :  { %v3640_v45 = vmul.f32 %v3610_v29, %v4728_v46 }
0x2143   :  { %v3660_v39 = vadd.f32 %v3640_v45, %v3639_v21 }
0x2147   :  { %3683 = vrot.lane.b32.xlu0 %v3659_v5, %s4404_s23 }
0x2148   :  { %v3613_v32 = vpop.f32.mrf.mxu1 }
0x2149   :  { %v3641_v0 = vmul.f32 %v3613_v32, %v4732_v50 }
0x214b   :  { %v3661_v44 = vadd.f32 %v3660_v39, %v3641_v0 }
0x214f   :  { %3770 = vrot.lane.b32.xlu0 %v6594_v37, %s4407_s8 }
0x2150   :  { %v3616_v47 = vpop.f32.mrf.mxu1 }
0x2151   :  { %v3642_v52 = vmul.f32 %v3616_v47, %v4736_v53 }
0x2153   :  { %v3662_v19 = vadd.f32 %v3661_v44, %v3642_v52 }
0x2158   :  { %v3619_v59 = vpop.f32.mrf.mxu1 }
0x2159   :  { %v3643_v6 = vmul.f32 %v3619_v59, %v4752_v60  ;;  %v6595_v60 = vld [vmem:[#allocation3_spill] sm:$0xff] }
0x215b   :  { %v3663_v1 = vadd.f32 %v3662_v19, %v3643_v6 }
0x2160   :  { %v3622_v41 = vpop.f32.mrf.mxu1 }
0x2161   :  { %v3644_v33 = vmul.f32 %v3622_v41, %v4756_v63 }
0x2163   :  { %v3664_v27 = vadd.f32 %v3663_v1, %v3644_v33 }
0x2168   :  { %v3625_v12 = vpop.f32.mrf.mxu1 }
0x2169   :  { %v3645_v8 = vmul.f32 %v3625_v12, %v4760_v2 }
0x216b   :  { %v3665_v46 = vadd.f32 %v3664_v27, %v3645_v8 }
0x2170   :  { %v3628_v49 = vpop.f32.mrf.mxu1 }
0x2171   :  { %v3646_v40 = vmul.f32 %v3628_v49, %v4764_v9 }
0x2173   :  { %v3666_v14 = vadd.f32 %v3665_v46, %v3646_v40 }
0x2175   :  { %v3667_v50 = vrot.slane %v3666_v14, 4 }
0x2177   :  { %v3668_v7 = vadd.f32 %v3667_v50, %v3666_v14 }
0x2179   :  { %v3669_v16 = vrot.slane %v3668_v7, 2 }
0x217b   :  { %v3670_v53 = vadd.f32 %v3669_v16, %v3668_v7 }
0x217d   :  { %v3671_v3 = vrot.slane %v3670_v53, 1 }
0x217f   :  { %v3672_v4 = vadd.f32 %v3671_v3, %v3670_v53 }
0x2181   :  { %3685 = vrot.lane.b32.xlu2 %v3672_v4, %s4404_s23  ;;  %3677 = vrot.lane.b32.xlu1 %v3672_v4, %s4406_s25 }
0x2189   :  { %3691 = vrot.lane.b32.xlu2 %v3659_v5, %s4405_s1  ;;  %3693 = vrot.lane.b32.xlu1 %v3672_v4, %s4405_s1 }
0x2191   :  { %3778 = vrot.lane.b32.xlu2 %v6227_v11, %s4408_s10  ;;  %3774 = vrot.lane.b32.xlu1 %v6595_v60, %s4409_s2  ;;  %v3742_v11 = vpop.f32.mrf.mxu0 }
0x21b1   :  { %v3676_v63 = vpop.permute.xlu0 %3675 }
0x21b2   :  { %v3681_v20 = vadd.f32 %v3676_v63, %v3659_v5 }
0x21b9   :  { %v3684_v48 = vpop.permute.xlu0 %3683 }
0x21ba   :  { %v3689_v55 = vadd.f32 %v3684_v48, %v3681_v20 }
0x21c1   :  { %v3771_v56 = vpop.permute.xlu0 %3770 }
0x21c2   :  { %v3786_v15 = vsel %vm3785_vm8, %v6596_v54, %v3771_v56 }
0x21db   :  { %v3686_v2 = vpop.permute.xlu2 %3685 }
0x21e3   :  { %v3692_v18 = vpop.permute.xlu2 %3691 }
0x21e4   :  { %v3697_v42 = vadd.f32 %v3692_v18, %v3689_v55 }
0x21eb   :  { %v3779_v22 = vpop.permute.xlu2 %3778 }
0x21f3   :  { %v3678_v9 = vpop.permute.xlu1 %3677 }
0x21f4   :  { %v3682_v57 = vadd.f32 %v3678_v9, %v3672_v4 }
0x21f6   :  { %v3690_v34 = vadd.f32 %v3686_v2, %v3682_v57 }
0x21fb   :  { %v3694_v10 = vpop.permute.xlu1 %3693 }
0x21fc   :  { %v3698_v35 = vadd.f32 %v3694_v10, %v3690_v34 }
0x21fe   :  { %v3701_v30 = vrot.slane %v3698_v35, 7 }
0x2200   :  { %v3702_v62 = vsel %vm980_vm9, %v3701_v30, %v3697_v42  ;;  %vm3789_vm9 = vcmask 588800  }
0x2201   :  { %3933 = vmatmul.msk.f32.vlgmr.msrb.gmra.mxu3 %vm389_vm7, %v3702_v62  ;;  %vm3793_vm7 = vcmask 975872  }
0x2203   :  { %v3775_v61 = vpop.permute.xlu1 %3774 }
0x2204   :  { %v3788_v43 = vsel %vm3787_vm14, %v3786_v15, %v3775_v61 }
0x2205   :  { %v3790_v17 = vsel %vm3789_vm9, %v3788_v43, %v3779_v22 }
0x2284   :  { %v3722_v28 = vpop.f32.mrf.mxu3 }
0x2285   :  { %v3743_v38 = vadd.f32 %v3742_v11, %v3722_v28 }
0x2287   :  { %4336 = vtanh.f32 %v3743_v38 }
0x228d   :  { %v4337_v23 = vpop.eup %4336 }
0x228e   :  { %3935 = vmatmul.msk.f32.vlgmr.msra.gmra.mxu3 %vm335_vm0, %v4337_v23 }
0x2311   :  { %v3766_v51 = vpop.f32.mrf.mxu3 }
0x2312   :  { %3782 = vrot.lane.b32.xlu0 %v3766_v51, %s4406_s25 }
0x2384   :  { %v3783_v36 = vpop.permute.xlu0 %3782 }
0x2385   :  { %v3792_v24 = vsel %vm3791_vm15, %v3790_v17, %v3783_v36 }
0x2386   :  { %3794 = vst.msk [vmem:[%s6480_s15] sm:$0x3] %vm3793_vm7, %v3792_v24 }

</bundles_post_ra>
